<compile_context>
chip_gen: v5e
topology: v5e:2x2
jax: 0.10.0
libtpu: 0.0.40
codegen_flags: <defaults>
</compile_context>

<pallas_src>
import functools
import numpy as np
import jax
import jax.numpy as jnp
from jax.experimental import pallas as pl
from jax.experimental.pallas import tpu as pltpu

NEG_SLOPE = 0.01  # nn.LeakyReLU default


@functools.lru_cache(maxsize=None)
def _interp_matrix(n_in, n_out):
    """1-D linear interpolation operator matching PyTorch bilinear, align_corners=True."""
    M = np.zeros((n_out, n_in), dtype=np.float32)
    if n_in == 1 or n_out == 1:
        M[:, 0] = 1.0
        return M
    src = np.arange(n_out, dtype=np.float64) * (n_in - 1) / (n_out - 1)
    lo = np.clip(np.floor(src).astype(np.int64), 0, n_in - 2)
    frac = src - lo
    M[np.arange(n_out), lo] = (1.0 - frac).astype(np.float32)
    M[np.arange(n_out), lo + 1] = frac.astype(np.float32)
    return M


@functools.lru_cache(maxsize=None)
def _block_diag_interp(n_in, n_out, n_ch):
    """Block-diagonal H-pass operator: one MXU matmul upsamples all channels at once."""
    return np.kron(np.eye(n_ch, dtype=np.float32), _interp_matrix(n_in, n_out))


def _upsample2_kernel(uwt_ref, uhb_ref, w_ref, b_ref, x_ref, o_ref, pad_ref, *,
                      C_in, H_in, W_in, C_out, H_out, W_out):
    HW = H_out * W_out

    # ---- separable bilinear upsample (align_corners=True), channels-first ----
    x2d = x_ref[0].reshape(C_in * H_in, W_in)                 # leading-dim merge: free
    # W pass: contract W_in with Uw^T.
    t1 = jnp.dot(x2d, uwt_ref[...],
                 preferred_element_type=jnp.float32)          # (C_in*H_in, W_out)
    # H pass for every channel in one matmul via the block-diagonal operator.
    u = jnp.dot(uhb_ref[...], t1,
                preferred_element_type=jnp.float32)           # (C_in*H_out, W_out)

    # ---- zero-padded (padding=1) conv input buffer, channels-first ----
    pad_ref[...] = jnp.zeros_like(pad_ref)
    pad_ref[:, 1:1 + H_out, 1:1 + W_out] = u.reshape(C_in, H_out, W_out)

    # ---- 3x3 conv as a single im2col matmul: (C_out, 9*C_in) @ (9*C_in, HW) ----
    patches = []
    for dh in range(3):                                       # static 3x3 taps
        for dw in range(3):
            patches.append(
                pad_ref[:, dh:dh + H_out, dw:dw + W_out].reshape(C_in, HW))
    p = jnp.concatenate(patches, axis=0)                      # (9*C_in, HW)
    acc = jnp.dot(w_ref[...], p,
                  preferred_element_type=jnp.float32)         # (C_out, HW)

    # ---- lane-dense epilogue: bias + LeakyReLU + store at HW lanes ----
    out = acc + b_ref[...]                                    # (C_out, HW) + (C_out, 1)
    out = jnp.where(out >= 0.0, out, NEG_SLOPE * out)         # LeakyReLU
    o_ref[0] = out.astype(o_ref.dtype)


@functools.partial(jax.jit, static_argnames=("scale_factor",))
def upsample2_forward(x_nchw, weight, bias, scale_factor=2):
    """x_nchw: (N, C_in, H, W); weight: (C_out, C_in, 3, 3); bias: (C_out,)."""
    N, C_in, H_in, W_in = x_nchw.shape
    C_out = weight.shape[0]
    H_out, W_out = H_in * scale_factor, W_in * scale_factor

    # Small separable interpolation operators (cached on host, constant-folded).
    UwT = jnp.asarray(_interp_matrix(W_in, W_out).T)                 # (W_in, W_out)
    UhB = jnp.asarray(_block_diag_interp(H_in, H_out, C_in))         # (C_in*H_out, C_in*H_in)

    # Conv weight -> (C_out, 9*C_in) with columns ordered (dh, dw, ci); bias -> (C_out, 1).
    w_mat = jnp.transpose(weight, (0, 2, 3, 1)).reshape(C_out, 9 * C_in).astype(jnp.float32)
    b2 = bias.reshape(C_out, 1).astype(jnp.float32)

    kernel = functools.partial(
        _upsample2_kernel,
        C_in=C_in, H_in=H_in, W_in=W_in, C_out=C_out, H_out=H_out, W_out=W_out)

    out_flat = pl.pallas_call(
        kernel,
        out_shape=jax.ShapeDtypeStruct((N, C_out, H_out * W_out), jnp.float32),
        grid_spec=pltpu.PrefetchScalarGridSpec(
            num_scalar_prefetch=0,
            grid=(N,),
            in_specs=[
                pl.BlockSpec((W_in, W_out), lambda n: (0, 0)),                   # Uw^T
                pl.BlockSpec((C_in * H_out, C_in * H_in), lambda n: (0, 0)),     # block-diag Uh
                pl.BlockSpec((C_out, 9 * C_in), lambda n: (0, 0)),               # conv weights
                pl.BlockSpec((C_out, 1), lambda n: (0, 0)),                      # bias
                pl.BlockSpec((1, C_in, H_in, W_in), lambda n: (n, 0, 0, 0)),     # x (NCHW)
            ],
            out_specs=pl.BlockSpec((1, C_out, H_out * W_out), lambda n: (n, 0, 0)),
            scratch_shapes=[pltpu.VMEM((C_in, H_out + 2, W_out + 2), jnp.float32)],
        ),
        compiler_params=pltpu.CompilerParams(dimension_semantics=("parallel",)),
    )(UwT, UhB, w_mat, b2, x_nchw.astype(jnp.float32))

    # (N, C_out, H*W) is flattened NCHW -> plain reshape, no transpose needed.
    return out_flat.reshape(N, C_out, H_out, W_out)


def _reference(x_nchw, weight, bias, scale_factor=2):
    """Pure-JAX reference with identical semantics (for correctness check)."""
    N, C_in, H_in, W_in = x_nchw.shape
    H_out, W_out = H_in * scale_factor, W_in * scale_factor
    Uh = jnp.asarray(_interp_matrix(H_in, H_out))
    Uw = jnp.asarray(_interp_matrix(W_in, W_out))
    up = jnp.einsum('oh,nchw,pw->ncop', Uh, x_nchw, Uw)
    y = jax.lax.conv_general_dilated(
        up, weight, window_strides=(1, 1), padding=((1, 1), (1, 1)),
        dimension_numbers=('NCHW', 'OIHW', 'NCHW'))
    y = y + bias.reshape(1, -1, 1, 1)
    return jnp.where(y >= 0, y, NEG_SLOPE * y)


if __name__ == "__main__":
    key = jax.random.PRNGKey(0)
    k1, k2, k3 = jax.random.split(key, 3)

    N, C_in, H, W = 2, 4, 16, 16
    C_out = 8

    x = jax.random.normal(k1, (N, C_in, H, W), dtype=jnp.float32)
    weight = jax.random.normal(k2, (C_out, C_in, 3, 3), dtype=jnp.float32) * 0.1
    bias = jax.random.normal(k3, (C_out,), dtype=jnp.float32) * 0.1

    out = upsample2_forward(x, weight, bias)
    out = jax.block_until_ready(out)

    assert out.shape == (N, C_out, 2 * H, 2 * W), out.shape
    ref = _reference(x, weight, bias)
    np.testing.assert_allclose(np.asarray(out), np.asarray(ref), rtol=1e-4, atol=1e-4)

    print("KERNEL_OK")
</pallas_src>

<mosaic_0001>
module attributes {stable_mosaic.version = 11 : i64} {
  func.func @_upsample2_kernel(%arg0: i32, %arg1: memref<16x32xf32, #tpu.memory_space<vmem>>, %arg2: memref<128x64xf32, #tpu.memory_space<vmem>>, %arg3: memref<8x36xf32, #tpu.memory_space<vmem>>, %arg4: memref<8x1xf32, #tpu.memory_space<vmem>>, %arg5: memref<1x4x16x16xf32, #tpu.memory_space<vmem>>, %arg6: memref<1x8x1024xf32, #tpu.memory_space<vmem>>, %arg7: memref<4x34x34xf32, #tpu.memory_space<vmem>>) attributes {dimension_semantics = [#tpu.dimension_semantics<parallel>], iteration_bounds = array<i64: 2>, scalar_prefetch = 0 : i64, scratch_operands = 1 : i64, tpu.core_type = #tpu.core_type<tc>, window_params = [{pipeline_mode = #tpu.pipeline_mode<synchronous>, transform_indices = @transform_0, window_bounds = array<i64: 16, 32>}, {pipeline_mode = #tpu.pipeline_mode<synchronous>, transform_indices = @transform_1, window_bounds = array<i64: 128, 64>}, {pipeline_mode = #tpu.pipeline_mode<synchronous>, transform_indices = @transform_2, window_bounds = array<i64: 8, 36>}, {pipeline_mode = #tpu.pipeline_mode<synchronous>, transform_indices = @transform_3, window_bounds = array<i64: 8, 1>}, {transform_indices = @transform_4, window_bounds = array<i64: 1, 4, 16, 16>}, {transform_indices = @transform_5, window_bounds = array<i64: 1, 8, 1024>}]} {
    %c0 = arith.constant 0 : index
    %c0_0 = arith.constant 0 : index
    %c0_1 = arith.constant 0 : index
    %c0_2 = arith.constant 0 : index
    %0 = vector.load %arg5[%c0, %c0_0, %c0_1, %c0_2] : memref<1x4x16x16xf32, #tpu.memory_space<vmem>>, vector<1x4x16x16xf32>
    %1 = vector.shape_cast %0 : vector<1x4x16x16xf32> to vector<4x16x16xf32>
    %2 = vector.shape_cast %1 : vector<4x16x16xf32> to vector<64x16xf32>
    %c0_3 = arith.constant 0 : index
    %c0_4 = arith.constant 0 : index
    %3 = vector.load %arg1[%c0_3, %c0_4] : memref<16x32xf32, #tpu.memory_space<vmem>>, vector<16x32xf32>
    %cst = arith.constant dense<0.000000e+00> : vector<64x32xf32>
    %4 = tpu.matmul %2, %3, %cst {dimension_numbers = #tpu.dot_dimension_numbers<[1], [0], [0], [1], [0, 0, 1, 1], [], []>} : vector<64x16xf32>, vector<16x32xf32>, vector<64x32xf32> -> vector<64x32xf32>
    %c0_5 = arith.constant 0 : index
    %c0_6 = arith.constant 0 : index
    %5 = vector.load %arg2[%c0_5, %c0_6] : memref<128x64xf32, #tpu.memory_space<vmem>>, vector<128x64xf32>
    %cst_7 = arith.constant dense<0.000000e+00> : vector<128x32xf32>
    %6 = tpu.matmul %5, %4, %cst_7 {dimension_numbers = #tpu.dot_dimension_numbers<[1], [0], [0], [1], [0, 0, 1, 1], [], []>} : vector<128x64xf32>, vector<64x32xf32>, vector<128x32xf32> -> vector<128x32xf32>
    %cst_8 = arith.constant 0.000000e+00 : f32
    %7 = vector.broadcast %cst_8 : f32 to vector<4x34x34xf32>
    %c0_9 = arith.constant 0 : index
    %c0_10 = arith.constant 0 : index
    %c0_11 = arith.constant 0 : index
    %8 = vector.load %arg7[%c0_9, %c0_10, %c0_11] : memref<4x34x34xf32, #tpu.memory_space<vmem>>, vector<4x34x34xf32>
    tpu.vector_store %arg7[%c0_9, %c0_10, %c0_11], %7 {strides = array<i32>} : memref<4x34x34xf32, #tpu.memory_space<vmem>>, vector<4x34x34xf32>,
    %9 = vector.shape_cast %6 : vector<128x32xf32> to vector<4x32x32xf32>
    %c0_12 = arith.constant 0 : index
    %c1 = arith.constant 1 : index
    %c1_13 = arith.constant 1 : index
    %10 = vector.load %arg7[%c0_12, %c1, %c1_13] : memref<4x34x34xf32, #tpu.memory_space<vmem>>, vector<4x32x32xf32>
    tpu.vector_store %arg7[%c0_12, %c1, %c1_13], %9 {strides = array<i32>} : memref<4x34x34xf32, #tpu.memory_space<vmem>>, vector<4x32x32xf32>,
    %c0_14 = arith.constant 0 : index
    %c0_15 = arith.constant 0 : index
    %c0_16 = arith.constant 0 : index
    %11 = vector.load %arg7[%c0_14, %c0_15, %c0_16] : memref<4x34x34xf32, #tpu.memory_space<vmem>>, vector<4x32x32xf32>
    %12 = vector.shape_cast %11 : vector<4x32x32xf32> to vector<4x1024xf32>
    %c0_17 = arith.constant 0 : index
    %c0_18 = arith.constant 0 : index
    %c1_19 = arith.constant 1 : index
    %13 = vector.load %arg7[%c0_17, %c0_18, %c1_19] : memref<4x34x34xf32, #tpu.memory_space<vmem>>, vector<4x32x32xf32>
    %14 = vector.shape_cast %13 : vector<4x32x32xf32> to vector<4x1024xf32>
    %c0_20 = arith.constant 0 : index
    %c0_21 = arith.constant 0 : index
    %c2 = arith.constant 2 : index
    %15 = vector.load %arg7[%c0_20, %c0_21, %c2] : memref<4x34x34xf32, #tpu.memory_space<vmem>>, vector<4x32x32xf32>
    %16 = vector.shape_cast %15 : vector<4x32x32xf32> to vector<4x1024xf32>
    %c0_22 = arith.constant 0 : index
    %c1_23 = arith.constant 1 : index
    %c0_24 = arith.constant 0 : index
    %17 = vector.load %arg7[%c0_22, %c1_23, %c0_24] : memref<4x34x34xf32, #tpu.memory_space<vmem>>, vector<4x32x32xf32>
    %18 = vector.shape_cast %17 : vector<4x32x32xf32> to vector<4x1024xf32>
    %c0_25 = arith.constant 0 : index
    %c1_26 = arith.constant 1 : index
    %c1_27 = arith.constant 1 : index
    %19 = vector.load %arg7[%c0_25, %c1_26, %c1_27] : memref<4x34x34xf32, #tpu.memory_space<vmem>>, vector<4x32x32xf32>
    %20 = vector.shape_cast %19 : vector<4x32x32xf32> to vector<4x1024xf32>
    %c0_28 = arith.constant 0 : index
    %c1_29 = arith.constant 1 : index
    %c2_30 = arith.constant 2 : index
    %21 = vector.load %arg7[%c0_28, %c1_29, %c2_30] : memref<4x34x34xf32, #tpu.memory_space<vmem>>, vector<4x32x32xf32>
    %22 = vector.shape_cast %21 : vector<4x32x32xf32> to vector<4x1024xf32>
    %c0_31 = arith.constant 0 : index
    %c2_32 = arith.constant 2 : index
    %c0_33 = arith.constant 0 : index
    %23 = vector.load %arg7[%c0_31, %c2_32, %c0_33] : memref<4x34x34xf32, #tpu.memory_space<vmem>>, vector<4x32x32xf32>
    %24 = vector.shape_cast %23 : vector<4x32x32xf32> to vector<4x1024xf32>
    %c0_34 = arith.constant 0 : index
    %c2_35 = arith.constant 2 : index
    %c1_36 = arith.constant 1 : index
    %25 = vector.load %arg7[%c0_34, %c2_35, %c1_36] : memref<4x34x34xf32, #tpu.memory_space<vmem>>, vector<4x32x32xf32>
    %26 = vector.shape_cast %25 : vector<4x32x32xf32> to vector<4x1024xf32>
    %c0_37 = arith.constant 0 : index
    %c2_38 = arith.constant 2 : index
    %c2_39 = arith.constant 2 : index
    %27 = vector.load %arg7[%c0_37, %c2_38, %c2_39] : memref<4x34x34xf32, #tpu.memory_space<vmem>>, vector<4x32x32xf32>
    %28 = vector.shape_cast %27 : vector<4x32x32xf32> to vector<4x1024xf32>
    %29 = tpu.concatenate %12, %14, %16, %18, %20, %22, %24, %26, %28 in 0 : vector<4x1024xf32>, vector<4x1024xf32>, vector<4x1024xf32>, vector<4x1024xf32>, vector<4x1024xf32>, vector<4x1024xf32>, vector<4x1024xf32>, vector<4x1024xf32>, vector<4x1024xf32> -> vector<36x1024xf32>
    %c0_40 = arith.constant 0 : index
    %c0_41 = arith.constant 0 : index
    %30 = vector.load %arg3[%c0_40, %c0_41] : memref<8x36xf32, #tpu.memory_space<vmem>>, vector<8x36xf32>
    %cst_42 = arith.constant dense<0.000000e+00> : vector<8x1024xf32>
    %31 = tpu.matmul %30, %29, %cst_42 {dimension_numbers = #tpu.dot_dimension_numbers<[1], [0], [0], [1], [0, 0, 1, 1], [], []>} : vector<8x36xf32>, vector<36x1024xf32>, vector<8x1024xf32> -> vector<8x1024xf32>
    %c0_43 = arith.constant 0 : index
    %c0_44 = arith.constant 0 : index
    %32 = vector.load %arg4[%c0_43, %c0_44] : memref<8x1xf32, #tpu.memory_space<vmem>>, vector<8x1xf32>
    %33 = vector.broadcast %32 : vector<8x1xf32> to vector<8x1024xf32>
    %34 = arith.addf %31, %33 : vector<8x1024xf32>
    %cst_45 = arith.constant 0.000000e+00 : f32
    %35 = vector.broadcast %cst_45 : f32 to vector<8x1024xf32>
    %36 = arith.cmpf oge, %34, %35 : vector<8x1024xf32>
    %cst_46 = arith.constant 0.00999999977 : f32
    %37 = vector.broadcast %cst_46 : f32 to vector<8x1024xf32>
    %38 = arith.mulf %37, %34 : vector<8x1024xf32>
    %39 = arith.select %36, %34, %38 : vector<8x1024xi1>, vector<8x1024xf32>
    %c0_47 = arith.constant 0 : index
    %c0_48 = arith.constant 0 : index
    %c0_49 = arith.constant 0 : index
    %40 = vector.load %arg6[%c0_47, %c0_48, %c0_49] : memref<1x8x1024xf32, #tpu.memory_space<vmem>>, vector<1x8x1024xf32>
    %41 = vector.shape_cast %40 : vector<1x8x1024xf32> to vector<8x1024xf32>
    %42 = vector.shape_cast %39 : vector<8x1024xf32> to vector<1x8x1024xf32>
    tpu.vector_store %arg6[%c0_47, %c0_48, %c0_49], %42 {strides = array<i32>} : memref<1x8x1024xf32, #tpu.memory_space<vmem>>, vector<1x8x1024xf32>,
    return
  }
  func.func @transform_0(%arg0: i32) -> (i32, i32) {
    %c0_i32 = arith.constant 0 : i32
    %c0_i32_0 = arith.constant 0 : i32
    %c0_i32_1 = arith.constant 0 : i32
    return %c0_i32, %c0_i32_0 : i32, i32
  }
  func.func @transform_1(%arg0: i32) -> (i32, i32) {
    %c0_i32 = arith.constant 0 : i32
    %c0_i32_0 = arith.constant 0 : i32
    %c0_i32_1 = arith.constant 0 : i32
    return %c0_i32, %c0_i32_0 : i32, i32
  }
  func.func @transform_2(%arg0: i32) -> (i32, i32) {
    %c0_i32 = arith.constant 0 : i32
    %c0_i32_0 = arith.constant 0 : i32
    %c0_i32_1 = arith.constant 0 : i32
    return %c0_i32, %c0_i32_0 : i32, i32
  }
  func.func @transform_3(%arg0: i32) -> (i32, i32) {
    %c0_i32 = arith.constant 0 : i32
    %c0_i32_0 = arith.constant 0 : i32
    %c0_i32_1 = arith.constant 0 : i32
    return %c0_i32, %c0_i32_0 : i32, i32
  }
  func.func @transform_4(%arg0: i32) -> (i32, i32, i32, i32) {
    %c0_i32 = arith.constant 0 : i32
    %c0_i32_0 = arith.constant 0 : i32
    %c0_i32_1 = arith.constant 0 : i32
    %c0_i32_2 = arith.constant 0 : i32
    return %arg0, %c0_i32, %c0_i32_0, %c0_i32_1 : i32, i32, i32, i32
  }
  func.func @transform_5(%arg0: i32) -> (i32, i32, i32) {
    %c0_i32 = arith.constant 0 : i32
    %c0_i32_0 = arith.constant 0 : i32
    %c0_i32_1 = arith.constant 0 : i32
    return %arg0, %c0_i32, %c0_i32_0 : i32, i32, i32
  }
}

</mosaic_0001>

<bundles_post_ra>
// kernel: upsample2_forward.1
= control target key start
LH: loop header
LB: loop body
LE: loop exit
PB: predicated region body
PF: predicated region fallthrough
CT: control target
= control target key end

     0   :  { %10 = vsyncpa [#allocation4], 0  ;;  %s9521_s0 = inlined_call_operand.hbm [shape: f32[16,32], index: 0, kind: input, shape index: {}]   ;;  %s9522_s1 = inlined_call_operand.hbm [shape: f32[128,64], index: 1, kind: input, shape index: {}]   ;;  %s9523_s2 = inlined_call_operand.vmem [shape: f32[8,36], index: 2, kind: input, shape index: {}]   ;;  %s9524_s3 = inlined_call_operand.vmem [shape: f32[8,1], index: 3, kind: input, shape index: {}]   ;;  %s9525_s4 = inlined_call_operand.vmem [shape: f32[2,4,16,16], index: 4, kind: input, shape index: {}]   ;;  %s9526_s5 = inlined_call_operand.vmem [shape: f32[2,8,1024], index: 5, kind: output, shape index: {}]  }
   0x1   :  { %11 = vsyncpa [#allocation6], 0  ;;  %s5399_s18 = smov 0  }
   0x2 LB: > { %s169_s21 = sshll.u32 %s9521_s0, 4  ;;  %s4484_s22 = sadd.s32 4294967295, %s5353_s18   ;;  %s5353_s18 = sphi %s5399_s18, %s17_s18   ;;  %s170_s21 = int_to_ptr.hbm [resolvable:$true] %s169_s21 }
   0x3   : > { %p4486_p0 = scmp.ge.s32.totalorder %s5353_s18, 1  ;;  %p158_p1 = scmp.lt.s32.totalorder %s5353_s18, 3 }
   0x4   : > { %p4572_p2 = scmp.eq.s32.totalorder %s4484_s22, 0  ;;  %s5355_s24 = smov [#allocation3]  }
   0x5   : > { %p5410_p3 = pnand %p4486_p0, %p158_p1  ;;  %s171_s25 = sshll.u32 %s5355_s24, 4  ;;  %s172_s25 = int_to_ptr.vmem [resolvable:$true] %s171_s25 }
   0x6   : > { %s183_s28 = sshll.u32 %s9522_s1, 4  ;;  %s5356_s29 = smov [#allocation5]   ;;  %s184_s28 = int_to_ptr.hbm [resolvable:$true] %s183_s28 }
   0x7   : > { %p4565_p4 = pneg %p5410_p3  ;;  %s185_s30 = sshll.u32 %s5356_s29, 4  ;;  %s186_s30 = int_to_ptr.vmem [resolvable:$true] %s185_s30 }
   0x8   : > { %s5357_s6 = smov 128   ;;  %s5358_s7 = smov 8  }
   0x9   : > { %p4566_p5 = pnand %p4572_p2, %p4565_p4  ;;  %215 = sbr.rel (%p5410_p3) target bundleno = 1239 (0x4d7), region = 40 }
   0xb   : > { %4568 = dma.hbm_to_vmem [thread:$0]  (!%p4566_p5), %s170_s21, 256, %s172_s25, [#allocation4], %s5357_s6, %s5357_s6, %s5358_s7  }
   0xc   : > { %4571 = dma.hbm_to_vmem [thread:$0]  (!%p4566_p5), %s184_s28, 2048, %s186_s30, [#allocation6], %s5357_s6, %s5357_s6, %s5358_s7  }
   0xe   : > { %5344 = dma.done.wait (%p4572_p2), [#allocation4], 256  }
   0xf   : > { %5346 = vsyncadd (%p4572_p2), [#allocation4], 4294967040 }
  0x10   : > { %5348 = dma.done.wait (%p4572_p2), [#allocation6], 2048  }
  0x11   : > { %5350 = vsyncadd (%p4572_p2), [#allocation6], 4294965248  ;;  %p249_p6 = scmp.lt.s32.totalorder %s4484_s22, 1  ;;  %v268_v0 = vld [vmem:[#allocation3 + $0x8] sm:$0xff]  ;;  %v267_v1 = vld [vmem:[#allocation3] sm:$0xff]  ;;  %vm269_vm0 = vcmask 130048  }
  0x12   : > { %308 = vmatpush.msra.mxu0 %v268_v0  ;;  %v335_v18 = vld [vmem:[#allocation5] sm:$0xff]  ;;  %vm351_vm1 = vcmask 523264   ;;  %v336_v21 = vld [vmem:[#allocation5 + $0x8] sm:$0xff]  ;;  %v337_v24 = vld [vmem:[#allocation5 + $0x10] sm:$0xff]  ;;  %s5359_s12 = smov 1   ;;  %vm465_vm2 = vcmask 277504  }
  0x13   : > { %s10527_s22 = smov (!%p249_p6, %s4484_s22), 1  ;;  %v343_v19 = vld [vmem:[#allocation5 + $0x40] sm:$0xff]  ;;  %v344_v22 = vld [vmem:[#allocation5 + $0x48] sm:$0xff]  ;;  %v345_v25 = vld [vmem:[#allocation5 + $0x50] sm:$0xff]  ;;  %v5360_v44 = vmov 0.0   ;;  %vm470_vm3 = vcmask 271360  }
  0x14   : > { %s4539_s8 = sshll.u32 %s10527_s22, 6  ;;  %309 = vmatpush.msra.mxu0 %v267_v1  ;;  %v347_v20 = vld [vmem:[#allocation5 + $0x60] sm:$0xff]  ;;  %v348_v23 = vld [vmem:[#allocation5 + $0x68] sm:$0xff]  ;;  %v349_v26 = vld [vmem:[#allocation5 + $0x70] sm:$0xff]  ;;  %477 = vst.msk [vmem:[#allocation2 + $0x50] sm:$0xff] %vm465_vm2, %v5360_v44  ;;  %vm551_vm4 = vcmask 269320  }
  0x15   : > { %s253_s11 = scalar_lea.vmem %s9525_s4, %s4539_s8  ;;  %v338_v27 = vld [vmem:[#allocation5 + $0x18] sm:$0xff]  ;;  %v339_v30 = vld [vmem:[#allocation5 + $0x20] sm:$0xff]  ;;  %v340_v31 = vld [vmem:[#allocation5 + $0x28] sm:$0xff]  ;;  %478 = vst.msk [vmem:[#allocation2 + $0x58] sm:$0xff] %vm465_vm2, %v5360_v44  ;;  %vm585_vm5 = vcmask 1047556   ;;  %s5363_s13 = smov 127  }
  0x16   : > { %v259_v2 = vld [vmem:[%s253_s11] sm:$0xff]  ;;  %v260_v3 = vld [vmem:[%s253_s11 + $0x8] sm:$0xff]  ;;  %v261_v4 = vld [vmem:[%s253_s11 + $0x10] sm:$0xff]  ;;  %466 = vst.msk [vmem:[#allocation2] sm:$0xff] %vm465_vm2, %v5360_v44  ;;  %s5364_s14 = smov 126   ;;  %s5365_s15 = smov 64  }
  0x17   : > { %4497 = vmatmul.msk.f32.vlgmr.msra.gmra.mxu0 %vm269_vm0, %v259_v2  ;;  %v262_v5 = vld [vmem:[%s253_s11 + $0x18] sm:$0xff]  ;;  %v263_v6 = vld [vmem:[%s253_s11 + $0x20] sm:$0xff]  ;;  %v264_v7 = vld [vmem:[%s253_s11 + $0x28] sm:$0xff]  ;;  %467 = vst.msk [vmem:[#allocation2 + $0x8] sm:$0xff] %vm465_vm2, %v5360_v44  ;;  %s5366_s16 = smov 96   ;;  %s5367_s17 = smov 32  }
  0x18   : > { %v265_v8 = vld [vmem:[%s253_s11 + $0x30] sm:$0xff]  ;;  %v266_v9 = vld [vmem:[%s253_s11 + $0x38] sm:$0xff]  ;;  %v346_v28 = vld [vmem:[#allocation5 + $0x58] sm:$0xff]  ;;  %468 = vst.msk [vmem:[#allocation2 + $0x10] sm:$0xff] %vm465_vm2, %v5360_v44  ;;  %vm905_vm6 = vcmask 261120   ;;  %vm908_vm7 = vcmask 785408   ;;  %s9508_s26 = scalar_lea.vmem %s9526_s5, %s4539_s8 }
  0x19   : > { %v350_v29 = vld [vmem:[#allocation5 + $0x78] sm:$0xff]  ;;  %v341_v32 = vld [vmem:[#allocation5 + $0x30] sm:$0xff]  ;;  %469 = vst.msk [vmem:[#allocation2 + $0x18] sm:$0xff] %vm465_vm2, %v5360_v44  ;;  %vm4147_vm8 = vcmask 1043456   ;;  %vm4187_vm9 = vcmask 293888  }
  0x1a   : > { %v342_v33 = vld [vmem:[#allocation5 + $0x38] sm:$0xff]  ;;  %472 = vst.msk [vmem:[#allocation2 + $0x28] sm:$0xff] %vm465_vm2, %v5360_v44 }
  0x1b   : > { %473 = vst.msk [vmem:[#allocation2 + $0x30] sm:$0xff] %vm465_vm2, %v5360_v44 }
  0x1c   : > { %474 = vst.msk [vmem:[#allocation2 + $0x38] sm:$0xff] %vm465_vm2, %v5360_v44 }
  0x1d   : > { %475 = vst.msk [vmem:[#allocation2 + $0x40] sm:$0xff] %vm465_vm2, %v5360_v44 }
  0x1e   : > { %479 = vst.msk [vmem:[#allocation2 + $0x60] sm:$0xff] %vm465_vm2, %v5360_v44 }
  0x1f   : > { %4498 = vmatmul.msk.f32.gmra.mxu0 %vm269_vm0, %v260_v3  ;;  %480 = vst.msk [vmem:[#allocation2 + $0x68] sm:$0xff] %vm465_vm2, %v5360_v44 }
  0x20   : > { %482 = vst.msk [vmem:[#allocation2 + $0x78] sm:$0xff] %vm465_vm2, %v5360_v44 }
  0x21   : > { %483 = vst.msk [vmem:[#allocation2 + $0x80] sm:$0xff] %vm465_vm2, %v5360_v44 }
  0x22   : > { %484 = vst.msk [vmem:[#allocation2 + $0x88] sm:$0xff] %vm465_vm2, %v5360_v44 }
  0x23   : > { %485 = vst.msk [vmem:[#allocation2 + $0x90] sm:$0xff] %vm465_vm2, %v5360_v44 }
  0x24   : > { %481 = vst.msk [vmem:[#allocation2 + $0x70] sm:$0x3] %vm470_vm3, %v5360_v44 }
  0x25   : > { %471 = vst.msk [vmem:[#allocation2 + $0x20] sm:$0x3] %vm470_vm3, %v5360_v44 }
  0x26   : > { %476 = vst.msk [vmem:[#allocation2 + $0x48] sm:$0x3] %vm470_vm3, %v5360_v44 }
  0x27   : > { %4499 = vmatmul.msk.f32.gmra.mxu0 %vm269_vm0, %v261_v4  ;;  %486 = vst.msk [vmem:[#allocation2 + $0x98] sm:$0x3] %vm470_vm3, %v5360_v44 }
  0x2f   : > { %4500 = vmatmul.msk.f32.gmra.mxu0 %vm269_vm0, %v262_v5  ;;  %v5361_v5 = vmov 1983009808  }
  0x37   : > { %4501 = vmatmul.msk.f32.gmra.mxu0 %vm269_vm0, %v263_v6  ;;  %v590_v6 = vunpack.c.l.s4 %v5361_v5 }
  0x3f   : > { %4502 = vmatmul.msk.f32.gmra.mxu0 %vm269_vm0, %v264_v7 }
  0x47   : > { %4503 = vmatmul.msk.f32.gmra.mxu0 %vm269_vm0, %v265_v8  ;;  %v5513_v8 = vunpack.c.0.s8 %v590_v6 }
  0x4f   : > { %4504 = vmatmul.msk.f32.gmra.mxu0 %vm269_vm0, %v266_v9 }
  0x94   : > { %v311_v10 = vpop.f32.mrf.mxu0 }
  0x9c   : > { %v314_v11 = vpop.f32.mrf.mxu0 }
  0xa4   : > { %v317_v12 = vpop.f32.mrf.mxu0 }
  0xac   : > { %v320_v13 = vpop.f32.mrf.mxu0 }
  0xb4   : > { %v323_v14 = vpop.f32.mrf.mxu0 }
  0xbc   : > { %v326_v15 = vpop.f32.mrf.mxu0 }
  0xc4   : > { %v329_v16 = vpop.f32.mrf.mxu0 }
  0xcc   : > { %v332_v17 = vpop.f32.mrf.mxu0 }
  0xcd   : > { %408 = vmatpush.msra.mxu1 %v332_v17  ;;  %4541 = vmatpush.msra.mxu2 %v332_v17 }
  0xce   : > { %4542 = vmatpush.msra.mxu3 %v332_v17 }
  0xcf   : > { %409 = vmatpush.msra.mxu1 %v329_v16  ;;  %4543 = vmatpush.msra.mxu2 %v329_v16 }
  0xd0   : > { %4544 = vmatpush.msra.mxu3 %v329_v16 }
  0xd1   : > { %410 = vmatpush.msra.mxu1 %v326_v15  ;;  %4545 = vmatpush.msra.mxu2 %v326_v15 }
  0xd2   : > { %4546 = vmatpush.msra.mxu3 %v326_v15 }
  0xd3   : > { %411 = vmatpush.msra.mxu1 %v323_v14  ;;  %4547 = vmatpush.msra.mxu2 %v323_v14 }
  0xd4   : > { %4548 = vmatpush.msra.mxu3 %v323_v14 }
  0xd5   : > { %412 = vmatpush.msra.mxu1 %v320_v13  ;;  %4549 = vmatpush.msra.mxu2 %v320_v13 }
  0xd6   : > { %4550 = vmatpush.msra.mxu3 %v320_v13 }
  0xd7   : > { %413 = vmatpush.msra.mxu1 %v317_v12  ;;  %4551 = vmatpush.msra.mxu2 %v317_v12 }
  0xd8   : > { %4552 = vmatpush.msra.mxu3 %v317_v12 }
  0xd9   : > { %414 = vmatpush.msra.mxu1 %v314_v11  ;;  %4553 = vmatpush.msra.mxu2 %v314_v11 }
  0xda   : > { %4554 = vmatpush.msra.mxu3 %v314_v11 }
  0xdb   : > { %415 = vmatpush.msra.mxu1 %v311_v10  ;;  %4555 = vmatpush.msra.mxu2 %v311_v10 }
  0xdc   : > { %4556 = vmatpush.msra.mxu3 %v311_v10  ;;  %4505 = vmatmul.msk.f32.vlgmr.msra.gmra.mxu1 %vm351_vm1, %v335_v18 }
  0xdd   : > { %4513 = vmatmul.msk.f32.vlgmr.msra.gmra.mxu2 %vm351_vm1, %v343_v19  ;;  %4517 = vmatmul.msk.f32.vlgmr.msra.gmra.mxu3 %vm351_vm1, %v347_v20 }
  0xe4   : > { %4506 = vmatmul.msk.f32.gmra.mxu1 %vm351_vm1, %v336_v21 }
  0xe5   : > { %4514 = vmatmul.msk.f32.gmra.mxu2 %vm351_vm1, %v344_v22  ;;  %4518 = vmatmul.msk.f32.gmra.mxu3 %vm351_vm1, %v348_v23 }
  0xec   : > { %4507 = vmatmul.msk.f32.gmra.mxu1 %vm351_vm1, %v337_v24  ;;  %v5362_v24 = vmov 1934713408  }
  0xed   : > { %4515 = vmatmul.msk.f32.gmra.mxu2 %vm351_vm1, %v345_v25  ;;  %4519 = vmatmul.msk.f32.gmra.mxu3 %vm351_vm1, %v349_v26  ;;  %v614_v25 = vunpack.c.l.s4 %v5362_v24 }
  0xf4   : > { %4508 = vmatmul.msk.f32.gmra.mxu1 %vm351_vm1, %v338_v27 }
  0xf5   : > { %4516 = vmatmul.msk.f32.gmra.mxu2 %vm351_vm1, %v346_v28  ;;  %4520 = vmatmul.msk.f32.gmra.mxu3 %vm351_vm1, %v350_v29 }
  0xfc   : > { %4509 = vmatmul.msk.f32.gmra.mxu1 %vm351_vm1, %v339_v30 }
 0x104   : > { %4510 = vmatmul.msk.f32.gmra.mxu1 %vm351_vm1, %v340_v31 }
 0x10c   : > { %4511 = vmatmul.msk.f32.gmra.mxu1 %vm351_vm1, %v341_v32 }
 0x114   : > { %4512 = vmatmul.msk.f32.gmra.mxu1 %vm351_vm1, %v342_v33  ;;  %v5551_v33 = vunpack.c.0.s8 %v614_v25 }
 0x116   : > { %9794 = vst [vmem:[#allocation9_spill] sm:$0xff] %v5551_v33 }
 0x159   : > { %v417_v34 = vpop.f32.mrf.mxu1 }
 0x15a   : > { %503 = vrot.lane.b32.xlu0 %v417_v34, %s5359_s12 }
 0x160   : > { %v441_v35 = vpop.f32.mrf.mxu2  ;;  %v453_v36 = vpop.f32.mrf.mxu3 }
 0x161   : > { %v420_v37 = vpop.f32.mrf.mxu1  ;;  %519 = vrot.lane.b32.xlu2 %v441_v35, %s5359_s12 }
 0x162   : > { %527 = vrot.lane.b32.xlu0 %v453_v36, %s5359_s12 }
 0x168   : > { %v444_v38 = vpop.f32.mrf.mxu2  ;;  %v456_v39 = vpop.f32.mrf.mxu3 }
 0x169   : > { %529 = vrot.lane.b32.xlu1 %v456_v39, %s5359_s12  ;;  %v423_v40 = vpop.f32.mrf.mxu1 }
 0x16a   : > { %505 = vrot.lane.b32.xlu0 %v420_v37, %s5359_s12 }
 0x170   : > { %v447_v41 = vpop.f32.mrf.mxu2  ;;  %v459_v42 = vpop.f32.mrf.mxu3 }
 0x171   : > { %531 = vrot.lane.b32.xlu2 %v459_v42, %s5359_s12  ;;  %507 = vrot.lane.b32.xlu1 %v423_v40, %s5359_s12  ;;  %v426_v43 = vpop.f32.mrf.mxu1 }
 0x172   : > { %521 = vrot.lane.b32.xlu0 %v444_v38, %s5359_s12 }
 0x178   : > { %v450_v45 = vpop.f32.mrf.mxu2  ;;  %v462_v46 = vpop.f32.mrf.mxu3 }
 0x179   : > { %525 = vrot.lane.b32.xlu2 %v450_v45, %s5359_s12  ;;  %523 = vrot.lane.b32.xlu1 %v447_v41, %s5359_s12  ;;  %v429_v47 = vpop.f32.mrf.mxu1 }
 0x17a   : > { %533 = vrot.lane.b32.xlu0 %v462_v46, %s5359_s12 }
 0x181   : > { %509 = vrot.lane.b32.xlu1 %v426_v43, %s5359_s12  ;;  %511 = vrot.lane.b32.xlu2 %v429_v47, %s5359_s12  ;;  %v432_v48 = vpop.f32.mrf.mxu1 }
 0x189   : > { %513 = vrot.lane.b32.xlu2 %v432_v48, %s5359_s12  ;;  %v435_v49 = vpop.f32.mrf.mxu1 }
 0x18a   : > { %515 = vrot.lane.b32.xlu0 %v435_v49, %s5359_s12 }
 0x191   : > { %v438_v50 = vpop.f32.mrf.mxu1 }
 0x192   : > { %517 = vrot.lane.b32.xlu1 %v438_v50, %s5359_s12 }
 0x1bb   : > { %v520_v51 = vpop.permute.xlu2 %519 }
 0x1bc   : > { %560 = vst.msk [vmem:[#allocation2 + $0x51] sm:$0xff] %vm551_vm4, %v520_v51 }
 0x1c3   : > { %v5493_v54 = vld [vmem:[#allocation2 + $0x50] sm:$0xff] }
 0x1c4   : > { %v584_v56 = vrot.slane %v5493_v54, 4  ;;  %v5501_v63 = vld [vmem:[#allocation2 + $0x51] sm:$0xff] }
 0x1c5   : > { %v1747_v7 = vrot.slane %v5501_v63, 4 }
 0x1cb   : > { %v532_v52 = vpop.permute.xlu2 %531 }
 0x1cc   : > { %566 = vst.msk [vmem:[#allocation2 + $0x89] sm:$0xff] %vm551_vm4, %v532_v52  ;;  %v504_v53 = vpop.permute.xlu0 %503 }
 0x1cd   : > { %552 = vst.msk [vmem:[#allocation2 + $0x1] sm:$0xff] %vm551_vm4, %v504_v53 }
 0x1d3   : > { %v526_v55 = vpop.permute.xlu2 %525 }
 0x1d4   : > { %563 = vst.msk [vmem:[#allocation2 + $0x69] sm:$0xff] %vm551_vm4, %v526_v55  ;;  %v528_v57 = vpop.permute.xlu0 %527  ;;  %v1731_v58 = vld [vmem:[#allocation2 + $0x1] sm:$0xff] }
 0x1d5   : > { %v568_v59 = vld [vmem:[#allocation2] sm:$0xff]  ;;  %564 = vst.msk [vmem:[#allocation2 + $0x79] sm:$0xff] %vm551_vm4, %v528_v57  ;;  %v1749_v60 = vrot.slane %v1731_v58, 4  ;;  %v1748_v9 = vsel %vm585_vm5, %v1747_v7, %v1731_v58 }
 0x1d6   : > { %v587_v61 = vrot.slane %v568_v59, 4  ;;  %v5499_v62 = vsel %vm585_vm5, %v584_v56, %v568_v59  ;;  %v5529_v19 = vperm.slane %v1748_v9, %v5513_v8 }
 0x1d7   : > { %v1750_v1 = vsel %vm585_vm5, %v5501_v63, %v1749_v60 }
 0x1d8   : > { %v5505_v0 = vsel %vm585_vm5, %v5493_v54, %v587_v61  ;;  %v5526_v18 = vperm.slane %v1750_v1, %v5513_v8  ;;  %v1773_v29 = vrot.slane %v5529_v19, 4 }
 0x1da   : > { %v1785_v30 = vrot.slane %v5526_v18, 4 }
 0x1db   : > { %v530_v2 = vpop.permute.xlu1 %529  ;;  %v512_v3 = vpop.permute.xlu2 %511 }
 0x1dc   : > { %565 = vst.msk [vmem:[#allocation2 + $0x81] sm:$0xff] %vm551_vm4, %v530_v2  ;;  %v506_v4 = vpop.permute.xlu0 %505  ;;  %v5516_v12 = vld [vmem:[#allocation2 + $0x79] sm:$0xff] }
 0x1dd   : > { %556 = vst.msk [vmem:[#allocation2 + $0x29] sm:$0xff] %vm551_vm4, %v512_v3  ;;  %v1759_v22 = vrot.slane %v5516_v12, 4  ;;  %v580_v50 = vld [vmem:[#allocation2 + $0x78] sm:$0xff] }
 0x1de   : > { %553 = vst.msk [vmem:[#allocation2 + $0x9] sm:$0xff] %vm551_vm4, %v506_v4 }
 0x1e3   : > { %v508_v10 = vpop.permute.xlu1 %507  ;;  %v514_v11 = vpop.permute.xlu2 %513  ;;  %v5611_v3 = vld [vmem:[#allocation2 + $0x80] sm:$0xff] }
 0x1e4   : > { %554 = vst.msk [vmem:[#allocation2 + $0x11] sm:$0xff] %vm551_vm4, %v508_v10  ;;  %v522_v13 = vpop.permute.xlu0 %521  ;;  %v5519_v14 = vld [vmem:[#allocation2 + $0x29] sm:$0xff] }
 0x1e5   : > { %557 = vst.msk [vmem:[#allocation2 + $0x31] sm:$0xff] %vm551_vm4, %v514_v11  ;;  %v5522_v15 = vld [vmem:[#allocation2 + $0x9] sm:$0xff]  ;;  %v1761_v17 = vrot.slane %v5519_v14, 4  ;;  %v1760_v26 = vsel %vm585_vm5, %v1759_v22, %v5519_v14  ;;  %v596_v11 = vperm.slane %v5505_v0, %v5513_v8 }
 0x1e6   : > { %v569_v16 = vld [vmem:[#allocation2 + $0x8] sm:$0xff]  ;;  %561 = vst.msk [vmem:[#allocation2 + $0x59] sm:$0xff] %vm551_vm4, %v522_v13  ;;  %v4608_v20 = vpack.i.bf16 %v5522_v15, %v1731_v58  ;;  %v5542_v27 = vperm.slane %v1760_v26, %v5513_v8  ;;  %v1805_v48 = vrot.slane %v5522_v15, 4 }
 0x1e7   : > { %v4603_v21 = vpack.i.bf16 %v569_v16, %v568_v59  ;;  %v1762_v23 = vsel %vm585_vm5, %v5516_v12, %v1761_v17  ;;  %v5549_v31 = vld [vmem:[#allocation2 + $0x2] sm:$0xff]  ;;  %v643_v36 = vrot.slane %v569_v16, 4  ;;  %v597_v59 = vrot.slane %v580_v50, 4 }
 0x1e8   : > { %4609 = vrot.lane.b32.xlu2 %v4608_v20, %s5363_s13  ;;  %v5545_v28 = vperm.slane %v1762_v23, %v5513_v8  ;;  %v1774_v34 = vsel %vm585_vm5, %v5542_v27, %v1773_v29  ;;  %v2909_v40 = vrot.slane %v5549_v31, 4  ;;  %v5562_v41 = vld [vmem:[#allocation2 + $0x28] sm:$0xff]  ;;  %v592_v17 = vperm.slane %v5499_v62, %v5513_v8 }
 0x1e9   : > { %4604 = vrot.lane.b32.xlu0 %v4603_v21, %s5364_s14  ;;  %4599 = vrot.lane.b32.xlu1 %v4603_v21, %s5363_s13  ;;  %v599_v55 = vrot.slane %v5562_v41, 4  ;;  %v5598_v56 = vperm.slane %v1774_v34, %v5551_v33  ;;  %v5605_v58 = vld [vmem:[#allocation2 + $0x81] sm:$0xff]  ;;  %v598_v9 = vsel %vm585_vm5, %v597_v59, %v5562_v41  ;;  %v4633_v21 = vpack.i.bf16 %v5611_v3, %v580_v50 }
 0x1ea   : > { %v1786_v35 = vsel %vm585_vm5, %v5545_v28, %v1785_v30  ;;  %v604_v62 = vperm.slane %v598_v9, %v5513_v8  ;;  %v611_v25 = vrot.slane %v592_v17, 4  ;;  %v623_v26 = vrot.slane %v596_v11, 4 }
 0x1eb   : > { %v524_v32 = vpop.permute.xlu1 %523  ;;  %v5565_v42 = vperm.slane %v1786_v35, %v5551_v33  ;;  %v5581_v51 = vld [vmem:[#allocation2 + $0xa] sm:$0xff]  ;;  %v600_v10 = vsel %vm585_vm5, %v580_v50, %v599_v55  ;;  %v2903_v50 = vld [vmem:[#allocation2 + $0x7a] sm:$0xff]  ;;  %v1815_v59 = vrot.slane %v5605_v58, 4 }
 0x1ec   : > { %562 = vst.msk [vmem:[#allocation2 + $0x61] sm:$0xff] %vm551_vm4, %v524_v32  ;;  %v534_v37 = vpop.permute.xlu0 %533  ;;  %v5583_v52 = vld [vmem:[#allocation2 + $0x11] sm:$0xff]  ;;  %v2965_v60 = vrot.slane %v5581_v51, 4  ;;  %v612_v29 = vsel %vm585_vm5, %v604_v62, %v611_v25 }
 0x1ed   : > { %567 = vst.msk [vmem:[#allocation2 + $0x91] sm:$0xff] %vm551_vm4, %v534_v37  ;;  %v577_v38 = vld [vmem:[#allocation2 + $0x58] sm:$0xff]  ;;  %v1861_v61 = vrot.slane %v5583_v52, 4  ;;  %v5640_v23 = vld [vmem:[#allocation2 + $0x10] sm:$0xff]  ;;  %v1801_v35 = vrot.slane %v5565_v42, 4 }
 0x1ee   : > { %v5559_v39 = vld [vmem:[#allocation2 + $0x52] sm:$0xff]  ;;  %v5568_v43 = vpack.i.bf16 %v577_v38, %v5493_v54  ;;  %v641_v44 = vrot.slane %v577_v38, 4  ;;  %v5571_v45 = vsel %vm585_vm5, %v577_v38, %v643_v36  ;;  %v1797_v38 = vrot.slane %v5598_v56, 4  ;;  %v5694_v9 = vld [vmem:[#allocation2 + $0x2a] sm:$0xff] }
 0x1ef   : > { %v2907_v46 = vrot.slane %v5559_v39, 4  ;;  %v5574_v47 = vld [vmem:[#allocation2 + $0x59] sm:$0xff]  ;;  %v5579_v49 = vsel %vm585_vm5, %v5559_v39, %v2909_v40 }
 0x1f0   : > { %v5586_v53 = vsel %vm585_vm5, %v641_v44, %v569_v16  ;;  %4619 = vrot.lane.b32.xlu2 %v5568_v43, %s5363_s13  ;;  %v5603_v57 = vsel %vm585_vm5, %v5574_v47, %v1805_v48  ;;  %v4648_v37 = vpack.i.bf16 %v5574_v47, %v5501_v63  ;;  %v1803_v40 = vrot.slane %v5574_v47, 4  ;;  %v5668_v44 = vld [vmem:[#allocation2 + $0x69] sm:$0xff]  ;;  %v5682_v47 = vld [vmem:[#allocation2 + $0x31] sm:$0xff] }
 0x1f1   : > { %v5592_v54 = vsel %vm585_vm5, %v2907_v46, %v5549_v31  ;;  %3659 = vrot.lane.b32.xlu0 %v5549_v31, %s5364_s14  ;;  %4614 = vrot.lane.b32.xlu1 %v4608_v20, %s5364_s14  ;;  %v4643_v20 = vpack.i.bf16 %v5605_v58, %v5516_v12  ;;  %v608_v12 = vperm.slane %v600_v10, %v5513_v8  ;;  %v5671_v46 = vsel %vm585_vm5, 0.0, %v1801_v35 }
 0x1f2   : > { %v5674_v48 = vperm.slane %v612_v29, %v5551_v33  ;;  %v5685_v55 = vsel %vm585_vm5, 0.0, %v1797_v38  ;;  %v5701_v25 = vperm.slane %v5592_v54, %v5513_v8  ;;  %v2919_v29 = vrot.slane %v2903_v50, 4 }
 0x1f3   : > { %v510_v2 = vpop.permute.xlu1 %509  ;;  %v5613_v4 = vld [vmem:[#allocation2 + $0x5a] sm:$0xff]  ;;  %v624_v30 = vsel %vm585_vm5, %v608_v12, %v623_v26  ;;  %v5705_v26 = vperm.slane %v5603_v57, %v5513_v8  ;;  %v1816_v57 = vsel %vm585_vm5, %v1815_v59, %v5682_v47  ;;  %v2921_v35 = vrot.slane %v5694_v9, 4 }
 0x1f4   : > { %v5615_v5 = vld [vmem:[#allocation2 + $0x60] sm:$0xff]  ;;  %555 = vst.msk [vmem:[#allocation2 + $0x19] sm:$0xff] %vm551_vm4, %v510_v2  ;;  %v2963_v6 = vrot.slane %v5613_v4, 4  ;;  %v5621_v7 = vsel %vm585_vm5, %v5613_v4, %v2965_v60  ;;  %v609_v2 = vrot.slane %v604_v62, 4  ;;  %v635_v10 = vrot.slane %v5674_v48, 4 }
 0x1f5   : > { %v697_v13 = vrot.slane %v5615_v5, 4  ;;  %v5629_v16 = vld [vmem:[#allocation2 + $0x61] sm:$0xff]  ;;  %9795 = vst [vmem:[#allocation10_spill] sm:$0xff] %v5674_v48  ;;  %v4658_v62 = vpack.i.bf16 %v5559_v39, %v2903_v50  ;;  %v2918_v38 = vperm.slane %v5579_v49, %v5513_v8 }
 0x1f6   : > { %v5638_v22 = vsel %vm585_vm5, %v2963_v6, %v5581_v51  ;;  %v5644_v0 = vsel %vm585_vm5, %v5629_v16, %v1861_v61  ;;  %v5691_v61 = vperm.slane %v624_v30, %v5551_v33  ;;  %v1817_v6 = vrot.slane %v5682_v47, 4 }
 0x1f7   : > { %v5648_v24 = vsel %vm585_vm5, %v697_v13, %v5640_v23  ;;  %v621_v13 = vrot.slane %v608_v12, 4  ;;  %v4663_v30 = vpack.i.bf16 %v5613_v4, %v5581_v51 }
 0x1f8   : > { %4644 = vrot.lane.b32.xlu2 %v4643_v20, %s5363_s13  ;;  %9796 = vst [vmem:[#allocation11_spill] sm:$0xff] %v5691_v61  ;;  %v639_v12 = vrot.slane %v5691_v61, 4 }
 0x1f9   : > { %4634 = vrot.lane.b32.xlu0 %v4633_v21, %s5364_s14  ;;  %4624 = vrot.lane.b32.xlu1 %v4633_v21, %s5363_s13  ;;  %v1804_v21 = vsel %vm585_vm5, %v1803_v40, %v5522_v15  ;;  %v5713_v15 = vsel %vm585_vm5, %v609_v2, %v592_v17  ;;  %v5716_v54 = vsel %vm585_vm5, %v621_v13, %v596_v11  ;;  %v2933_v40 = vrot.slane %v5701_v25, 4 }
 0x1fa   : > { %v5729_v17 = vsel %vm585_vm5, 0.0, %v639_v12  ;;  %v5732_v11 = vperm.slane %v1804_v21, %v5513_v8  ;;  %v5743_v2 = vperm.slane %v1816_v57, %v5513_v8  ;;  %v2922_v13 = vsel %vm585_vm5, %v2903_v50, %v2921_v35 }
 0x1fb   : > { %v5657_v34 = vld [vmem:[#allocation2 + $0x19] sm:$0xff]  ;;  %v5768_v12 = vperm.slane %v5571_v45, %v5513_v8  ;;  %v2945_v35 = vrot.slane %v2918_v38, 4  ;;  %v1771_v45 = vrot.slane %v5542_v27, 4 }
 0x1fc   : > { %v516_v32 = vpop.permute.xlu0 %515  ;;  %v1917_v36 = vrot.slane %v5657_v34, 4  ;;  %v5753_v49 = vpack.i.bf16 %v5657_v34, %v5583_v52 }
 0x1fd   : > { %558 = vst.msk [vmem:[#allocation2 + $0x39] sm:$0xff] %vm551_vm4, %v516_v32  ;;  %v2920_v32 = vsel %vm585_vm5, %v2919_v29, %v5694_v9  ;;  %v653_v29 = vrot.slane %v5611_v3, 4 }
 0x1fe   : > { %v5680_v63 = vsel %vm585_vm5, %v5668_v44, %v1917_v36  ;;  %v5726_v36 = vsel %vm585_vm5, 0.0, %v635_v10  ;;  %v1829_v10 = vrot.slane %v5732_v11, 4 }
 0x200   : > { %4649 = vrot.lane.b32.xlu2 %v4648_v37, %s5364_s14  ;;  %v1830_v21 = vsel %vm585_vm5, %v5743_v2, %v1829_v10 }
 0x201   : > { %4639 = vrot.lane.b32.xlu0 %v4648_v37, %s5363_s13  ;;  %4629 = vrot.lane.b32.xlu1 %v5568_v43, %s5364_s14  ;;  %v1818_v37 = vsel %vm585_vm5, %v5605_v58, %v1817_v6  ;;  %v1841_v58 = vrot.slane %v5705_v26, 4  ;;  %v2926_v6 = vperm.slane %v2920_v32, %v5513_v8 }
 0x203   : > { %v2934_v32 = vsel %vm585_vm5, %v2926_v6, %v2933_v40  ;;  %v2931_v27 = vrot.slane %v2926_v6, 4 }
 0x204   : > { %v518_v43 = vpop.permute.xlu1 %517  ;;  %v5786_v40 = vperm.slane %v2934_v32, %v5551_v33  ;;  %v679_v32 = vrot.slane %v5768_v12, 4 }
 0x205   : > { %559 = vst.msk [vmem:[#allocation2 + $0x41] sm:$0xff] %vm551_vm4, %v518_v43  ;;  %v5746_v43 = vperm.slane %v1818_v37, %v5513_v8 }
 0x208   : > { %4659 = vrot.lane.b32.xlu2 %v4658_v62, %s5363_s13  ;;  %v1842_v62 = vsel %vm585_vm5, %v5746_v43, %v1841_v58  ;;  %v2930_v58 = vperm.slane %v2922_v13, %v5513_v8 }
 0x209   : > { %4664 = vrot.lane.b32.xlu0 %v4663_v30, %s5363_s13  ;;  %4654 = vrot.lane.b32.xlu1 %v4643_v20, %s5364_s14  ;;  %v5755_v20 = vld [vmem:[#allocation2 + $0x30] sm:$0xff]  ;;  %v5764_v30 = vperm.slane %v1830_v21, %v5551_v33  ;;  %v5771_v57 = vperm.slane %v1842_v62, %v5551_v33  ;;  %v1783_v62 = vrot.slane %v5545_v28, 4 }
 0x20a   : > { %v654_v37 = vsel %vm585_vm5, %v653_v29, %v5755_v20  ;;  %v655_v10 = vrot.slane %v5755_v20, 4  ;;  %v2946_v13 = vsel %vm585_vm5, %v2930_v58, %v2945_v35  ;;  %v5793_v29 = vld [vmem:[#allocation2 + $0x68] sm:$0xff]  ;;  %v2943_v21 = vrot.slane %v2930_v58, 4 }
 0x20b   : > { %9797 = vst [vmem:[#allocation12_spill] sm:$0xff] %v5793_v29  ;;  %v660_v59 = vperm.slane %v654_v37, %v5513_v8  ;;  %v5797_v60 = vperm.slane %v2946_v13, %v5551_v33  ;;  %v1853_v35 = vrot.slane %v5764_v30, 4  ;;  %v5811_v13 = vsel %vm585_vm5, %v1771_v45, %v5529_v19  ;;  %v5834_v37 = vld [vmem:[#allocation2 + $0x82] sm:$0xff] }
 0x20c   : > { %v656_v28 = vsel %vm585_vm5, %v5611_v3, %v655_v10  ;;  %9798 = vst [vmem:[#allocation13_spill] sm:$0xff] %v5811_v13  ;;  %v5828_v19 = vsel %vm585_vm5, %v1783_v62, %v5526_v18  ;;  %v5832_v45 = vsel %vm585_vm5, %v2931_v27, %v5701_v25  ;;  %v5848_v25 = vsel %vm585_vm5, %v2943_v21, %v2918_v38  ;;  %v5853_v62 = vld [vmem:[#allocation2 + $0x39] sm:$0xff] }
 0x20d   : > { %v664_v6 = vperm.slane %v656_v28, %v5513_v8  ;;  %v5818_v3 = vsel %vm585_vm5, 0.0, %v1853_v35  ;;  %9801 = vst [vmem:[#allocation16_spill] sm:$0xff] %v5828_v19  ;;  %v1859_v38 = vrot.slane %v5629_v16, 4  ;;  %v2975_v48 = vrot.slane %v5834_v37, 4 }
 0x20e   : > { %9799 = vst [vmem:[#allocation14_spill] sm:$0xff] %v5818_v3  ;;  %v5858_v3 = vld [vmem:[#allocation2 + $0x88] sm:$0xff]  ;;  %v2961_v19 = vrot.slane %v5797_v60, 4 }
 0x20f   : > { %v680_v58 = vsel %vm585_vm5, %v664_v6, %v679_v32  ;;  %9802 = vst [vmem:[#allocation17_spill] sm:$0xff] %v5832_v45  ;;  %v1745_v32 = vld [vmem:[#allocation2 + $0x89] sm:$0xff]  ;;  %v677_v13 = vrot.slane %v664_v6, 4  ;;  %v699_v45 = vrot.slane %v5640_v23, 4 }
 0x210   : > { %3675 = vrot.lane.b32.xlu2 %v5559_v39, %s5364_s14  ;;  %v1857_v39 = vrot.slane %v5771_v57, 4  ;;  %9805 = vst [vmem:[#allocation20_spill] sm:$0xff] %v5848_v25  ;;  %v1871_v28 = vrot.slane %v1745_v32, 4  ;;  %v1873_v25 = vrot.slane %v5853_v62, 4 }
 0x211   : > { %4679 = vrot.lane.b32.xlu0 %v5753_v49, %s5363_s13  ;;  %3683 = vrot.lane.b32.xlu1 %v2903_v50, %s5364_s14  ;;  %v648_v50 = vperm.slane %v5586_v53, %v5513_v8  ;;  %v5815_v53 = vpack.i.bf16 %v5793_v29, %v5615_v5  ;;  %9806 = vst [vmem:[#allocation21_spill] sm:$0xff] %v5853_v62  ;;  %v5862_v29 = vld [vmem:[#allocation2 + $0x18] sm:$0xff] }
 0x212   : > { %v5821_v10 = vsel %vm585_vm5, 0.0, %v1857_v39  ;;  %v5838_v39 = vperm.slane %v680_v58, %v5551_v33  ;;  %v5856_v58 = vld [vmem:[#allocation2 + $0x91] sm:$0xff]  ;;  %9807 = vst [vmem:[#allocation22_spill] sm:$0xff] %v5862_v29  ;;  %v5886_v6 = vsel %vm585_vm5, %v677_v13, %v5768_v12  ;;  %v1827_v12 = vrot.slane %v5743_v2, 4 }
 0x213   : > { %v667_v1 = vrot.slane %v648_v50, 4  ;;  %9800 = vst [vmem:[#allocation15_spill] sm:$0xff] %v5821_v10  ;;  %v665_v10 = vrot.slane %v660_v59, 4  ;;  %v2957_v13 = vrot.slane %v5786_v40, 4  ;;  %v2970_v2 = vperm.slane %v5638_v22, %v5513_v8 }
 0x214   : > { %9803 = vst [vmem:[#allocation18_spill] sm:$0xff] %v5838_v39 }
 0x215   : > { %v668_v35 = vsel %vm585_vm5, %v660_v59, %v667_v1  ;;  %v695_v1 = vrot.slane %v5838_v39, 4  ;;  %v5875_v59 = vsel %vm585_vm5, %v665_v10, %v648_v50  ;;  %v4673_v50 = vpack.i.bf16 %v5862_v29, %v5640_v23 }
 0x216   : > { %v5845_v18 = vperm.slane %v668_v35, %v5551_v33  ;;  %v5860_v35 = vld [vmem:[#allocation2 + $0x32] sm:$0xff]  ;;  %v5894_v10 = vperm.slane %v5644_v0, %v5513_v8  ;;  %v1874_v23 = vsel %vm585_vm5, %v1745_v32, %v1873_v25  ;;  %v1839_v0 = vrot.slane %v5746_v43, 4 }
 0x217   : > { %v5869_v21 = vsel %vm585_vm5, 0.0, %v695_v1  ;;  %v709_v1 = vrot.slane %v5858_v3, 4  ;;  %v2977_v61 = vrot.slane %v5860_v35, 4  ;;  %v1872_v39 = vsel %vm585_vm5, %v1871_v28, %v5853_v62 }
 0x218   : > { %3685 = vrot.lane.b32.xlu2 %v5834_v37, %s5364_s14  ;;  %9804 = vst [vmem:[#allocation19_spill] sm:$0xff] %v5845_v18  ;;  %v691_v27 = vrot.slane %v5845_v18, 4  ;;  %v1860_v18 = vsel %vm585_vm5, %v1859_v38, %v5583_v52  ;;  %v5917_v29 = vperm.slane %v5621_v7, %v5513_v8  ;;  %v5920_v52 = vsel %vm585_vm5, 0.0, %v2957_v13 }
 0x219   : > { %4689 = vrot.lane.b32.xlu0 %v5815_v53, %s5363_s13  ;;  %3661 = vrot.lane.b32.xlu1 %v5581_v51, %s5364_s14  ;;  %9808 = vst [vmem:[#allocation23_spill] sm:$0xff] %v5920_v52  ;;  %v2978_v43 = vsel %vm585_vm5, %v5834_v37, %v2977_v61  ;;  %v5932_v22 = vperm.slane %v1872_v39, %v5513_v8 }
 0x21a   : > { %v5866_v51 = vsel %vm585_vm5, 0.0, %v691_v27  ;;  %v5881_v27 = vpack.i.bf16 %v5856_v58, %v1745_v32  ;;  %v5923_v32 = vsel %vm585_vm5, 0.0, %v2961_v19  ;;  %v2976_v25 = vsel %vm585_vm5, %v2975_v48, %v5860_v35 }
 0x21b   : > { %9809 = vst [vmem:[#allocation24_spill] sm:$0xff] %v5923_v32  ;;  %v5938_v38 = vperm.slane %v1874_v23, %v5513_v8  ;;  %v1897_v19 = vrot.slane %v5894_v10, 4  ;;  %v5943_v61 = vsel %vm585_vm5, %v1827_v12, %v5732_v11  ;;  %v5947_v13 = vpack.i.bf16 %v5668_v44, %v5629_v16 }
 0x21c   : > { %v5953_v28 = vsel %vm585_vm5, %v1839_v0, %v5705_v26  ;;  %v2986_v48 = vperm.slane %v2978_v43, %v5513_v8  ;;  %v5964_v16 = vperm.slane %v5648_v24, %v5513_v8  ;;  %v2982_v26 = vperm.slane %v2976_v25, %v5513_v8  ;;  %v5973_v0 = vld [vmem:[#allocation2 + $0x12] sm:$0xff] }
 0x21d   : > { %v1898_v11 = vsel %vm585_vm5, %v5938_v38, %v1897_v19  ;;  %v3001_v19 = vrot.slane %v5917_v29, 4  ;;  %v700_v24 = vsel %vm585_vm5, %v5615_v5, %v699_v45 }
 0x21e   : > { %9811 = vst [vmem:[#allocation26_spill] sm:$0xff] %v5964_v16  ;;  %v5967_v12 = vperm.slane %v1898_v11, %v5551_v33  ;;  %v2987_v25 = vrot.slane %v2982_v26, 4  ;;  %v2999_v62 = vrot.slane %v2986_v48, 4 }
 0x220   : > { %3677 = vrot.lane.b32.xlu2 %v5613_v4, %s5364_s14  ;;  %v5909_v4 = vperm.slane %v1860_v18, %v5513_v8  ;;  %v5927_v18 = vld [vmem:[#allocation2 + $0x38] sm:$0xff] }
 0x221   : > { %4714 = vrot.lane.b32.xlu0 %v5881_v27, %s5363_s13  ;;  %4674 = vrot.lane.b32.xlu1 %v4673_v50, %s5364_s14  ;;  %9810 = vst [vmem:[#allocation25_spill] sm:$0xff] %v5927_v18  ;;  %v711_v23 = vrot.slane %v5927_v18, 4  ;;  %v710_v43 = vsel %vm585_vm5, %v709_v1, %v5927_v18  ;;  %v3002_v1 = vsel %vm585_vm5, %v2986_v48, %v3001_v19  ;;  %v6000_v18 = vld [vmem:[#allocation2 + $0x62] sm:$0xff] }
 0x222   : > { %v1885_v7 = vrot.slane %v5909_v4, 4  ;;  %v5995_v45 = vperm.slane %v3002_v1, %v5551_v33  ;;  %v6008_v48 = vsel %vm585_vm5, %v2987_v25, %v2970_v2  ;;  %v1883_v1 = vrot.slane %v5932_v22, 4  ;;  %v6022_v25 = vld [vmem:[#allocation2 + $0x41] sm:$0xff] }
 0x223   : > { %v712_v32 = vsel %vm585_vm5, %v5858_v3, %v711_v23  ;;  %v4728_v23 = vpack.i.bf16 %v6000_v18, %v5973_v0 }
 0x224   : > { %v1886_v39 = vsel %vm585_vm5, %v5932_v22, %v1885_v7  ;;  %v2989_v7 = vrot.slane %v2970_v2, 4  ;;  %v6039_v22 = vld [vmem:[#allocation2 + $0x1a] sm:$0xff] }
 0x225   : > { %v5958_v52 = vperm.slane %v1886_v39, %v5551_v33  ;;  %v5985_v39 = vperm.slane %v700_v24, %v5513_v8  ;;  %v6003_v24 = vperm.slane %v712_v32, %v5513_v8  ;;  %v1915_v32 = vrot.slane %v5668_v44, 4 }
 0x226   : > { %v2990_v11 = vsel %vm585_vm5, %v2982_v26, %v2989_v7  ;;  %v723_v26 = vrot.slane %v5964_v16, 4 }
 0x227   : > { %9812 = vst [vmem:[#allocation27_spill] sm:$0xff] %v5985_v39  ;;  %v5992_v5 = vperm.slane %v2990_v11, %v5551_v33  ;;  %v735_v7 = vrot.slane %v5985_v39, 4  ;;  %v3017_v11 = vrot.slane %v5995_v45, 4 }
 0x228   : > { %4669 = vrot.lane.b32.xlu2 %v4673_v50, %s5363_s13  ;;  %v5998_v50 = vperm.slane %v710_v43, %v5513_v8 }
 0x229   : > { %4719 = vrot.lane.b32.xlu0 %v5947_v13, %s5364_s14  ;;  %3663 = vrot.lane.b32.xlu1 %v5973_v0, %s5364_s14  ;;  %9813 = vst [vmem:[#allocation28_spill] sm:$0xff] %v5992_v5  ;;  %v3013_v43 = vrot.slane %v5992_v5, 4  ;;  %v736_v2 = vsel %vm585_vm5, %v6003_v24, %v735_v7  ;;  %v6034_v44 = vsel %vm585_vm5, 0.0, %v3017_v11  ;;  %v6046_v7 = vsel %vm585_vm5, %v2999_v62, %v5917_v29 }
 0x22a   : > { %v724_v16 = vsel %vm585_vm5, %v5998_v50, %v723_v26  ;;  %v6028_v19 = vperm.slane %v736_v2, %v5551_v33  ;;  %9817 = vst [vmem:[#allocation32_spill] sm:$0xff] %v6034_v44  ;;  %v1895_v26 = vrot.slane %v5938_v38, 4  ;;  %v1927_v11 = vrot.slane %v5856_v58, 4 }
 0x22b   : > { %v6025_v39 = vperm.slane %v724_v16, %v5551_v33  ;;  %v6031_v5 = vsel %vm585_vm5, 0.0, %v3013_v43  ;;  %v1909_v43 = vrot.slane %v5958_v52, 4  ;;  %v1929_v2 = vrot.slane %v6022_v25, 4 }
 0x22c   : > { %9815 = vst [vmem:[#allocation30_spill] sm:$0xff] %v6028_v19  ;;  %v751_v38 = vrot.slane %v6028_v19, 4  ;;  %v1913_v29 = vrot.slane %v5967_v12, 4  ;;  %v6063_v62 = vsel %vm585_vm5, %v1883_v1, %v5909_v4  ;;  %v6084_v4 = vsel %vm585_vm5, %v1895_v26, %v5894_v10  ;;  %v6088_v1 = vld [vmem:[#allocation2 + $0x6a] sm:$0xff] }
 0x22d   : > { %9814 = vst [vmem:[#allocation29_spill] sm:$0xff] %v6025_v39  ;;  %v6058_v16 = vsel %vm585_vm5, 0.0, %v1909_v43 }
 0x22e   : > { %9816 = vst [vmem:[#allocation31_spill] sm:$0xff] %v6031_v5  ;;  %v6067_v5 = vperm.slane %v5680_v63, %v5513_v8  ;;  %v6080_v19 = vsel %vm585_vm5, 0.0, %v1913_v29  ;;  %v1916_v63 = vsel %vm585_vm5, %v1915_v32, %v5657_v34  ;;  %v4733_v29 = vpack.i.bf16 %v6088_v1, %v6039_v22 }
 0x22f   : > { %9818 = vst [vmem:[#allocation33_spill] sm:$0xff] %v6058_v16  ;;  %v6099_v10 = vperm.slane %v1916_v63, %v5513_v8  ;;  %v1930_v34 = vsel %vm585_vm5, %v5856_v58, %v1929_v2 }
 0x230   : > { %4684 = vrot.lane.b32.xlu2 %v5753_v49, %s5364_s14  ;;  %v6069_v49 = vld [vmem:[#allocation2 + $0x90] sm:$0xff]  ;;  %9819 = vst [vmem:[#allocation34_spill] sm:$0xff] %v6080_v19  ;;  %v6104_v32 = vperm.slane %v1930_v34, %v5513_v8  ;;  %v1953_v26 = vrot.slane %v6067_v5, 4 }
 0x231   : > { %4729 = vrot.lane.b32.xlu0 %v4728_v23, %s5363_s13  ;;  %3665 = vrot.lane.b32.xlu1 %v6039_v22, %s5364_s14  ;;  %v747_v23 = vrot.slane %v6025_v39, 4  ;;  %v6075_v39 = vsel %vm585_vm5, 0.0, %v751_v38  ;;  %v4693_v43 = vpack.i.bf16 %v6069_v49, %v5858_v3 }
 0x232   : > { %v1954_v63 = vsel %vm585_vm5, %v6104_v32, %v1953_v26 }
 0x233   : > { %v6072_v44 = vsel %vm585_vm5, 0.0, %v747_v23  ;;  %v1928_v23 = vsel %vm585_vm5, %v1927_v11, %v6022_v25  ;;  %v1941_v11 = vrot.slane %v6099_v10, 4  ;;  %v6119_v2 = vperm.slane %v1954_v63, %v5551_v33 }
 0x234   : > { %v6110_v3 = vperm.slane %v1928_v23, %v5513_v8  ;;  %v9835_v23 = vld [vmem:[#allocation10_spill] sm:$0xff] }
 0x235   : > { %9820 = vst [vmem:[#allocation35_spill] sm:$0xff] %v6119_v2  ;;  %v1969_v26 = vrot.slane %v6119_v2, 4  ;;  %v9851_v2 = vld [vmem:[#allocation14_spill] sm:$0xff] }
 0x236   : > { %v1942_v58 = vsel %vm585_vm5, %v6110_v3, %v1941_v11 }
 0x237   : > { %v6122_v34 = vperm.slane %v1942_v58, %v5551_v33 }
 0x238   : > { %4694 = vrot.lane.b32.xlu2 %v4693_v43, %s5363_s13 }
 0x239   : > { %4734 = vrot.lane.b32.xlu0 %v4733_v29, %s5363_s13  ;;  %4704 = vrot.lane.b32.xlu1 %v4693_v43, %s5364_s14  ;;  %9821 = vst [vmem:[#allocation36_spill] sm:$0xff] %v6122_v34  ;;  %v6128_v29 = vpack.i.bf16 %v5755_v20, %v5562_v41  ;;  %v1965_v43 = vrot.slane %v6122_v34, 4  ;;  %v6144_v41 = vsel %vm585_vm5, 0.0, %v1969_v26 }
 0x23a   : > { %9823 = vst [vmem:[#allocation38_spill] sm:$0xff] %v6144_v41 }
 0x23b   : > { %v6141_v63 = vsel %vm585_vm5, 0.0, %v1965_v43  ;;  %v6159_v43 = vld [vmem:[#allocation2 + $0x8a] sm:$0xff] }
 0x23c   : > { %9822 = vst [vmem:[#allocation37_spill] sm:$0xff] %v6141_v63 }
 0x240   : > { %4699 = vrot.lane.b32.xlu2 %v5815_v53, %s5364_s14  ;;  %v4758_v53 = vpack.i.bf16 %v5682_v47, %v5519_v14  ;;  %v6176_v47 = vperm.slane %v5713_v15, %v5551_v33 }
 0x241   : > { %4744 = vrot.lane.b32.xlu0 %v6128_v29, %s5363_s13  ;;  %4709 = vrot.lane.b32.xlu1 %v5947_v13, %s5363_s13  ;;  %v9824_v13 = vpack.i.bf16 %v5565_v42, %v5598_v56  ;;  %v6170_v42 = vperm.slane %v5716_v54, %v5551_v33  ;;  %v4768_v56 = vpack.i.bf16 %v5549_v31, %v5694_v9 }
 0x242   : > { %v6138_v11 = vpop.permute.xlu2 %4609  ;;  %9826 = vst [vmem:[#allocation40_spill] sm:$0xff] %v6176_v47  ;;  %v9827_v54 = vpack.i.bf16 %v5671_v46, %v5685_v55  ;;  %v9828_v46 = vpack.i.bf16 %v5729_v17, %v5726_v36  ;;  %v9832_v36 = vpack.i.bf16 %v5797_v60, %v5786_v40  ;;  %v9838_v40 = vld [vmem:[#allocation16_spill] sm:$0xff] }
 0x243   : > { %9825 = vst [vmem:[#allocation39_spill] sm:$0xff] %v6170_v42 }
 0x248   : > { %4724 = vrot.lane.b32.xlu2 %v5881_v27, %s5364_s14  ;;  %v637_v27 = vrot.slane %v6170_v42, 4 }
 0x249   : > { %4754 = vrot.lane.b32.xlu0 %v9824_v13, %s5365_s15  ;;  %4759 = vrot.lane.b32.xlu1 %v4758_v53, %s5363_s13 }
 0x24a   : > { %v6157_v58 = vpop.permute.xlu2 %4619 }
 0x250   : > { %3687 = vrot.lane.b32.xlu2 %v6159_v43, %s5364_s14 }
 0x251   : > { %4764 = vrot.lane.b32.xlu0 %v4758_v53, %s5364_s14  ;;  %3667 = vrot.lane.b32.xlu1 %v5694_v9, %s5364_s14  ;;  %v633_v9 = vrot.slane %v6176_v47, 4  ;;  %v638_v53 = vsel %vm585_vm5, 0.0, %v637_v27  ;;  %v3019_v47 = vrot.slane %v6000_v18, 4 }
 0x252   : > { %v6166_v14 = vpop.permute.xlu2 %4644 }
 0x253   : > { %v634_v13 = vsel %vm585_vm5, 0.0, %v633_v9  ;;  %v9831_v9 = vpack.i.bf16 %v5771_v57, %v5764_v30 }
 0x254   : > { %v4783_v20 = vpack.i.bf16 %v638_v53, %v634_v13  ;;  %v4808_v13 = vpack.i.bf16 %v5834_v37, %v5860_v35  ;;  %v9840_v37 = vld [vmem:[#allocation17_spill] sm:$0xff] }
 0x258   : > { %3679 = vrot.lane.b32.xlu2 %v6000_v18, %s5364_s14 }
 0x259   : > { %4769 = vrot.lane.b32.xlu0 %v4768_v56, %s5363_s13  ;;  %4779 = vrot.lane.b32.xlu1 %v9827_v54, %s5366_s16  ;;  %v6195_v56 = vld [vmem:[#allocation2 + $0x92] sm:$0xff] }
 0x25a   : > { %v6186_v26 = vpop.permute.xlu2 %4649 }
 0x25b   : > { %v6188_v31 = vpop.permute.xlu0 %4604  ;;  %v6191_v15 = vpop.permute.xlu1 %4599 }
 0x260   : > { %3689 = vrot.lane.b32.xlu2 %v6195_v56, %s5364_s14 }
 0x261   : > { %4774 = vrot.lane.b32.xlu0 %v9828_v46, %s5366_s16  ;;  %4784 = vrot.lane.b32.xlu1 %v4783_v20, %s5367_s17  ;;  %v9834_v46 = vld [vmem:[#allocation11_spill] sm:$0xff] }
 0x262   : > { %v6204_v55 = vpop.permute.xlu2 %4659  ;;  %v9836_v38 = vpack.i.bf16 %v9834_v46, %v9835_v23  ;;  %v9846_v46 = vld [vmem:[#allocation13_spill] sm:$0xff] }
 0x263   : > { %9829 = vst [vmem:[#allocation41_spill] sm:$0xff] %v6204_v55  ;;  %v6206_v54 = vpop.permute.xlu0 %3659  ;;  %v6208_v27 = vpop.permute.xlu1 %4614 }
 0x264   : > { %9830 = vst [vmem:[#allocation42_spill] sm:$0xff] %v6206_v54 }
 0x268   : > { %3681 = vrot.lane.b32.xlu2 %v6088_v1, %s5364_s14 }
 0x269   : > { %4799 = vrot.lane.b32.xlu0 %v9831_v9, %s5365_s15  ;;  %4804 = vrot.lane.b32.xlu1 %v9832_v36, %s5365_s15  ;;  %v6243_v9 = vperm.slane %v9838_v40, %v5551_v33  ;;  %v6247_v36 = vperm.slane %v9840_v37, %v5551_v33  ;;  %v6263_v40 = vperm.slane %v9846_v46, %v5551_v33  ;;  %v3075_v37 = vrot.slane %v6088_v1, 4 }
 0x26a   : > { %v6220_v17 = vpop.permute.xlu2 %3675 }
 0x26b   : > { %9833 = vst [vmem:[#allocation43_spill] sm:$0xff] %v6220_v17  ;;  %v6222_v20 = vpop.permute.xlu0 %4634  ;;  %v6224_v53 = vpop.permute.xlu1 %4624  ;;  %v1799_v42 = vrot.slane %v6243_v9, 4 }
 0x26c   : > { %9839 = vst [vmem:[#allocation10_spill] sm:$0xff] %v6243_v9  ;;  %v3021_v9 = vrot.slane %v5973_v0, 4 }
 0x26d   : > { %9841 = vst [vmem:[#allocation16_spill] sm:$0xff] %v6247_v36 }
 0x26e   : > { %9847 = vst [vmem:[#allocation13_spill] sm:$0xff] %v6263_v40 }
 0x270   : > { %4739 = vrot.lane.b32.xlu2 %v9836_v38, %s5365_s15  ;;  %v9842_v38 = vld [vmem:[#allocation20_spill] sm:$0xff] }
 0x271   : > { %4809 = vrot.lane.b32.xlu0 %v4808_v13, %s5363_s13  ;;  %3669 = vrot.lane.b32.xlu1 %v5860_v35, %s5364_s14  ;;  %v6251_v23 = vperm.slane %v9842_v38, %v5551_v33  ;;  %v6255_v35 = vperm.slane %v5875_v59, %v5551_v33  ;;  %v6259_v13 = vperm.slane %v5886_v6, %v5551_v33  ;;  %v2955_v38 = vrot.slane %v6247_v36, 4  ;;  %v9848_v59 = vld [vmem:[#allocation12_spill] sm:$0xff]  ;;  %v9850_v36 = vld [vmem:[#allocation15_spill] sm:$0xff] }
 0x272   : > { %v6235_v60 = vpop.permute.xlu2 %3685  ;;  %v753_v41 = vrot.slane %v9848_v59, 4  ;;  %v9849_v6 = vpack.i.bf16 %v5869_v21, %v5866_v51  ;;  %v3076_v51 = vsel %vm585_vm5, %v3075_v37, %v6039_v22  ;;  %v6303_v37 = vld [vmem:[#allocation2 + $0x42] sm:$0xff] }
 0x273   : > { %9837 = vst [vmem:[#allocation11_spill] sm:$0xff] %v6235_v60  ;;  %v6237_v30 = vpop.permute.xlu0 %4639  ;;  %v6239_v57 = vpop.permute.xlu1 %4629  ;;  %v2959_v63 = vrot.slane %v6251_v23, 4  ;;  %v689_v46 = vrot.slane %v6255_v35, 4  ;;  %v693_v34 = vrot.slane %v6259_v13, 4  ;;  %v1795_v60 = vrot.slane %v6263_v40, 4 }
 0x274   : > { %9843 = vst [vmem:[#allocation17_spill] sm:$0xff] %v6251_v23  ;;  %v9852_v23 = vpack.i.bf16 %v9850_v36, %v9851_v2  ;;  %v1800_v2 = vsel %vm585_vm5, 0.0, %v1799_v42  ;;  %v2956_v36 = vsel %vm585_vm5, 0.0, %v2955_v38  ;;  %v6313_v42 = vperm.slane %v3076_v51, %v5513_v8 }
 0x275   : > { %9844 = vst [vmem:[#allocation20_spill] sm:$0xff] %v6255_v35  ;;  %v3077_v35 = vrot.slane %v6039_v22, 4  ;;  %v690_v40 = vsel %vm585_vm5, 0.0, %v689_v46  ;;  %v3022_v22 = vsel %vm585_vm5, %v6000_v18, %v3021_v9  ;;  %v3031_v46 = vrot.slane %v6159_v43, 4 }
 0x276   : > { %9845 = vst [vmem:[#allocation44_spill] sm:$0xff] %v6259_v13  ;;  %v6294_v13 = vld [vmem:[#allocation2 + $0x3a] sm:$0xff]  ;;  %v3089_v18 = vrot.slane %v6303_v37, 4  ;;  %v6329_v51 = vperm.slane %v3022_v22, %v5513_v8 }
 0x277   : > { %v3033_v38 = vrot.slane %v6294_v13, 4 }
 0x278   : > { %4749 = vrot.lane.b32.xlu2 %v6128_v29, %s5364_s14  ;;  %v3020_v29 = vsel %vm585_vm5, %v3019_v47, %v5973_v0  ;;  %v9856_v0 = vld [vmem:[#allocation22_spill] sm:$0xff] }
 0x279   : > { %4814 = vrot.lane.b32.xlu0 %v9849_v6, %s5366_s16  ;;  %4819 = vrot.lane.b32.xlu1 %v9852_v23, %s5366_s16  ;;  %v2960_v23 = vsel %vm585_vm5, 0.0, %v2959_v63  ;;  %v754_v47 = vsel %vm585_vm5, %v753_v41, %v9856_v0  ;;  %9857 = vst [vmem:[#allocation22_spill] sm:$0xff] %v6313_v42  ;;  %v1796_v63 = vsel %vm585_vm5, 0.0, %v1795_v60  ;;  %v3087_v41 = vrot.slane %v6195_v56, 4 }
 0x27a   : > { %v6289_v21 = vpop.permute.xlu2 %3677  ;;  %v4838_v19 = vpack.i.bf16 %v2960_v23, %v2956_v36  ;;  %v6326_v60 = vperm.slane %v754_v47, %v5513_v8  ;;  %v3090_v47 = vsel %vm585_vm5, %v6195_v56, %v3089_v18 }
 0x27b   : > { %9853 = vst [vmem:[#allocation12_spill] sm:$0xff] %v6289_v21  ;;  %v6291_v6 = vpop.permute.xlu0 %4664  ;;  %v6296_v16 = vpop.permute.xlu1 %4654  ;;  %v694_v21 = vsel %vm585_vm5, 0.0, %v693_v34  ;;  %v3078_v34 = vsel %vm585_vm5, %v6088_v1, %v3077_v35  ;;  %v765_v1 = vrot.slane %v6069_v49, 4  ;;  %v575_v35 = vld [vmem:[#allocation2 + $0x40] sm:$0xff] }
 0x27c   : > { %9854 = vst [vmem:[#allocation15_spill] sm:$0xff] %v6291_v6  ;;  %v4788_v6 = vpack.i.bf16 %v1800_v2, %v1796_v63  ;;  %v4828_v9 = vpack.i.bf16 %v694_v21, %v690_v40  ;;  %v6335_v40 = vperm.slane %v3078_v34, %v5513_v8  ;;  %v6354_v63 = vperm.slane %v5943_v61, %v5551_v33 }
 0x27d   : > { %9855 = vst [vmem:[#allocation14_spill] sm:$0xff] %v6296_v16  ;;  %v6310_v16 = vperm.slane %v3020_v29, %v5513_v8  ;;  %v755_v29 = vrot.slane %v9856_v0, 4  ;;  %v3032_v0 = vsel %vm585_vm5, %v3031_v46, %v6294_v13  ;;  %v733_v34 = vrot.slane %v6003_v24, 4 }
 0x27e   : > { %9860 = vst [vmem:[#allocation47_spill] sm:$0xff] %v6354_v63  ;;  %v721_v21 = vrot.slane %v5998_v50, 4  ;;  %v6379_v24 = vperm.slane %v3090_v47, %v5513_v8 }
 0x27f   : > { %v756_v46 = vsel %vm585_vm5, %v9848_v59, %v755_v29  ;;  %v6385_v59 = vperm.slane %v6084_v4, %v5551_v33  ;;  %v1851_v29 = vrot.slane %v6354_v63, 4 }
 0x280   : > { %4789 = vrot.lane.b32.xlu2 %v4788_v6, %s5367_s17  ;;  %v3088_v6 = vsel %vm585_vm5, %v3087_v41, %v6303_v37  ;;  %v767_v41 = vrot.slane %v575_v35, 4  ;;  %v6390_v50 = vperm.slane %v756_v46, %v5513_v8 }
 0x281   : > { %4839 = vrot.lane.b32.xlu0 %v4838_v19, %s5367_s17  ;;  %4829 = vrot.lane.b32.xlu1 %v4828_v9, %s5367_s17  ;;  %v3034_v19 = vsel %vm585_vm5, %v6159_v43, %v3033_v38  ;;  %v6358_v38 = vperm.slane %v5953_v28, %v5551_v33  ;;  %v6363_v9 = vperm.slane %v6046_v7, %v5551_v33  ;;  %v9865_v7 = vld [vmem:[#allocation25_spill] sm:$0xff]  ;;  %v1852_v42 = vsel %vm585_vm5, 0.0, %v1851_v29 }
 0x282   : > { %v6342_v36 = vpop.permute.xlu2 %4669  ;;  %v6368_v18 = vperm.slane %v3034_v19, %v5513_v8  ;;  %v6371_v61 = vperm.slane %v3088_v6, %v5513_v8  ;;  %v6376_v28 = vperm.slane %v6063_v62, %v5551_v33  ;;  %v4853_v2 = vpack.i.bf16 %v575_v35, %v9865_v7  ;;  %9866 = vst [vmem:[#allocation25_spill] sm:$0xff] %v6385_v59  ;;  %v9867_v62 = vld [vmem:[#allocation18_spill] sm:$0xff]  ;;  %v9868_v6 = vld [vmem:[#allocation19_spill] sm:$0xff] }
 0x283   : > { %v6344_v23 = vpop.permute.xlu0 %4679  ;;  %v6350_v22 = vpop.permute.xlu1 %3683  ;;  %9861 = vst [vmem:[#allocation48_spill] sm:$0xff] %v6358_v38  ;;  %v1855_v19 = vrot.slane %v6358_v38, 4  ;;  %v9869_v47 = vpack.i.bf16 %v9867_v62, %v9868_v6  ;;  %v3015_v4 = vrot.slane %v6363_v9, 4  ;;  %v768_v46 = vsel %vm585_vm5, %v6069_v49, %v767_v41  ;;  %v9872_v62 = vld [vmem:[#allocation26_spill] sm:$0xff] }
 0x284   : > { %9858 = vst [vmem:[#allocation45_spill] sm:$0xff] %v6344_v23  ;;  %v1907_v63 = vrot.slane %v6376_v28, 4  ;;  %v722_v6 = vsel %vm585_vm5, %v721_v21, %v9872_v62  ;;  %v1911_v49 = vrot.slane %v6385_v59, 4  ;;  %v3057_v41 = vrot.slane %v6329_v51, 4 }
 0x285   : > { %9859 = vst [vmem:[#allocation46_spill] sm:$0xff] %v6350_v22  ;;  %v766_v22 = vsel %vm585_vm5, %v765_v1, %v575_v35  ;;  %v6399_v1 = vperm.slane %v6008_v48, %v5551_v33  ;;  %v9871_v35 = vld [vmem:[#allocation27_spill] sm:$0xff]  ;;  %v779_v48 = vrot.slane %v6326_v60, 4  ;;  %v776_v62 = vperm.slane %v768_v46, %v5513_v8 }
 0x286   : > { %9862 = vst [vmem:[#allocation49_spill] sm:$0xff] %v6363_v9  ;;  %v734_v7 = vsel %vm585_vm5, %v733_v34, %v9871_v35  ;;  %v3055_v9 = vrot.slane %v6368_v18, 4  ;;  %v1856_v38 = vsel %vm585_vm5, 0.0, %v1855_v19  ;;  %v6435_v59 = vperm.slane %v722_v6, %v5551_v33 }
 0x287   : > { %9863 = vst [vmem:[#allocation50_spill] sm:$0xff] %v6371_v61  ;;  %v3011_v35 = vrot.slane %v6399_v1, 4  ;;  %v6447_v29 = vsel %vm585_vm5, 0.0, %v1911_v49  ;;  %v1939_v19 = vrot.slane %v6110_v3, 4  ;;  %v9881_v3 = vld [vmem:[#allocation23_spill] sm:$0xff] }
 0x288   : > { %9864 = vst [vmem:[#allocation51_spill] sm:$0xff] %v6376_v28  ;;  %4794 = vrot.lane.b32.xlu2 %v9869_v47, %s5365_s15  ;;  %v6411_v47 = vperm.slane %v766_v22, %v5513_v8  ;;  %v6426_v22 = vperm.slane %v734_v7, %v5551_v33  ;;  %v791_v28 = vrot.slane %v6390_v50, 4  ;;  %v6442_v7 = vsel %vm585_vm5, 0.0, %v1907_v63 }
 0x289   : > { %4854 = vrot.lane.b32.xlu0 %v4853_v2, %s5364_s14  ;;  %9870 = vst [vmem:[#allocation18_spill] sm:$0xff] %v6399_v1  ;;  %4849 = vrot.lane.b32.xlu1 %v4853_v2, %s5363_s13  ;;  %v3038_v2 = vperm.slane %v3032_v0, %v5513_v8  ;;  %v4878_v0 = vpack.i.bf16 %v6159_v43, %v6294_v13  ;;  %v9878_v43 = vrot.slane %v6310_v16, 4  ;;  %v1951_v63 = vrot.slane %v6104_v32, 4 }
 0x28a   : > { %v6415_v61 = vpop.permute.xlu2 %4684  ;;  %9876 = vst [vmem:[#allocation52_spill] sm:$0xff] %v6426_v22  ;;  %v780_v46 = vsel %vm585_vm5, %v6411_v47, %v779_v48  ;;  %v3058_v1 = vsel %vm585_vm5, %v6368_v18, %v3057_v41  ;;  %v749_v48 = vrot.slane %v6426_v22, 4  ;;  %v792_v49 = vsel %vm585_vm5, %v776_v62, %v791_v28 }
 0x28b   : > { %9873 = vst [vmem:[#allocation19_spill] sm:$0xff] %v6415_v61  ;;  %v6417_v34 = vpop.permute.xlu0 %4689  ;;  %v6423_v21 = vpop.permute.xlu1 %3661  ;;  %v6439_v61 = vsel %vm585_vm5, 0.0, %v3015_v4  ;;  %v3046_v6 = vsel %vm585_vm5, %v3038_v2, %v9878_v43  ;;  %v9879_v4 = vld [vmem:[#allocation21_spill] sm:$0xff]  ;;  %v9883_v43 = vpack.i.bf16 %v5967_v12, %v5958_v52  ;;  %v4833_v18 = vpack.i.bf16 %v1856_v38, %v1852_v42 }
 0x28c   : > { %9874 = vst [vmem:[#allocation27_spill] sm:$0xff] %v6417_v34  ;;  %v6457_v23 = vpack.i.bf16 %v6022_v25, %v9879_v4  ;;  %v745_v25 = vrot.slane %v6435_v59, 4  ;;  %v3043_v41 = vrot.slane %v3038_v2, 4  ;;  %v6472_v32 = vperm.slane %v780_v46, %v5551_v33 }
 0x28d   : > { %9875 = vst [vmem:[#allocation26_spill] sm:$0xff] %v6423_v21  ;;  %v9880_v21 = vld [vmem:[#allocation24_spill] sm:$0xff]  ;;  %v6477_v28 = vsel %vm585_vm5, 0.0, %v3011_v35  ;;  %v789_v52 = vrot.slane %v776_v62, 4  ;;  %v6494_v35 = vperm.slane %v792_v49, %v5551_v33  ;;  %v3056_v46 = vsel %vm585_vm5, %v3055_v9, %v6329_v51 }
 0x28e   : > { %9877 = vst [vmem:[#allocation53_spill] sm:$0xff] %v6435_v59  ;;  %v9882_v34 = vpack.i.bf16 %v9880_v21, %v9881_v3  ;;  %v6483_v21 = vperm.slane %v3058_v1, %v5551_v33  ;;  %v6501_v1 = vsel %vm585_vm5, 0.0, %v749_v48  ;;  %v777_v62 = vrot.slane %v6411_v47, 4 }
 0x28f   : > { %v1940_v4 = vsel %vm585_vm5, %v1939_v19, %v6099_v10  ;;  %v1952_v3 = vsel %vm585_vm5, %v1951_v63, %v6067_v5  ;;  %v803_v49 = vrot.slane %v6472_v32, 4  ;;  %v3044_v51 = vsel %vm585_vm5, %v3043_v41, %v6310_v16 }
 0x290   : > { %4824 = vrot.lane.b32.xlu2 %v9882_v34, %s5366_s16  ;;  %v6480_v34 = vperm.slane %v3046_v6, %v5551_v33  ;;  %v3113_v9 = vrot.slane %v6335_v40, 4  ;;  %v3073_v47 = vrot.slane %v6483_v21, 4  ;;  %v6518_v2 = vperm.slane %v3056_v46, %v5551_v33 }
 0x291   : > { %4859 = vrot.lane.b32.xlu0 %v9883_v43, %s5365_s15  ;;  %4869 = vrot.lane.b32.xlu1 %v6457_v23, %s5364_s14  ;;  %v6509_v43 = vsel %vm585_vm5, 0.0, %v745_v25  ;;  %v790_v5 = vsel %vm585_vm5, %v789_v52, %v6390_v50  ;;  %v807_v19 = vrot.slane %v6494_v35, 4  ;;  %v6526_v63 = vperm.slane %v1940_v4, %v5551_v33 }
 0x292   : > { %v6485_v12 = vpop.permute.xlu2 %4694  ;;  %v3069_v48 = vrot.slane %v6480_v34, 4  ;;  %9885 = vst [vmem:[#allocation24_spill] sm:$0xff] %v6518_v2  ;;  %v6529_v16 = vperm.slane %v1952_v3, %v5551_v33  ;;  %v4883_v25 = vpack.i.bf16 %v6195_v56, %v6303_v37  ;;  %v6536_v46 = vperm.slane %v3044_v51, %v5551_v33  ;;  %v9890_v51 = vld [vmem:[#allocation28_spill] sm:$0xff] }
 0x293   : > { %v6487_v42 = vpop.permute.xlu0 %4714  ;;  %v6498_v6 = vpop.permute.xlu1 %4674  ;;  %9886 = vst [vmem:[#allocation23_spill] sm:$0xff] %v6526_v63  ;;  %v778_v50 = vsel %vm585_vm5, %v777_v62, %v6326_v60  ;;  %v9584_v52 = vunpack.i.h.bf16 %v6138_v11  ;;  %v6545_v3 = vperm.slane %v790_v5, %v5551_v33  ;;  %v3114_v56 = vsel %vm585_vm5, %v6379_v24, %v3113_v9 }
 0x294   : > { %9884 = vst [vmem:[#allocation21_spill] sm:$0xff] %v6487_v42  ;;  %v9891_v41 = vpack.i.bf16 %v5995_v45, %v9890_v51  ;;  %v6554_v60 = vsel %vm585_vm5, 0.0, %v803_v49  ;;  %v6557_v62 = vsel %vm585_vm5, 0.0, %v3069_v48  ;;  %v6568_v9 = vsel %vm585_vm5, 0.0, %v807_v19 }
 0x295   : > { %9887 = vst [vmem:[#allocation54_spill] sm:$0xff] %v6529_v16  ;;  %v1963_v45 = vrot.slane %v6526_v63, 4  ;;  %v1967_v49 = vrot.slane %v6529_v16, 4  ;;  %v4622_v48 = vunpack.i.h.bf16 %v6157_v58  ;;  %v3067_v38 = vrot.slane %v6536_v46, 4 }
 0x296   : > { %9888 = vst [vmem:[#allocation55_spill] sm:$0xff] %v6536_v46  ;;  %v6581_v4 = vperm.slane %v3114_v56, %v5551_v33  ;;  %v6585_v19 = vrot.slane %v9584_v52, 4  ;;  %v9897_v52 = vrot.slane %v6379_v24, 4  ;;  %v4602_v16 = vunpack.i.h.bf16 %v6191_v15 }
 0x297   : > { %9889 = vst [vmem:[#allocation56_spill] sm:$0xff] %v6545_v3  ;;  %v1051_v63 = vrot.slane %v4622_v48, 4  ;;  %v4601_v24 = vunpack.i.l.bf16 %v6191_v15 }
 0x298   : > { %4834 = vrot.lane.b32.xlu2 %v4833_v18, %s5367_s17  ;;  %9892 = vst [vmem:[#allocation28_spill] sm:$0xff] %v6557_v62  ;;  %v6560_v18 = vsel %vm585_vm5, 0.0, %v3073_v47  ;;  %v4621_v47 = vunpack.i.l.bf16 %v6157_v58  ;;  %v805_v58 = vrot.slane %v6545_v3, 4  ;;  %v6610_v3 = vsel %vm585_vm5, 0.0, %v1967_v49 }
 0x299   : > { %4879 = vrot.lane.b32.xlu0 %v4878_v0, %s5363_s13  ;;  %4874 = vrot.lane.b32.xlu1 %v9891_v41, %s5365_s15  ;;  %v3071_v0 = vrot.slane %v6518_v2, 4  ;;  %v6573_v41 = vperm.slane %v778_v50, %v5551_v33  ;;  %9895 = vst [vmem:[#allocation59_spill] sm:$0xff] %v6581_v4  ;;  %v9896_v2 = vunpack.i.l.bf16 %v6138_v11  ;;  %v6607_v50 = vsel %vm585_vm5, 0.0, %v1963_v45 }
 0x29a   : > { %v6563_v5 = vpop.permute.xlu2 %4699  ;;  %9898 = vst [vmem:[#allocation60_spill] sm:$0xff] %v6607_v50  ;;  %v995_v56 = vrot.slane %v4621_v47, 4  ;;  %v6626_v49 = vsel %vm585_vm5, 0.0, %v805_v58  ;;  %v4617_v58 = vunpack.i.h.bf16 %v6208_v27  ;;  %v9908_v50 = vunpack.i.h.bf16 %v6166_v14 }
 0x29b   : > { %v6565_v10 = vpop.permute.xlu0 %4719  ;;  %9893 = vst [vmem:[#allocation57_spill] sm:$0xff] %v6573_v41  ;;  %v6577_v51 = vpop.permute.xlu1 %3663  ;;  %v6589_v59 = vrot.slane %v9896_v2, 4  ;;  %v6599_v46 = vsel %vm585_vm5, 0.0, %v3071_v0  ;;  %v3112_v2 = vsel %vm585_vm5, %v9897_v52, %v6335_v40  ;;  %v801_v22 = vrot.slane %v6573_v41, 4  ;;  %v9900_v40 = vld [vmem:[#allocation30_spill] sm:$0xff]  ;;  %v9901_v52 = vld [vmem:[#allocation29_spill] sm:$0xff] }
 0x29c   : > { %9894 = vst [vmem:[#allocation58_spill] sm:$0xff] %v6577_v51  ;;  %v6614_v0 = vsel %vm585_vm5, 0.0, %v3067_v38  ;;  %v3129_v51 = vrot.slane %v6581_v4, 4  ;;  %v9902_v62 = vpack.i.bf16 %v9900_v40, %v9901_v52  ;;  %v6629_v38 = vperm.slane %v3112_v2, %v5551_v33 }
 0x29d   : > { %9899 = vst [vmem:[#allocation61_spill] sm:$0xff] %v6610_v3  ;;  %v4652_v4 = vunpack.i.h.bf16 %v6186_v26  ;;  %v1053_v40 = vrot.slane %v4602_v16, 4  ;;  %v6645_v45 = vsel %vm585_vm5, 0.0, %v801_v22  ;;  %v1052_v33 = vsel %vm585_vm5, %v1051_v63, %v4602_v16 }
 0x29e   : > { %9903 = vst [vmem:[#allocation30_spill] sm:$0xff] %v6629_v38  ;;  %v3127_v22 = vrot.slane %v6629_v38, 4  ;;  %v6661_v15 = vrot.slane %v9908_v50, 4  ;;  %v9910_v41 = vunpack.i.l.bf16 %v6166_v14  ;;  %v2605_v63 = vrot.slane %v4617_v58, 4 }
 0x29f   : > { %v2603_v3 = vrot.slane %v4652_v4, 4  ;;  %v6670_v16 = vperm.slane %v1052_v33, %v5513_v8  ;;  %v9600_v50 = vunpack.i.h.bf16 %v6204_v55  ;;  %v9914_v33 = vpack.i.bf16 %v6075_v39, %v6072_v44 }
 0x2a0   : > { %4844 = vrot.lane.b32.xlu2 %v9902_v62, %s5365_s15  ;;  %v4651_v62 = vunpack.i.l.bf16 %v6186_v26  ;;  %v6654_v26 = vsel %vm585_vm5, 0.0, %v3129_v51  ;;  %9909 = vst [vmem:[#allocation65_spill] sm:$0xff] %v6661_v15  ;;  %v9913_v15 = vunpack.i.l.bf16 %v6188_v31  ;;  %v4642_v44 = vunpack.i.h.bf16 %v6237_v30 }
 0x2a1   : > { %4884 = vrot.lane.b32.xlu0 %v4883_v25, %s5363_s13  ;;  %3671 = vrot.lane.b32.xlu1 %v6294_v13, %s5364_s14  ;;  %9907 = vst [vmem:[#allocation64_spill] sm:$0xff] %v6654_v26  ;;  %v4616_v25 = vunpack.i.l.bf16 %v6208_v27  ;;  %v1054_v26 = vsel %vm585_vm5, %v4622_v48, %v1053_v40  ;;  %v6691_v40 = vsel %vm585_vm5, 0.0, %v3127_v22 }
 0x2a2   : > { %v6640_v52 = vpop.permute.xlu2 %4724  ;;  %v2547_v51 = vrot.slane %v4651_v62, 4  ;;  %9911 = vst [vmem:[#allocation66_spill] sm:$0xff] %v6670_v16  ;;  %v6681_v27 = vrot.slane %v9913_v15, 4  ;;  %v4672_v16 = vunpack.i.h.bf16 %v6342_v36 }
 0x2a3   : > { %9904 = vst [vmem:[#allocation29_spill] sm:$0xff] %v6640_v52  ;;  %v6642_v2 = vpop.permute.xlu0 %4729  ;;  %v6649_v13 = vpop.permute.xlu1 %3665  ;;  %v996_v52 = vsel %vm585_vm5, %v995_v56, %v4601_v24 }
 0x2a4   : > { %9905 = vst [vmem:[#allocation62_spill] sm:$0xff] %v6642_v2  ;;  %v997_v2 = vrot.slane %v4601_v24, 4  ;;  %v6673_v56 = vperm.slane %v996_v52, %v5513_v8  ;;  %v2604_v24 = vsel %vm585_vm5, %v2603_v3, %v4617_v58  ;;  %v6694_v3 = vperm.slane %v1054_v26, %v5513_v8 }
 0x2a5   : > { %9906 = vst [vmem:[#allocation63_spill] sm:$0xff] %v6649_v13  ;;  %v6665_v13 = vrot.slane %v9910_v41, 4  ;;  %v9912_v41 = vunpack.i.h.bf16 %v6188_v31  ;;  %v9602_v58 = vunpack.i.l.bf16 %v6204_v55  ;;  %v2548_v15 = vsel %vm585_vm5, %v2547_v51, %v4616_v25  ;;  %v9931_v55 = vld [vmem:[#allocation33_spill] sm:$0xff] }
 0x2a6   : > { %v998_v48 = vsel %vm585_vm5, %v4621_v47, %v997_v2  ;;  %9915 = vst [vmem:[#allocation67_spill] sm:$0xff] %v6691_v40  ;;  %v2549_v52 = vrot.slane %v4616_v25, 4  ;;  %v2606_v47 = vsel %vm585_vm5, %v4652_v4, %v2605_v63  ;;  %v6703_v39 = vperm.slane %v2604_v24, %v5513_v8 }
 0x2a7   : > { %v1445_v38 = vrot.slane %v9912_v41, 4  ;;  %9916 = vst [vmem:[#allocation68_spill] sm:$0xff] %v6694_v3  ;;  %v6712_v25 = vperm.slane %v998_v48, %v5513_v8  ;;  %v6717_v51 = vrot.slane %v9600_v50, 4  ;;  %v6722_v63 = vperm.slane %v2548_v15, %v5513_v8  ;;  %v9962_v3 = vld [vmem:[#allocation45_spill] sm:$0xff] }
 0x2a8   : > { %4864 = vrot.lane.b32.xlu2 %v6457_v23, %s5363_s13  ;;  %v3709_v23 = vrot.slane %v6206_v54, 4  ;;  %9917 = vst [vmem:[#allocation69_spill] sm:$0xff] %v6703_v39  ;;  %v6730_v48 = vrot.slane %v9602_v58, 4  ;;  %v6733_v22 = vperm.slane %v2606_v47, %v5513_v8  ;;  %v2550_v50 = vsel %vm585_vm5, %v4651_v62, %v2549_v52  ;;  %v9930_v58 = vld [vmem:[#allocation34_spill] sm:$0xff]  ;;  %v9945_v39 = vld [vmem:[#allocation27_spill] sm:$0xff] }
 0x2a9   : > { %4889 = vrot.lane.b32.xlu0 %v9914_v33, %s5366_s16  ;;  %3673 = vrot.lane.b32.xlu1 %v6303_v37, %s5364_s14  ;;  %9919 = vst [vmem:[#allocation71_spill] sm:$0xff] %v6717_v51  ;;  %v4641_v33 = vunpack.i.l.bf16 %v6237_v30  ;;  %v4632_v37 = vunpack.i.h.bf16 %v6239_v57  ;;  %v2211_v54 = vrot.slane %v4642_v44, 4  ;;  %v4631_v41 = vunpack.i.l.bf16 %v6239_v57  ;;  %v9925_v57 = vld [vmem:[#allocation32_spill] sm:$0xff] }
 0x2aa   : > { %v6706_v2 = vpop.permute.xlu2 %3687  ;;  %v3710_v24 = vsel %vm585_vm5, %v6220_v17, %v3709_v23  ;;  %9921 = vst [vmem:[#allocation73_spill] sm:$0xff] %v6730_v48  ;;  %v2214_v23 = vsel %vm585_vm5, %v4642_v44, %v6585_v19  ;;  %v6748_v62 = vperm.slane %v2550_v50, %v5513_v8  ;;  %v9923_v15 = vunpack.i.h.bf16 %v6222_v20  ;;  %v9926_v44 = vld [vmem:[#allocation31_spill] sm:$0xff] }
 0x2ab   : > { %9918 = vst [vmem:[#allocation70_spill] sm:$0xff] %v6706_v2  ;;  %v6708_v26 = vpop.permute.xlu0 %4734  ;;  %v6719_v4 = vpop.permute.xlu1 %4704  ;;  %v6742_v30 = vperm.slane %v3710_v24, %v5513_v8  ;;  %v2155_v19 = vrot.slane %v4641_v33, 4  ;;  %v9927_v24 = vpack.i.bf16 %v9925_v57, %v9926_v44  ;;  %v9928_v47 = vpack.i.bf16 %v6439_v61, %v6477_v28  ;;  %v9934_v28 = vld [vmem:[#allocation15_spill] sm:$0xff] }
 0x2ac   : > { %9920 = vst [vmem:[#allocation72_spill] sm:$0xff] %v6719_v4  ;;  %v6753_v40 = vrot.slane %v9923_v15, 4  ;;  %v6764_v50 = vperm.slane %v2214_v23, %v5513_v8  ;;  %v2158_v52 = vsel %vm585_vm5, %v4641_v33, %v6589_v59  ;;  %v1443_v17 = vrot.slane %v4632_v37, 4 }
 0x2ad   : > { %9922 = vst [vmem:[#allocation74_spill] sm:$0xff] %v6742_v30  ;;  %v1446_v15 = vsel %vm585_vm5, %v4632_v37, %v1445_v38  ;;  %v9932_v2 = vpack.i.bf16 %v9930_v58, %v9931_v55  ;;  %v9933_v57 = vunpack.i.h.bf16 %v6138_v11  ;;  %v1387_v61 = vrot.slane %v4631_v41, 4  ;;  %v9949_v30 = vld [vmem:[#allocation36_spill] sm:$0xff] }
 0x2ae   : > { %9924 = vst [vmem:[#allocation75_spill] sm:$0xff] %v6753_v40  ;;  %v4666_v23 = vunpack.i.l.bf16 %v9934_v28  ;;  %v9936_v37 = vunpack.i.l.bf16 %v6222_v20  ;;  %v9937_v55 = vunpack.i.h.bf16 %v6224_v53  ;;  %v6801_v38 = vperm.slane %v2158_v52, %v5513_v8 }
 0x2af   : > { %9929 = vst [vmem:[#allocation32_spill] sm:$0xff] %v6764_v50  ;;  %v2212_v44 = vsel %vm585_vm5, %v2211_v54, %v9933_v57  ;;  %v9938_v54 = vunpack.i.l.bf16 %v6224_v53  ;;  %v9944_v52 = vunpack.i.l.bf16 %v6188_v31 }
 0x2b0   : > { %4899 = vrot.lane.b32.xlu2 %v9927_v24, %s5366_s16  ;;  %v6785_v33 = vrot.slane %v9936_v37, 4  ;;  %v6789_v58 = vrot.slane %v9937_v55, 4  ;;  %v6804_v37 = vperm.slane %v1446_v15, %v5513_v8  ;;  %v1390_v55 = vsel %vm585_vm5, %v4631_v41, %v6681_v27 }
 0x2b1   : > { %4914 = vrot.lane.b32.xlu0 %v9928_v47, %s5367_s17  ;;  %4894 = vrot.lane.b32.xlu1 %v9932_v2, %s5366_s16  ;;  %v4667_v47 = vunpack.i.h.bf16 %v9934_v28  ;;  %v6793_v2 = vrot.slane %v9938_v54, 4  ;;  %v9940_v28 = vunpack.i.l.bf16 %v6138_v11  ;;  %v6810_v54 = vperm.slane %v2212_v44, %v5513_v8 }
 0x2b2   : > { %v6778_v24 = vpop.permute.xlu2 %3679  ;;  %9941 = vst [vmem:[#allocation33_spill] sm:$0xff] %v6804_v37  ;;  %v9943_v11 = vunpack.i.h.bf16 %v6188_v31  ;;  %v3373_v4 = vrot.slane %v4666_v23, 4  ;;  %v6824_v41 = vperm.slane %v1390_v55, %v5513_v8  ;;  %v4671_v44 = vunpack.i.l.bf16 %v6342_v36  ;;  %v9948_v55 = vld [vmem:[#allocation35_spill] sm:$0xff] }
 0x2b3   : > { %9935 = vst [vmem:[#allocation31_spill] sm:$0xff] %v6778_v24  ;;  %v6780_v59 = vpop.permute.xlu0 %4744  ;;  %v6795_v57 = vpop.permute.xlu1 %4709  ;;  %v2156_v24 = vsel %vm585_vm5, %v2155_v19, %v9940_v28  ;;  %v1388_v28 = vsel %vm585_vm5, %v1387_v61, %v9944_v52  ;;  %v3371_v15 = vrot.slane %v4667_v47, 4  ;;  %v9950_v50 = vpack.i.bf16 %v9948_v55, %v9949_v30 }
 0x2b4   : > { %9939 = vst [vmem:[#allocation34_spill] sm:$0xff] %v6795_v57  ;;  %v1444_v19 = vsel %vm585_vm5, %v1443_v17, %v9943_v11  ;;  %v6821_v27 = vperm.slane %v2156_v24, %v5513_v8  ;;  %v4692_v57 = vunpack.i.h.bf16 %v9945_v39  ;;  %v9946_v11 = vld [vmem:[#allocation14_spill] sm:$0xff]  ;;  %v9947_v24 = vpack.i.bf16 %v6447_v29, %v6442_v7  ;;  %v9953_v29 = vld [vmem:[#allocation12_spill] sm:$0xff] }
 0x2b5   : > { %v6841_v36 = vperm.slane %v1444_v19, %v5513_v8  ;;  %v6844_v17 = vperm.slane %v1388_v28, %v5513_v8  ;;  %v4691_v31 = vunpack.i.l.bf16 %v9945_v39  ;;  %v9952_v52 = vpack.i.bf16 %v6501_v1, %v6509_v43 }
 0x2b6   : > { %v3372_v30 = vsel %vm585_vm5, %v3371_v15, %v4666_v23  ;;  %v1165_v19 = vrot.slane %v4672_v16, 4  ;;  %v1109_v61 = vrot.slane %v4671_v44, 4  ;;  %v1163_v37 = vrot.slane %v4692_v57, 4  ;;  %v9959_v15 = vld [vmem:[#allocation26_spill] sm:$0xff] }
 0x2b7   : > { %9951 = vst [vmem:[#allocation15_spill] sm:$0xff] %v6841_v36  ;;  %v9956_v43 = vunpack.i.h.bf16 %v9946_v11  ;;  %v9958_v23 = vunpack.i.l.bf16 %v9946_v11  ;;  %v3765_v7 = vrot.slane %v9959_v15, 4  ;;  %v6874_v39 = vperm.slane %v3372_v30, %v5513_v8 }
 0x2b8   : > { %4909 = vrot.lane.b32.xlu2 %v9947_v24, %s5367_s17  ;;  %v3763_v24 = vrot.slane %v9953_v29, 4  ;;  %v1110_v1 = vsel %vm585_vm5, %v4691_v31, %v1109_v61  ;;  %v1164_v51 = vsel %vm585_vm5, %v1163_v37, %v4672_v16  ;;  %v9967_v16 = vpack.i.bf16 %v6568_v9, %v6554_v60 }
 0x2b9   : > { %4924 = vrot.lane.b32.xlu0 %v9950_v50, %s5365_s15  ;;  %4904 = vrot.lane.b32.xlu1 %v9952_v52, %s5367_s17  ;;  %v3374_v50 = vsel %vm585_vm5, %v4667_v47, %v3373_v4  ;;  %v6865_v52 = vrot.slane %v9956_v43, 4  ;;  %v6869_v4 = vrot.slane %v9958_v23, 4  ;;  %v1166_v47 = vsel %vm585_vm5, %v4692_v57, %v1165_v19  ;;  %9960 = vst [vmem:[#allocation36_spill] sm:$0xff] %v6874_v39  ;;  %v9963_v19 = vld [vmem:[#allocation19_spill] sm:$0xff] }
 0x2ba   : > { %v6855_v55 = vpop.permute.xlu2 %3689  ;;  %v9624_v43 = vunpack.i.h.bf16 %v9962_v3  ;;  %v3764_v23 = vsel %vm585_vm5, %v3763_v24, %v9959_v15  ;;  %v9626_v48 = vunpack.i.h.bf16 %v9963_v19  ;;  %v9625_v30 = vunpack.i.l.bf16 %v9963_v19 }
 0x2bb   : > { %9954 = vst [vmem:[#allocation27_spill] sm:$0xff] %v6855_v55  ;;  %v6857_v28 = vpop.permute.xlu0 %4754  ;;  %v6860_v40 = vpop.permute.xlu1 %4759  ;;  %v1107_v55 = vrot.slane %v4691_v31, 4  ;;  %v6892_v31 = vperm.slane %v1110_v1, %v5513_v8  ;;  %v3766_v61 = vsel %vm585_vm5, %v9953_v29, %v3765_v7  ;;  %v9966_v24 = vpack.i.bf16 %v6494_v35, %v6472_v32 }
 0x2bc   : > { %9955 = vst [vmem:[#allocation14_spill] sm:$0xff] %v6857_v28  ;;  %v6877_v28 = vperm.slane %v3374_v50, %v5513_v8  ;;  %v6889_v50 = vperm.slane %v1166_v47, %v5513_v8  ;;  %v6909_v7 = vperm.slane %v3764_v23, %v5513_v8  ;;  %v4746_v29 = vunpack.i.l.bf16 %v6780_v59 }
 0x2bd   : > { %9957 = vst [vmem:[#allocation35_spill] sm:$0xff] %v6865_v52  ;;  %v4761_v52 = vunpack.i.l.bf16 %v6860_v40  ;;  %v1108_v47 = vsel %vm585_vm5, %v1107_v55, %v4671_v44  ;;  %v9969_v32 = vpack.i.bf16 %v6483_v21, %v6480_v34  ;;  %v6919_v60 = vrot.slane %v9624_v43, 4 }
 0x2be   : > { %9961 = vst [vmem:[#allocation12_spill] sm:$0xff] %v6877_v28  ;;  %v9970_v9 = vunpack.i.l.bf16 %v9962_v3  ;;  %v6926_v44 = vperm.slane %v1164_v51, %v5513_v8  ;;  %v2717_v34 = vrot.slane %v9626_v48, 4  ;;  %v6936_v21 = vrot.slane %v9625_v30, 4 }
 0x2bf   : > { %9964 = vst [vmem:[#allocation26_spill] sm:$0xff] %v6889_v50  ;;  %v6945_v51 = vperm.slane %v1108_v47, %v5513_v8  ;;  %v4676_v35 = vunpack.i.l.bf16 %v6498_v6  ;;  %v2169_v1 = vrot.slane %v4761_v52, 4  ;;  %v4677_v37 = vunpack.i.h.bf16 %v6498_v6  ;;  %v9977_v47 = vld [vmem:[#allocation28_spill] sm:$0xff] }
 0x2c0   : > { %9965 = vst [vmem:[#allocation45_spill] sm:$0xff] %v6892_v31  ;;  %4919 = vrot.lane.b32.xlu2 %v9966_v24, %s5365_s15  ;;  %v6923_v15 = vrot.slane %v9970_v9, 4  ;;  %v4701_v57 = vunpack.i.l.bf16 %v6563_v5  ;;  %v1009_v24 = vrot.slane %v4746_v29, 4  ;;  %v4702_v30 = vunpack.i.h.bf16 %v6563_v5 }
 0x2c1   : > { %4934 = vrot.lane.b32.xlu0 %v9967_v16, %s5366_s16  ;;  %9968 = vst [vmem:[#allocation19_spill] sm:$0xff] %v6909_v7  ;;  %4929 = vrot.lane.b32.xlu1 %v9969_v32, %s5365_s15  ;;  %v6940_v16 = vperm.slane %v3766_v61, %v5513_v8  ;;  %v2181_v48 = vrot.slane %v6821_v27, 4  ;;  %v1501_v7 = vrot.slane %v4676_v35, 4  ;;  %v4722_v31 = vunpack.i.h.bf16 %v6565_v10 }
 0x2c2   : > { %9971 = vst [vmem:[#allocation76_spill] sm:$0xff] %v6926_v44  ;;  %v6928_v55 = vpop.permute.xlu2 %3681  ;;  %v9976_v61 = vunpack.i.l.bf16 %v6166_v14  ;;  %v9978_v44 = vpack.i.bf16 %v6560_v18, %v9977_v47  ;;  %v9979_v50 = vpack.i.bf16 %v6599_v46, %v6614_v0  ;;  %v1557_v43 = vrot.slane %v4677_v37, 4 }
 0x2c3   : > { %9972 = vst [vmem:[#allocation77_spill] sm:$0xff] %v6928_v55  ;;  %v6930_v23 = vpop.permute.xlu0 %4764  ;;  %v6942_v32 = vpop.permute.xlu1 %3667  ;;  %v1499_v28 = vrot.slane %v4701_v57, 4  ;;  %v9980_v6 = vunpack.i.l.bf16 %v6224_v53  ;;  %v1502_v47 = vsel %vm585_vm5, %v4701_v57, %v1501_v7  ;;  %v2168_v46 = vsel %vm585_vm5, %v6665_v13, %v4761_v52 }
 0x2c4   : > { %9973 = vst [vmem:[#allocation78_spill] sm:$0xff] %v6940_v16  ;;  %v2170_v5 = vsel %vm585_vm5, %v9976_v61, %v2169_v1  ;;  %v9981_v1 = vld [vmem:[#allocation38_spill] sm:$0xff]  ;;  %v9982_v61 = vld [vmem:[#allocation37_spill] sm:$0xff]  ;;  %v1558_v16 = vsel %vm585_vm5, %v4702_v30, %v1557_v43  ;;  %v9987_v13 = vunpack.i.l.bf16 %v6485_v12  ;;  %v2718_v7 = vsel %vm585_vm5, %v4722_v31, %v2717_v34 }
 0x2c5   : > { %9974 = vst [vmem:[#allocation79_spill] sm:$0xff] %v6942_v32  ;;  %v1010_v9 = vsel %vm585_vm5, %v9980_v6, %v1009_v24  ;;  %v9983_v39 = vpack.i.bf16 %v9981_v1, %v9982_v61  ;;  %v9985_v24 = vunpack.i.h.bf16 %v6485_v12  ;;  %v6997_v1 = vperm.slane %v2170_v5, %v5513_v8 }
 0x2c6   : > { %9975 = vst [vmem:[#allocation80_spill] sm:$0xff] %v6945_v51  ;;  %v4766_v51 = vunpack.i.l.bf16 %v6930_v23  ;;  %v7003_v52 = vrot.slane %v9987_v13, 4  ;;  %v4721_v61 = vunpack.i.l.bf16 %v6565_v10  ;;  %v1500_v43 = vsel %vm585_vm5, %v1499_v28, %v4676_v35 }
 0x2c7   : > { %v6991_v6 = vrot.slane %v9985_v24, 4  ;;  %v7008_v24 = vperm.slane %v1010_v9, %v5513_v8  ;;  %v7019_v13 = vperm.slane %v1558_v16, %v5513_v8  ;;  %v2715_v34 = vrot.slane %v4722_v31, 4 }
 0x2c8   : > { %4944 = vrot.lane.b32.xlu2 %v9978_v44, %s5366_s16  ;;  %v1555_v44 = vrot.slane %v4702_v30, 4  ;;  %9988 = vst [vmem:[#allocation37_spill] sm:$0xff] %v7003_v52  ;;  %v7015_v30 = vperm.slane %v2168_v46, %v5513_v8  ;;  %v9991_v9 = vunpack.i.h.bf16 %v6487_v42  ;;  %v9993_v28 = vunpack.i.l.bf16 %v6487_v42  ;;  %v9998_v46 = vld [vmem:[#allocation58_spill] sm:$0xff] }
 0x2c9   : > { %4959 = vrot.lane.b32.xlu0 %v9979_v50, %s5367_s17  ;;  %4939 = vrot.lane.b32.xlu1 %v9983_v39, %s5366_s16  ;;  %v1008_v39 = vsel %vm585_vm5, %v6793_v2, %v4746_v29  ;;  %v7012_v2 = vperm.slane %v1502_v47, %v5513_v8  ;;  %v2561_v29 = vrot.slane %v4766_v51, 4  ;;  %9990 = vst [vmem:[#allocation82_spill] sm:$0xff] %v7019_v13  ;;  %v1031_v52 = vrot.slane %v7008_v24, 4 }
 0x2ca   : > { %v6985_v0 = vpop.permute.xlu2 %4739  ;;  %v1556_v5 = vsel %vm585_vm5, %v1555_v44, %v4677_v37  ;;  %v7022_v10 = vperm.slane %v1008_v39, %v5513_v8  ;;  %v7026_v18 = vrot.slane %v9991_v9, 4  ;;  %v7030_v35 = vrot.slane %v9993_v28, 4  ;;  %v9999_v9 = vld [vmem:[#allocation61_spill] sm:$0xff] }
 0x2cb   : > { %9984 = vst [vmem:[#allocation28_spill] sm:$0xff] %v6985_v0  ;;  %v6987_v50 = vpop.permute.xlu0 %4769  ;;  %v6999_v57 = vpop.permute.xlu1 %4779  ;;  %v7033_v47 = vperm.slane %v2718_v7, %v5513_v8  ;;  %v9996_v37 = vrot.slane %v6801_v38, 4  ;;  %v7040_v31 = vperm.slane %v1500_v43, %v5513_v8  ;;  %v2659_v44 = vrot.slane %v4721_v61, 4 }
 0x2cc   : > { %9986 = vst [vmem:[#allocation38_spill] sm:$0xff] %v6999_v57  ;;  %v10002_v28 = vrot.slane %v6712_v25, 4  ;;  %v10004_v43 = vunpack.i.l.bf16 %v9946_v11  ;;  %v10005_v39 = vpack.i.bf16 %v6626_v49, %v6645_v45  ;;  %v2662_v13 = vsel %vm585_vm5, %v4721_v61, %v6936_v21 }
 0x2cd   : > { %9989 = vst [vmem:[#allocation81_spill] sm:$0xff] %v7012_v2  ;;  %v2194_v16 = vsel %vm585_vm5, %v6997_v1, %v9996_v37  ;;  %v7053_v37 = vperm.slane %v1556_v5, %v5513_v8  ;;  %v9663_v55 = vunpack.i.h.bf16 %v6987_v50 }
 0x2ce   : > { %9992 = vst [vmem:[#allocation83_spill] sm:$0xff] %v7026_v18  ;;  %v10000_v18 = vld [vmem:[#allocation60_spill] sm:$0xff]  ;;  %v1034_v7 = vsel %vm585_vm5, %v7008_v24, %v10002_v28  ;;  %v2562_v42 = vsel %vm585_vm5, %v10004_v43, %v2561_v29  ;;  %v10009_v43 = vrot.slane %v6673_v56, 4  ;;  %v2179_v24 = vrot.slane %v7015_v30, 4 }
 0x2cf   : > { %9994 = vst [vmem:[#allocation84_spill] sm:$0xff] %v7030_v35  ;;  %v10001_v57 = vpack.i.bf16 %v9999_v9, %v10000_v18  ;;  %v2182_v18 = vsel %vm585_vm5, %v7015_v30, %v2181_v48  ;;  %v10006_v9 = vunpack.i.h.bf16 %v9963_v19  ;;  %v2560_v48 = vsel %vm585_vm5, %v6869_v4, %v4766_v51 }
 0x2d0   : > { %9995 = vst [vmem:[#allocation85_spill] sm:$0xff] %v7033_v47  ;;  %v1022_v45 = vsel %vm585_vm5, %v7022_v10, %v10009_v43  ;;  %v7092_v43 = vperm.slane %v2562_v42, %v5513_v8  ;;  %v10017_v4 = vrot.slane %v6748_v62, 4 }
 0x2d1   : > { %9997 = vst [vmem:[#allocation86_spill] sm:$0xff] %v7040_v31  ;;  %4954 = vrot.lane.b32.xlu2 %v10001_v57, %s5367_s17  ;;  %4949 = vrot.lane.b32.xlu1 %v10005_v39, %s5367_s17  ;;  %v2716_v28 = vsel %vm585_vm5, %v2715_v34, %v10006_v9  ;;  %v10011_v57 = vunpack.i.l.bf16 %v9963_v19 }
 0x2d2   : > { %10003 = vst [vmem:[#allocation58_spill] sm:$0xff] %v7053_v37  ;;  %v7068_v5 = vpop.permute.xlu2 %4749  ;;  %v10008_v37 = vld [vmem:[#allocation9_spill] sm:$0xff]  ;;  %v7102_v19 = vperm.slane %v2716_v28, %v5513_v8  ;;  %v7119_v28 = vperm.slane %v2662_v13, %v5513_v8  ;;  %v10018_v13 = vrot.slane %v6844_v17, 4 }
 0x2d3   : > { %v7070_v0 = vpop.permute.xlu0 %4774  ;;  %v7073_v29 = vperm.slane %v2194_v16, %v10008_v37  ;;  %v4751_v39 = vunpack.i.l.bf16 %v7068_v5  ;;  %v7083_v34 = vpop.permute.xlu1 %4784  ;;  %v1042_v9 = vperm.slane %v1034_v7, %v10008_v37  ;;  %v2660_v16 = vsel %vm585_vm5, %v2659_v44, %v10011_v57 }
 0x2d4   : > { %10007 = vst [vmem:[#allocation61_spill] sm:$0xff] %v7070_v0  ;;  %v7095_v49 = vperm.slane %v2182_v18, %v10008_v37  ;;  %v1030_v7 = vperm.slane %v1022_v45, %v10008_v37  ;;  %v7105_v44 = vperm.slane %v2560_v48, %v5513_v8  ;;  %v7113_v61 = vperm.slane %v2660_v16, %v5513_v8  ;;  %v10016_v48 = vld [vmem:[#allocation29_spill] sm:$0xff] }
 0x2d5   : > { %10010 = vst [vmem:[#allocation60_spill] sm:$0xff] %v7083_v34  ;;  %v1400_v51 = vsel %vm585_vm5, %v6785_v33, %v4751_v39  ;;  %v1401_v47 = vrot.slane %v4751_v39, 4  ;;  %v10014_v33 = vunpack.i.l.bf16 %v6222_v20  ;;  %v1049_v45 = vrot.slane %v1042_v9, 4 }
 0x2d6   : > { %10012 = vst [vmem:[#allocation9_spill] sm:$0xff] %v7102_v19  ;;  %v7108_v42 = vperm.slane %v1400_v51, %v5513_v8  ;;  %v4973_v21 = vpack.i.bf16 %v7073_v29, %v7095_v49  ;;  %v4963_v57 = vpack.i.bf16 %v1042_v9, %v1030_v7  ;;  %v2586_v16 = vsel %vm585_vm5, %v7092_v43, %v10017_v4 }
 0x2d7   : > { %10013 = vst [vmem:[#allocation87_spill] sm:$0xff] %v7113_v61  ;;  %v1402_v18 = vsel %vm585_vm5, %v10014_v33, %v1401_v47  ;;  %v4747_v47 = vunpack.i.h.bf16 %v6780_v59  ;;  %v1045_v33 = vrot.slane %v1030_v7, 4  ;;  %v10022_v4 = vrot.slane %v6824_v41, 4 }
 0x2d8   : > { %10015 = vst [vmem:[#allocation88_spill] sm:$0xff] %v7119_v28  ;;  %v7123_v51 = vperm.slane %v1402_v18, %v5513_v8  ;;  %v1414_v9 = vsel %vm585_vm5, %v7108_v42, %v10018_v13  ;;  %v2594_v39 = vperm.slane %v2586_v16, %v10008_v37  ;;  %v1019_v16 = vrot.slane %v7022_v10, 4 }
 0x2d9   : > { %4974 = vrot.lane.b32.xlu2 %v4973_v21, %s5365_s15  ;;  %4964 = vrot.lane.b32.xlu1 %v4963_v57, %s5365_s15  ;;  %v10019_v21 = vld [vmem:[#allocation62_spill] sm:$0xff]  ;;  %v10023_v57 = vrot.slane %v6722_v63, 4  ;;  %v1065_v31 = vrot.slane %v4747_v47, 4  ;;  %v1046_v7 = vsel %vm585_vm5, 0.0, %v1045_v33  ;;  %v2209_v35 = vrot.slane %v7073_v29, 4 }
 0x2da   : > { %v7139_v61 = vpop.permute.xlu2 %4789  ;;  %v1426_v59 = vsel %vm585_vm5, %v7123_v51, %v10022_v4  ;;  %v1422_v4 = vperm.slane %v1414_v9, %v10008_v37  ;;  %v2191_v9 = vrot.slane %v6997_v1, 4  ;;  %v1032_v10 = vsel %vm585_vm5, %v1031_v52, %v6712_v25 }
 0x2db   : > { %10020 = vst [vmem:[#allocation29_spill] sm:$0xff] %v7139_v61  ;;  %v7141_v34 = vpop.permute.xlu0 %4799  ;;  %v2574_v0 = vsel %vm585_vm5, %v7105_v44, %v10023_v57  ;;  %v7153_v19 = vpop.permute.xlu1 %4804  ;;  %v1050_v61 = vsel %vm585_vm5, 0.0, %v1049_v45  ;;  %v1434_v2 = vperm.slane %v1426_v59, %v10008_v37  ;;  %v1064_v57 = vsel %vm585_vm5, %v6789_v58, %v4747_v47 }
 0x2dc   : > { %10021 = vst [vmem:[#allocation89_spill] sm:$0xff] %v7141_v34  ;;  %v2582_v18 = vperm.slane %v2574_v0, %v10008_v37  ;;  %v4983_v45 = vpack.i.bf16 %v1050_v61, %v1046_v7  ;;  %v2601_v59 = vrot.slane %v2594_v39, 4  ;;  %v2205_v58 = vrot.slane %v7095_v49, 4 }
 0x2dd   : > { %10025 = vst [vmem:[#allocation90_spill] sm:$0xff] %v7153_v19  ;;  %v4968_v19 = vpack.i.bf16 %v1434_v2, %v1422_v4  ;;  %v1441_v0 = vrot.slane %v1434_v2, 4  ;;  %v10026_v29 = vunpack.i.h.bf16 %v6224_v53  ;;  %v4762_v1 = vunpack.i.h.bf16 %v6860_v40 }
 0x2de   : > { %v4978_v13 = vpack.i.bf16 %v2594_v39, %v2582_v18  ;;  %v1437_v61 = vrot.slane %v1422_v4, 4  ;;  %v2597_v39 = vrot.slane %v2582_v18, 4  ;;  %v1411_v47 = vrot.slane %v7108_v42, 4  ;;  %v10029_v18 = vld [vmem:[#allocation71_spill] sm:$0xff] }
 0x2df   : > { %4969 = vrot.lane.b32.xlu0 %v4968_v19, %s5365_s15  ;;  %v1066_v30 = vsel %vm585_vm5, %v10026_v29, %v1065_v31  ;;  %v2571_v19 = vrot.slane %v7105_v44, 4  ;;  %v2210_v25 = vsel %vm585_vm5, 0.0, %v2209_v35  ;;  %v1020_v53 = vsel %vm585_vm5, %v1019_v16, %v6673_v56 }
 0x2e0   : > { %v2602_v31 = vsel %vm585_vm5, 0.0, %v2601_v59  ;;  %v7193_v49 = vperm.slane %v1032_v10, %v10008_v37  ;;  %v2180_v44 = vsel %vm585_vm5, %v2179_v24, %v6821_v27  ;;  %v2192_v42 = vsel %vm585_vm5, %v2191_v9, %v6801_v38 }
 0x2e1   : > { %4984 = vrot.lane.b32.xlu2 %v4983_v45, %s5366_s16  ;;  %4979 = vrot.lane.b32.xlu1 %v4978_v13, %s5365_s15  ;;  %v3316_v35 = vsel %vm585_vm5, %v10029_v18, %v9663_v55  ;;  %v1423_v56 = vrot.slane %v7123_v51, 4  ;;  %v2206_v7 = vsel %vm585_vm5, 0.0, %v2205_v58  ;;  %v1442_v13 = vsel %vm585_vm5, 0.0, %v1441_v0 }
 0x2e2   : > { %v7182_v33 = vpop.permute.xlu2 %4794  ;;  %10028 = vst [vmem:[#allocation92_spill] sm:$0xff] %v7193_v49  ;;  %v4993_v4 = vpack.i.bf16 %v2210_v25, %v2206_v7  ;;  %v1438_v16 = vsel %vm585_vm5, 0.0, %v1437_v61  ;;  %v2598_v45 = vsel %vm585_vm5, 0.0, %v2597_v39  ;;  %v7209_v27 = vperm.slane %v1020_v53, %v10008_v37 }
 0x2e3   : > { %10027 = vst [vmem:[#allocation91_spill] sm:$0xff] %v7182_v33  ;;  %v7184_v2 = vpop.permute.xlu0 %4809  ;;  %v7189_v52 = vpop.permute.xlu1 %3669  ;;  %v4998_v38 = vpack.i.bf16 %v2602_v31, %v2598_v45  ;;  %v7212_v24 = vperm.slane %v2180_v44, %v10008_v37  ;;  %v7215_v9 = vperm.slane %v2192_v42, %v10008_v37  ;;  %v1412_v51 = vsel %vm585_vm5, %v1411_v47, %v6844_v17 }
 0x2e4   : > { %10030 = vst [vmem:[#allocation71_spill] sm:$0xff] %v7209_v27  ;;  %v4767_v59 = vunpack.i.h.bf16 %v6930_v23  ;;  %v9662_v58 = vunpack.i.l.bf16 %v6987_v50  ;;  %v4988_v0 = vpack.i.bf16 %v1442_v13, %v1438_v16  ;;  %v1047_v10 = vrot.slane %v7193_v49, 4 }
 0x2e5   : > { %10031 = vst [vmem:[#allocation93_spill] sm:$0xff] %v7212_v24  ;;  %v7223_v29 = vperm.slane %v1064_v57, %v5513_v8  ;;  %v7226_v61 = vperm.slane %v3316_v35, %v5513_v8  ;;  %v4752_v39 = vunpack.i.h.bf16 %v7068_v5  ;;  %v2207_v17 = vrot.slane %v7215_v9, 4 }
 0x2e6   : > { %10032 = vst [vmem:[#allocation94_spill] sm:$0xff] %v7215_v9  ;;  %v2583_v23 = vrot.slane %v7092_v43, 4  ;;  %v1043_v47 = vrot.slane %v7209_v27, 4  ;;  %v7236_v57 = vperm.slane %v1412_v51, %v10008_v37  ;;  %v1424_v25 = vsel %vm585_vm5, %v1423_v56, %v6824_v41  ;;  %v10037_v41 = vld [vmem:[#allocation73_spill] sm:$0xff]  ;;  %v10065_v9 = vld [vmem:[#allocation22_spill] sm:$0xff] }
 0x2e7   : > { %4994 = vrot.lane.b32.xlu0 %v4993_v4, %s5366_s16  ;;  %v7241_v5 = vperm.slane %v1066_v30, %v5513_v8  ;;  %v2203_v44 = vrot.slane %v7212_v24, 4  ;;  %v7249_v43 = vperm.slane %v1424_v25, %v10008_v37  ;;  %v2572_v42 = vsel %vm585_vm5, %v2571_v19, %v6722_v63 }
 0x2e8   : > { %10033 = vst [vmem:[#allocation95_spill] sm:$0xff] %v7236_v57  ;;  %v2225_v18 = vrot.slane %v4762_v1, 4  ;;  %v2617_v35 = vrot.slane %v4767_v59, 4  ;;  %v3328_v30 = vsel %vm585_vm5, %v10037_v41, %v9662_v58  ;;  %v1048_v7 = vsel %vm585_vm5, 0.0, %v1047_v10 }
 0x2e9   : > { %4999 = vrot.lane.b32.xlu2 %v4998_v38, %s5366_s16  ;;  %4989 = vrot.lane.b32.xlu1 %v4988_v0, %s5366_s16  ;;  %10036 = vst [vmem:[#allocation98_spill] sm:$0xff] %v7249_v43  ;;  %v3341_v13 = vrot.slane %v7226_v61, 4  ;;  %v1457_v4 = vrot.slane %v4752_v39, 4  ;;  %v2208_v16 = vsel %vm585_vm5, 0.0, %v2207_v17  ;;  %v1435_v63 = vrot.slane %v7236_v57, 4 }
 0x2ea   : > { %v7243_v53 = vpop.permute.xlu2 %4824  ;;  %v1044_v19 = vsel %vm585_vm5, 0.0, %v1043_v47  ;;  %v1439_v45 = vrot.slane %v7249_v43, 4  ;;  %v7268_v38 = vperm.slane %v2572_v42, %v10008_v37  ;;  %v2584_v51 = vsel %vm585_vm5, %v2583_v23, %v6748_v62 }
 0x2eb   : > { %10034 = vst [vmem:[#allocation96_spill] sm:$0xff] %v7243_v53  ;;  %v7245_v31 = vpop.permute.xlu0 %4814  ;;  %v7259_v56 = vpop.permute.xlu1 %4819  ;;  %v5003_v0 = vpack.i.bf16 %v1048_v7, %v1044_v19  ;;  %v2204_v10 = vsel %vm585_vm5, 0.0, %v2203_v44  ;;  %v7274_v25 = vperm.slane %v2584_v51, %v10008_v37  ;;  %v7277_v17 = vperm.slane %v3328_v30, %v5513_v8  ;;  %v10042_v44 = vld [vmem:[#allocation68_spill] sm:$0xff]  ;;  %v10073_v53 = vld [vmem:[#allocation46_spill] sm:$0xff] }
 0x2ec   : > { %10035 = vst [vmem:[#allocation97_spill] sm:$0xff] %v7245_v31  ;;  %v5013_v41 = vpack.i.bf16 %v2208_v16, %v2204_v10  ;;  %v1436_v47 = vsel %vm585_vm5, 0.0, %v1435_v63  ;;  %v1440_v58 = vsel %vm585_vm5, 0.0, %v1439_v45  ;;  %v10041_v42 = vunpack.i.h.bf16 %v6222_v20  ;;  %v10046_v45 = vld [vmem:[#allocation65_spill] sm:$0xff] }
 0x2ed   : > { %10038 = vst [vmem:[#allocation73_spill] sm:$0xff] %v7259_v56  ;;  %v5008_v62 = vpack.i.bf16 %v1440_v58, %v1436_v47  ;;  %v2599_v23 = vrot.slane %v7274_v25, 4  ;;  %v10043_v7 = vrot.slane %v10042_v44, 4  ;;  %v10044_v16 = vunpack.i.h.bf16 %v6166_v14 }
 0x2ee   : > { %10039 = vst [vmem:[#allocation99_spill] sm:$0xff] %v7268_v38  ;;  %v1458_v55 = vsel %vm585_vm5, %v10041_v42, %v1457_v4  ;;  %v10045_v19 = vunpack.i.h.bf16 %v9946_v11  ;;  %v2595_v4 = vrot.slane %v7268_v38, 4  ;;  %v3342_v58 = vsel %vm585_vm5, %v7277_v17, %v3341_v13 }
 0x2ef   : > { %10040 = vst [vmem:[#allocation100_spill] sm:$0xff] %v7274_v25  ;;  %5004 = vrot.lane.b32.xlu0 %v5003_v0, %s5367_s17  ;;  %v1090_v30 = vsel %vm585_vm5, %v7241_v5, %v10043_v7  ;;  %v2226_v63 = vsel %vm585_vm5, %v10044_v16, %v2225_v18  ;;  %v2224_v51 = vsel %vm585_vm5, %v10046_v45, %v4762_v1  ;;  %v10047_v0 = vld [vmem:[#allocation35_spill] sm:$0xff]  ;;  %v4802_v16 = vunpack.i.h.bf16 %v7141_v34  ;;  %v10054_v45 = vld [vmem:[#allocation48_spill] sm:$0xff]  ;;  %v10075_v34 = vld [vmem:[#allocation34_spill] sm:$0xff] }
 0x2f0   : > { %v2618_v20 = vsel %vm585_vm5, %v10045_v19, %v2617_v35  ;;  %v2616_v14 = vsel %vm585_vm5, %v10047_v0, %v4767_v59  ;;  %v10048_v18 = vld [vmem:[#allocation75_spill] sm:$0xff]  ;;  %v7318_v13 = vperm.slane %v1458_v55, %v5513_v8  ;;  %v7325_v42 = vperm.slane %v1090_v30, %v10008_v37 }
 0x2f1   : > { %5014 = vrot.lane.b32.xlu1 %v5013_v41, %s5367_s17  ;;  %v1456_v11 = vsel %vm585_vm5, %v10048_v18, %v4752_v39  ;;  %5009 = vrot.lane.b32.xlu2 %v5008_v62, %s5367_s17  ;;  %v10051_v41 = vld [vmem:[#allocation66_spill] sm:$0xff]  ;;  %v2600_v39 = vsel %vm585_vm5, 0.0, %v2599_v23  ;;  %v7328_v62 = vperm.slane %v2226_v63, %v5513_v8  ;;  %v7331_v7 = vperm.slane %v2618_v20, %v5513_v8 }
 0x2f2   : > { %v7309_v35 = vpop.permute.xlu2 %4834  ;;  %v10052_v47 = vrot.slane %v10051_v41, 4  ;;  %v7335_v55 = vperm.slane %v3342_v58, %v10008_v37  ;;  %v7338_v19 = vperm.slane %v1456_v11, %v5513_v8  ;;  %v2596_v30 = vsel %vm585_vm5, 0.0, %v2595_v4 }
 0x2f3   : > { %10049 = vst [vmem:[#allocation68_spill] sm:$0xff] %v7309_v35  ;;  %v7311_v10 = vpop.permute.xlu0 %4839  ;;  %v4837_v1 = vunpack.i.h.bf16 %v7309_v35  ;;  %v7321_v59 = vpop.permute.xlu1 %4829  ;;  %v7347_v63 = vperm.slane %v2224_v51, %v5513_v8  ;;  %v7350_v20 = vperm.slane %v2616_v14, %v5513_v8  ;;  %v5018_v18 = vpack.i.bf16 %v2600_v39, %v2596_v30  ;;  %v10059_v14 = vld [vmem:[#allocation59_spill] sm:$0xff]  ;;  %v10061_v30 = vld [vmem:[#allocation32_spill] sm:$0xff] }
 0x2f4   : > { %10050 = vst [vmem:[#allocation65_spill] sm:$0xff] %v7311_v10  ;;  %v1078_v40 = vsel %vm585_vm5, %v7223_v29, %v10052_v47  ;;  %v4736_v11 = vunpack.i.l.bf16 %v6708_v26  ;;  %v10056_v47 = vld [vmem:[#allocation72_spill] sm:$0xff]  ;;  %v10060_v39 = vrot.slane %v6733_v22, 4  ;;  %v10062_v24 = vrot.slane %v10061_v30, 4 }
 0x2f5   : > { %10053 = vst [vmem:[#allocation35_spill] sm:$0xff] %v7321_v59  ;;  %v2076_v23 = vsel %vm905_vm6, %v10054_v45, %v4837_v1  ;;  %v7344_v0 = vperm.slane %v1078_v40, %v10008_v37  ;;  %v4707_v38 = vunpack.i.h.bf16 %v10056_v47  ;;  %v10057_v1 = vld [vmem:[#allocation33_spill] sm:$0xff]  ;;  %v3721_v45 = vrot.slane %v6942_v32, 4 }
 0x2f6   : > { %v7353_v58 = vsel %vm351_vm1, %v2076_v23, %v4802_v16  ;;  %v10058_v40 = vrot.slane %v10057_v1, 4  ;;  %v5023_v16 = vpack.i.bf16 %v7335_v55, %v10059_v14  ;;  %v2642_v23 = vsel %vm585_vm5, %v7331_v7, %v10060_v39  ;;  %v10067_v39 = vld [vmem:[#allocation50_spill] sm:$0xff] }
 0x2f7   : > { %10055 = vst [vmem:[#allocation75_spill] sm:$0xff] %v7353_v58  ;;  %v5028_v4 = vpack.i.bf16 %v7325_v42, %v7344_v0  ;;  %5019 = vrot.lane.b32.xlu0 %v5018_v18, %s5367_s17  ;;  %v2250_v27 = vsel %vm585_vm5, %v7328_v62, %v10062_v24  ;;  %v10064_v18 = vrot.slane %v6841_v36, 4  ;;  %v10066_v49 = vrot.slane %v10065_v9, 4  ;;  %v10070_v58 = vld [vmem:[#allocation69_spill] sm:$0xff] }
 0x2f8   : > { %v1482_v51 = vsel %vm585_vm5, %v7318_v13, %v10058_v40  ;;  %v10063_v40 = vunpack.i.h.bf16 %v10019_v21  ;;  %v10068_v32 = vunpack.i.h.bf16 %v6708_v26  ;;  %v10071_v56 = vrot.slane %v10070_v58, 4 }
 0x2f9   : > { %5029 = vrot.lane.b32.xlu1 %v5028_v4, %s5365_s15  ;;  %v1470_v14 = vsel %vm585_vm5, %v7338_v19, %v10064_v18  ;;  %v3102_v43 = vsel %vm585_vm5, %v10067_v39, %v10066_v49  ;;  %5024 = vrot.lane.b32.xlu2 %v5023_v16, %s5365_s15  ;;  %v7395_v4 = vperm.slane %v1482_v51, %v10008_v37  ;;  %v10072_v9 = vrot.slane %v6810_v54, 4 }
 0x2fa   : > { %v3427_v25 = vrot.slane %v10063_v40, 4  ;;  %v3483_v24 = vrot.slane %v10068_v32, 4  ;;  %v7390_v57 = vpop.permute.xlu2 %4844  ;;  %v2630_v18 = vsel %vm585_vm5, %v7350_v20, %v10071_v56  ;;  %v1567_v32 = vrot.slane %v4707_v38, 4 }
 0x2fb   : > { %10069 = vst [vmem:[#allocation66_spill] sm:$0xff] %v7390_v57  ;;  %v7392_v40 = vpop.permute.xlu0 %4854  ;;  %v2238_v49 = vsel %vm585_vm5, %v7347_v63, %v10072_v9  ;;  %v7406_v39 = vpop.permute.xlu1 %4849  ;;  %v7409_v57 = vperm.slane %v2642_v23, %v10008_v37  ;;  %v2258_v51 = vperm.slane %v2250_v27, %v10008_v37  ;;  %v3485_v31 = vrot.slane %v4736_v11, 4 }
 0x2fc   : > { %v4857_v16 = vunpack.i.h.bf16 %v7392_v40  ;;  %v3722_v59 = vsel %vm585_vm5, %v10073_v53, %v3721_v45  ;;  %v4852_v56 = vunpack.i.h.bf16 %v7406_v39  ;;  %v7416_v10 = vperm.slane %v1470_v14, %v10008_v37 }
 0x2fd   : > { %v7422_v33 = vperm.slane %v2630_v18, %v10008_v37  ;;  %v2246_v23 = vperm.slane %v2238_v49, %v10008_v37  ;;  %v4712_v27 = vunpack.i.h.bf16 %v10075_v34  ;;  %v10077_v53 = vunpack.i.h.bf16 %v10016_v48 }
 0x2fe   : > { %v1569_v9 = vrot.slane %v4857_v16, 4  ;;  %v7419_v35 = vsel %vm585_vm5, %v1567_v32, %v4857_v16  ;;  %v7428_v28 = vsel %vm585_vm5, %v6991_v6, %v4852_v56  ;;  %v1177_v45 = vrot.slane %v4852_v56, 4 }
 0x2ff   : > { %10074 = vst [vmem:[#allocation48_spill] sm:$0xff] %v7419_v35  ;;  %v5033_v14 = vpack.i.bf16 %v7395_v4, %v7416_v10  ;;  %v2727_v1 = vrot.slane %v10077_v53, 4  ;;  %v5043_v18 = vpack.i.bf16 %v7409_v57, %v7422_v33  ;;  %v2265_v49 = vrot.slane %v2258_v51, 4 }
 0x300   : > { %10076 = vst [vmem:[#allocation72_spill] sm:$0xff] %v7428_v28  ;;  %v7435_v32 = vsel %vm585_vm5, %v4707_v38, %v1569_v9  ;;  %v10079_v16 = vunpack.i.l.bf16 %v10016_v48  ;;  %v10080_v6 = vunpack.i.l.bf16 %v10019_v21  ;;  %v7447_v28 = vperm.slane %v3722_v59, %v5513_v8  ;;  %v10081_v9 = vld [vmem:[#allocation31_spill] sm:$0xff] }
 0x301   : > { %10078 = vst [vmem:[#allocation59_spill] sm:$0xff] %v7435_v32  ;;  %5034 = vrot.lane.b32.xlu0 %v5033_v14, %s5365_s15  ;;  %v5038_v53 = vpack.i.bf16 %v2258_v51, %v2246_v23  ;;  %v3484_v38 = vsel %vm585_vm5, %v3483_v24, %v4736_v11  ;;  %v3819_v32 = vrot.slane %v10081_v9, 4  ;;  %v10082_v36 = vunpack.i.h.bf16 %v6485_v12  ;;  %5044 = vrot.lane.b32.xlu1 %v5043_v18, %s5365_s15 }
 0x302   : > { %v7441_v35 = vrot.slane %v10079_v16, 4  ;;  %v3428_v56 = vsel %vm585_vm5, %v3427_v25, %v10080_v6  ;;  %v2261_v16 = vrot.slane %v2246_v23, 4  ;;  %v10084_v25 = vmov %v10080_v6 }
 0x303   : > { %v7455_v30 = vsel %vm585_vm5, %v10082_v36, %v1177_v45  ;;  %v7460_v6 = vrot.slane %v10084_v25, 4  ;;  %v10086_v59 = vunpack.i.h.bf16 %v6708_v26  ;;  %v10087_v11 = vrot.slane %v9998_v46, 4  ;;  %5039 = vrot.lane.b32.xlu2 %v5038_v53, %s5365_s15  ;;  %v7470_v36 = vpop.permute.xlu2 %4864  ;;  %v7472_v45 = vpop.permute.xlu0 %4859 }
 0x304   : > { %10083 = vst [vmem:[#allocation69_spill] sm:$0xff] %v7455_v30  ;;  %v2323_v14 = vrot.slane %v4712_v27, 4  ;;  %v7475_v23 = vperm.slane %v3428_v56, %v5513_v8  ;;  %v4711_v18 = vunpack.i.l.bf16 %v10075_v34  ;;  %v7478_v26 = vpop.permute.xlu1 %4869  ;;  %v7482_v25 = vperm.slane %v3102_v43, %v10008_v37 }
 0x305   : > { %10085 = vst [vmem:[#allocation34_spill] sm:$0xff] %v7460_v6  ;;  %v3486_v51 = vsel %vm585_vm5, %v10086_v59, %v3485_v31  ;;  %v3822_v24 = vsel %vm585_vm5, %v10081_v9, %v10087_v11  ;;  %v2266_v31 = vsel %vm585_vm5, 0.0, %v2265_v49  ;;  %v7485_v9 = vperm.slane %v3484_v38, %v5513_v8  ;;  %v10089_v59 = vld [vmem:[#allocation74_spill] sm:$0xff] }
 0x306   : > { %10088 = vst [vmem:[#allocation31_spill] sm:$0xff] %v7482_v25  ;;  %v10090_v11 = vrot.slane %v10089_v59, 4  ;;  %v3365_v21 = vrot.slane %v7335_v55, 4  ;;  %v7494_v34 = vperm.slane %v3486_v51, %v5513_v8  ;;  %v3820_v49 = vsel %vm585_vm5, %v3819_v32, %v9998_v46 }
 0x307   : > { %v7499_v43 = vperm.slane %v3822_v24, %v5513_v8  ;;  %v2262_v38 = vsel %vm585_vm5, 0.0, %v2261_v16  ;;  %v10093_v53 = vunpack.i.h.bf16 %v9962_v3  ;;  %v4872_v55 = vunpack.i.h.bf16 %v7478_v26  ;;  %v10094_v24 = vld [vmem:[#allocation70_spill] sm:$0xff] }
 0x308   : > { %v3746_v56 = vsel %vm585_vm5, %v7447_v28, %v10090_v11  ;;  %10091 = vst [vmem:[#allocation101_spill] sm:$0xff] %v7494_v34  ;;  %v2326_v11 = vsel %vm585_vm5, %v4712_v27, %v6919_v60  ;;  %v5063_v6 = vpack.i.bf16 %v2266_v31, %v2262_v38  ;;  %v1075_v30 = vrot.slane %v7223_v29, 4 }
 0x309   : > { %10092 = vst [vmem:[#allocation102_spill] sm:$0xff] %v7499_v43  ;;  %v2324_v25 = vsel %vm585_vm5, %v2323_v14, %v10093_v53  ;;  %v2267_v46 = vrot.slane %v4711_v18, 4  ;;  %v7511_v32 = vperm.slane %v3746_v56, %v10008_v37  ;;  %v7515_v59 = vperm.slane %v3820_v49, %v5513_v8 }
 0x30a   : > { %v1087_v14 = vrot.slane %v7241_v5, 4  ;;  %5064 = vrot.lane.b32.xlu0 %v5063_v6, %s5366_s16  ;;  %v3366_v60 = vsel %vm585_vm5, 0.0, %v3365_v21  ;;  %v7521_v27 = vperm.slane %v2324_v25, %v5513_v8  ;;  %v7524_v29 = vperm.slane %v2326_v11, %v5513_v8  ;;  %v10102_v5 = vld [vmem:[#allocation64_spill] sm:$0xff] }
 0x30b   : > { %10095 = vst [vmem:[#allocation70_spill] sm:$0xff] %v7515_v59  ;;  %v7527_v31 = vsel %vm585_vm5, %v2727_v1, %v4872_v55  ;;  %v2729_v53 = vrot.slane %v4872_v55, 4  ;;  %3948 = vrot.lane.b32.xlu1 %v7511_v32, %s5365_s15  ;;  %v10098_v6 = vunpack.i.l.bf16 %v10056_v47  ;;  %v7538_v49 = vpop.permute.xlu2 %4899  ;;  %v7540_v38 = vpop.permute.xlu0 %4879  ;;  %v10100_v1 = vunpack.i.l.bf16 %v9962_v3  ;;  %v10104_v3 = vld [vmem:[#allocation27_spill] sm:$0xff] }
 0x30c   : > { %10096 = vst [vmem:[#allocation103_spill] sm:$0xff] %v7521_v27  ;;  %v10101_v55 = vunpack.i.h.bf16 %v10016_v48  ;;  %v5048_v56 = vpack.i.bf16 %v3366_v60, %v10102_v5  ;;  %v7551_v16 = vpop.permute.xlu1 %4874  ;;  %v10111_v5 = vunpack.i.l.bf16 %v6987_v50  ;;  %v10193_v60 = vld [vmem:[#allocation39_spill] sm:$0xff] }
 0x30d   : > { %10097 = vst [vmem:[#allocation104_spill] sm:$0xff] %v7524_v29  ;;  %v7535_v21 = vrot.slane %v10098_v6, 4  ;;  %v2268_v11 = vsel %vm585_vm5, %v2267_v46, %v10100_v1  ;;  %v1076_v6 = vsel %vm585_vm5, %v1075_v30, %v10051_v41  ;;  %v1088_v46 = vsel %vm585_vm5, %v1087_v14, %v10042_v44 }
 0x30e   : > { %10099 = vst [vmem:[#allocation105_spill] sm:$0xff] %v7538_v49  ;;  %v7548_v51 = vsel %vm585_vm5, %v10101_v55, %v2729_v53  ;;  %v2270_v49 = vsel %vm585_vm5, %v4711_v18, %v6923_v15  ;;  %v10106_v55 = vunpack.i.h.bf16 %v6987_v50  ;;  %5049 = vrot.lane.b32.xlu2 %v5048_v56, %s5366_s16  ;;  %v7568_v41 = vperm.slane %v2268_v11, %v5513_v8  ;;  %v10109_v53 = vld [vmem:[#allocation41_spill] sm:$0xff] }
 0x30f   : > { %10103 = vst [vmem:[#allocation64_spill] sm:$0xff] %v7551_v16  ;;  %v2627_v15 = vrot.slane %v7350_v20, 4  ;;  %v7572_v30 = vperm.slane %v1076_v6, %v10008_v37  ;;  %v1493_v44 = vrot.slane %v7416_v10, 4  ;;  %v7576_v18 = vperm.slane %v2270_v49, %v5513_v8 }
 0x310   : > { %v3317_v16 = vrot.slane %v10106_v55, 4  ;;  %v2639_v1 = vrot.slane %v7331_v7, 4  ;;  %v7581_v55 = vperm.slane %v1088_v46, %v10008_v37  ;;  %v1497_v11 = vrot.slane %v7395_v4, 4 }
 0x311   : > { %10107 = vst [vmem:[#allocation27_spill] sm:$0xff] %v7572_v30  ;;  %v1099_v56 = vrot.slane %v7572_v30, 4  ;;  %v1101_v20 = vrot.slane %v7344_v0, 4  ;;  %v1105_v6 = vrot.slane %v7325_v42, 4  ;;  %v10110_v10 = vunpack.i.h.bf16 %v10109_v53 }
 0x312   : > { %10108 = vst [vmem:[#allocation106_spill] sm:$0xff] %v7581_v55  ;;  %v3329_v14 = vrot.slane %v10111_v5, 4  ;;  %v4856_v7 = vunpack.i.l.bf16 %v7392_v40  ;;  %v1103_v46 = vrot.slane %v7581_v55, 4  ;;  %v1494_v25 = vsel %vm585_vm5, 0.0, %v1493_v44 }
 0x313   : > { %v3318_v49 = vsel %vm585_vm5, %v10110_v10, %v3317_v16  ;;  %v1100_v34 = vsel %vm585_vm5, 0.0, %v1099_v56  ;;  %v1498_v4 = vsel %vm585_vm5, 0.0, %v1497_v11  ;;  %v7597_v0 = vpop.permute.xlu2 %4909  ;;  %v2628_v42 = vsel %vm585_vm5, %v2627_v15, %v10070_v58  ;;  %v7604_v5 = vpop.permute.xlu0 %4884  ;;  %v10112_v56 = vld [vmem:[#allocation77_spill] sm:$0xff] }
 0x314   : > { %v1104_v16 = vsel %vm585_vm5, 0.0, %v1103_v46  ;;  %v5058_v10 = vpack.i.bf16 %v1498_v4, %v1494_v25  ;;  %v1102_v50 = vsel %vm585_vm5, 0.0, %v1101_v20  ;;  %v1106_v40 = vsel %vm585_vm5, 0.0, %v1105_v6  ;;  %v7606_v30 = vpop.permute.xlu1 %3671  ;;  %v10116_v4 = vld [vmem:[#allocation63_spill] sm:$0xff] }
 0x315   : > { %v3875_v11 = vrot.slane %v10112_v56, 4  ;;  %v5078_v55 = vpack.i.bf16 %v1104_v16, %v1100_v34  ;;  %v5053_v29 = vpack.i.bf16 %v1106_v40, %v1102_v50  ;;  %v7612_v58 = vperm.slane %v3318_v49, %v5513_v8 }
 0x316   : > { %v10113_v25 = vunpack.i.l.bf16 %v10109_v53  ;;  %v3339_v20 = vrot.slane %v7277_v17, 4  ;;  %5059 = vrot.lane.b32.xlu1 %v5058_v10, %s5366_s16  ;;  %v1513_v6 = vrot.slane %v4856_v7, 4  ;;  %v10114_v34 = vrot.slane %v10094_v24, 4 }
 0x317   : > { %5079 = vrot.lane.b32.xlu0 %v5078_v55, %s5367_s17  ;;  %5054 = vrot.lane.b32.xlu2 %v5053_v29, %s5366_s16  ;;  %v7626_v49 = vperm.slane %v2628_v42, %v10008_v37  ;;  %v2640_v53 = vsel %vm585_vm5, %v2639_v1, %v6733_v22  ;;  %v2235_v17 = vrot.slane %v7347_v63, 4  ;;  %v10117_v16 = vrot.slane %v10116_v4, 4 }
 0x318   : > { %v3330_v15 = vsel %vm585_vm5, %v10113_v25, %v3329_v14  ;;  %v3832_v46 = vsel %vm585_vm5, %v10114_v34, %v7606_v30  ;;  %v2247_v14 = vrot.slane %v7328_v62, 4  ;;  %v9697_v55 = vunpack.i.h.bf16 %v7184_v2 }
 0x319   : > { %10115 = vst [vmem:[#allocation41_spill] sm:$0xff] %v7626_v49  ;;  %v7636_v29 = vsel %vm585_vm5, %v10112_v56, %v10117_v16  ;;  %v7641_v10 = vsel %vm585_vm5, %v3875_v11, %v10116_v4  ;;  %v7644_v42 = vperm.slane %v3330_v15, %v5513_v8  ;;  %v7647_v22 = vperm.slane %v3832_v46, %v5513_v8 }
 0x31a   : > { %v7650_v62 = vperm.slane %v2640_v53, %v10008_v37  ;;  %v1512_v1 = vsel %vm585_vm5, %v7535_v21, %v4856_v7  ;;  %v2651_v50 = vrot.slane %v7626_v49, 4  ;;  %v3340_v40 = vsel %vm585_vm5, %v3339_v20, %v7226_v61 }
 0x31b   : > { %10118 = vst [vmem:[#allocation77_spill] sm:$0xff] %v7647_v22  ;;  %v9700_v11 = vunpack.i.l.bf16 %v7184_v2  ;;  %v10120_v25 = vunpack.i.l.bf16 %v10056_v47  ;;  %v10121_v34 = vrot.slane %v7515_v59, 4  ;;  %v7669_v21 = vpop.permute.xlu2 %4919  ;;  %v3383_v7 = vrot.slane %v9697_v55, 4  ;;  %v7692_v44 = vpop.permute.xlu0 %4889 }
 0x31c   : > { %10119 = vst [vmem:[#allocation63_spill] sm:$0xff] %v7650_v62  ;;  %v3777_v61 = vrot.slane %v7189_v52, 4  ;;  %v2655_v20 = vrot.slane %v7650_v62, 4  ;;  %v7676_v53 = vperm.slane %v3340_v40, %v10008_v37  ;;  %v7678_v47 = vpop.permute.xlu1 %3673  ;;  %v4851_v4 = vunpack.i.l.bf16 %v7406_v39 }
 0x31d   : > { %v1514_v15 = vsel %vm585_vm5, %v10120_v25, %v1513_v6  ;;  %v7667_v46 = vsel %vm585_vm5, %v7647_v22, %v10121_v34  ;;  %10123 = vst [vmem:[#allocation108_spill] sm:$0xff] %v7669_v21  ;;  %v7681_v6 = vperm.slane %v1512_v1, %v5513_v8  ;;  %v2653_v16 = vrot.slane %v7422_v33, 4 }
 0x31e   : > { %10122 = vst [vmem:[#allocation107_spill] sm:$0xff] %v7667_v46  ;;  %v2657_v25 = vrot.slane %v7409_v57, 4  ;;  %v7687_v34 = vperm.slane %v1514_v15, %v5513_v8  ;;  %v2652_v55 = vsel %vm585_vm5, 0.0, %v2651_v50  ;;  %v2656_v27 = vsel %vm585_vm5, 0.0, %v2655_v20  ;;  %v10128_v15 = vld [vmem:[#allocation11_spill] sm:$0xff]  ;;  %v10145_v46 = vld [vmem:[#allocation36_spill] sm:$0xff] }
 0x31f   : > { %10124 = vst [vmem:[#allocation109_spill] sm:$0xff] %v7676_v53  ;;  %v3363_v40 = vrot.slane %v7676_v53, 4  ;;  %v5093_v56 = vpack.i.bf16 %v2656_v27, %v2652_v55  ;;  %v2654_v39 = vsel %vm585_vm5, 0.0, %v2653_v16  ;;  %v3384_v57 = vsel %vm585_vm5, %v3383_v7, %v9700_v11  ;;  %v10129_v27 = vld [vmem:[#allocation67_spill] sm:$0xff]  ;;  %v10130_v16 = vld [vmem:[#allocation86_spill] sm:$0xff] }
 0x320   : > { %10125 = vst [vmem:[#allocation110_spill] sm:$0xff] %v7681_v6  ;;  %v2658_v33 = vsel %vm585_vm5, 0.0, %v2657_v25  ;;  %v3778_v50 = vsel %vm585_vm5, %v10128_v15, %v3777_v61  ;;  %v1121_v53 = vrot.slane %v4851_v4, 4  ;;  %v4912_v21 = vunpack.i.h.bf16 %v7597_v0  ;;  %v10132_v61 = vld [vmem:[#allocation81_spill] sm:$0xff] }
 0x321   : > { %10126 = vst [vmem:[#allocation111_spill] sm:$0xff] %v7687_v34  ;;  %v3364_v20 = vsel %vm585_vm5, 0.0, %v3363_v40  ;;  %v5068_v63 = vpack.i.bf16 %v2658_v33, %v2654_v39  ;;  %v4911_v1 = vunpack.i.l.bf16 %v7597_v0  ;;  %5094 = vrot.lane.b32.xlu0 %v5093_v56, %s5367_s17  ;;  %v10131_v25 = vrot.slane %v10130_v16, 4  ;;  %v10134_v0 = vld [vmem:[#allocation32_spill] sm:$0xff] }
 0x322   : > { %10127 = vst [vmem:[#allocation112_spill] sm:$0xff] %v7692_v44  ;;  %v5073_v55 = vpack.i.bf16 %v3364_v20, %v10129_v27  ;;  %v10133_v11 = vrot.slane %v10132_v61, 4  ;;  %v2236_v39 = vsel %vm585_vm5, %v2235_v17, %v6810_v54  ;;  %v2248_v56 = vsel %vm585_vm5, %v2247_v14, %v10134_v0  ;;  %v10181_v61 = vld [vmem:[#allocation29_spill] sm:$0xff] }
 0x323   : > { %5069 = vrot.lane.b32.xlu2 %v5068_v63, %s5366_s16  ;;  %v1526_v7 = vsel %vm585_vm5, %v7681_v6, %v10131_v25  ;;  %v7721_v33 = vperm.slane %v3384_v57, %v5513_v8  ;;  %v7724_v63 = vperm.slane %v3778_v50, %v5513_v8  ;;  %v4866_v20 = vunpack.i.l.bf16 %v7470_v36  ;;  %v10136_v25 = vld [vmem:[#allocation37_spill] sm:$0xff] }
 0x324   : > { %v1538_v40 = vsel %vm585_vm5, %v7687_v34, %v10133_v11  ;;  %5074 = vrot.lane.b32.xlu1 %v5073_v55, %s5367_s17  ;;  %v7731_v11 = vpop.permute.xlu2 %4944  ;;  %v1120_v54 = vsel %vm585_vm5, %v10136_v25, %v4851_v4  ;;  %v4871_v17 = vunpack.i.l.bf16 %v7478_v26  ;;  %v7737_v14 = vperm.slane %v2236_v39, %v10008_v37  ;;  %v4895_v50 = vpop.permute.xlu1 %4894  ;;  %v10140_v25 = vld [vmem:[#allocation25_spill] sm:$0xff]  ;;  %v10141_v39 = vld [vmem:[#allocation51_spill] sm:$0xff]  ;;  %v10189_v34 = vld [vmem:[#allocation38_spill] sm:$0xff] }
 0x325   : > { %v7729_v27 = vperm.slane %v1538_v40, %v10008_v37  ;;  %10135 = vst [vmem:[#allocation11_spill] sm:$0xff] %v7731_v11  ;;  %v7740_v57 = vperm.slane %v2248_v56, %v10008_v37  ;;  %v10139_v0 = vunpack.i.l.bf16 %v6485_v12  ;;  %v4862_v40 = vunpack.i.h.bf16 %v7472_v45  ;;  %v10142_v12 = vld [vmem:[#allocation84_spill] sm:$0xff] }
 0x326   : > { %10137 = vst [vmem:[#allocation67_spill] sm:$0xff] %v7737_v14  ;;  %v7747_v11 = vperm.slane %v1526_v7, %v10008_v37  ;;  %v3761_v4 = vrot.slane %v7511_v32, 4  ;;  %v2082_v26 = vsel %vm905_vm6, %v10140_v25, %v4912_v21  ;;  %v2079_v49 = vsel %vm905_vm6, %v10141_v39, %v4911_v1  ;;  %v7764_v25 = vpop.permute.xlu0 %4914 }
 0x327   : > { %10138 = vst [vmem:[#allocation32_spill] sm:$0xff] %v7740_v57  ;;  %v1122_v55 = vsel %vm585_vm5, %v10139_v0, %v1121_v53  ;;  %v2259_v56 = vrot.slane %v7737_v14, 4  ;;  %v2263_v62 = vrot.slane %v7740_v57, 4  ;;  %v2280_v53 = vsel %vm585_vm5, %v10142_v12, %v4866_v20  ;;  %v10144_v14 = vld [vmem:[#allocation78_spill] sm:$0xff] }
 0x328   : > { %v2281_v0 = vrot.slane %v4866_v20, 4  ;;  %v4861_v44 = vunpack.i.l.bf16 %v7472_v45  ;;  %v5108_v7 = vpack.i.bf16 %v7729_v27, %v7747_v11  ;;  %v2673_v32 = vrot.slane %v4871_v17, 4  ;;  %10143 = vst [vmem:[#allocation37_spill] sm:$0xff] %v7764_v25 }
 0x329   : > { %v2260_v59 = vsel %vm585_vm5, 0.0, %v2259_v56  ;;  %v2264_v21 = vsel %vm585_vm5, 0.0, %v2263_v62  ;;  %v3762_v1 = vsel %vm585_vm5, 0.0, %v3761_v4  ;;  %v2083_v20 = vsel %vm351_vm1, %v2082_v26, %v4862_v40 }
 0x32a   : > { %5109 = vrot.lane.b32.xlu0 %v5108_v7, %s5365_s15  ;;  %v5088_v39 = vpack.i.bf16 %v2264_v21, %v2260_v59  ;;  %v2080_v12 = vsel %vm351_vm1, %v2079_v49, %v4861_v44  ;;  %v4897_v45 = vunpack.i.h.bf16 %v4895_v50  ;;  %v4896_v57 = vunpack.i.l.bf16 %v4895_v50  ;;  %v10149_v50 = vld [vmem:[#allocation15_spill] sm:$0xff] }
 0x32b   : > { %3952 = vrot.lane.b32.xlu2 %v3762_v1, %s5366_s16  ;;  %v3801_v56 = vrot.slane %v10144_v14, 4  ;;  %v10146_v62 = vrot.slane %v10145_v46, 4  ;;  %v10148_v44 = vrot.slane %v7612_v58, 4  ;;  %v10150_v26 = vrot.slane %v7338_v19, 4 }
 0x32c   : > { %5089 = vrot.lane.b32.xlu1 %v5088_v39, %s5367_s17  ;;  %v7777_v59 = vsel %vm908_vm7, %v2083_v20, %v4897_v45  ;;  %v4955_v21 = vpop.permute.xlu2 %4954  ;;  %v7789_v1 = vsel %vm908_vm7, %v2080_v12, %v4896_v57  ;;  %v10153_v45 = vld [vmem:[#allocation33_spill] sm:$0xff]  ;;  %v7804_v19 = vperm.slane %v7641_v10, %v5513_v8  ;;  %v7808_v57 = vperm.slane %v7636_v29, %v5513_v8 }
 0x32d   : > { %v3398_v4 = vsel %vm585_vm5, %v7721_v33, %v10146_v62  ;;  %10147 = vst [vmem:[#allocation25_spill] sm:$0xff] %v7777_v59  ;;  %v3354_v49 = vsel %vm585_vm5, %v7644_v42, %v10148_v44  ;;  %v1468_v7 = vsel %vm585_vm5, %v10150_v26, %v10149_v50  ;;  %v3802_v39 = vsel %vm585_vm5, %v7724_v63, %v3801_v56  ;;  %v7800_v44 = vpop.permute.xlu1 %4904 }
 0x32e   : > { %v3406_v40 = vperm.slane %v3398_v4, %v10008_v37  ;;  %10151 = vst [vmem:[#allocation51_spill] sm:$0xff] %v7789_v1  ;;  %v7794_v20 = vperm.slane %v1468_v7, %v10008_v37  ;;  %v10154_v62 = vrot.slane %v7318_v13, 4  ;;  %v3743_v12 = vrot.slane %v7447_v28, 4 }
 0x32f   : > { %10155 = vst [vmem:[#allocation78_spill] sm:$0xff] %v7800_v44  ;;  %v7816_v13 = vperm.slane %v1122_v55, %v5513_v8  ;;  %v3362_v26 = vperm.slane %v3354_v49, %v10008_v37  ;;  %v7821_v10 = vperm.slane %v1120_v54, %v5513_v8  ;;  %v7824_v29 = vperm.slane %v2280_v53, %v5513_v8  ;;  %v4925_v44 = vpop.permute.xlu0 %4924 }
 0x330   : > { %10152 = vst [vmem:[#allocation84_spill] sm:$0xff] %v7794_v20  ;;  %v1480_v4 = vsel %vm585_vm5, %v10154_v62, %v10153_v45  ;;  %v1491_v7 = vrot.slane %v7794_v20, 4  ;;  %v7827_v28 = vperm.slane %v3802_v39, %v10008_v37  ;;  %v10160_v62 = vld [vmem:[#allocation21_spill] sm:$0xff]  ;;  %v2672_v49 = vsel %vm585_vm5, %v7441_v35, %v4871_v17 }
 0x331   : > { %10156 = vst [vmem:[#allocation36_spill] sm:$0xff] %v7804_v19  ;;  %v7812_v56 = vperm.slane %v1480_v4, %v10008_v37  ;;  %v10161_v4 = vunpack.i.l.bf16 %v10160_v62  ;;  %v10162_v50 = vunpack.i.l.bf16 %v10016_v48  ;;  %v3421_v59 = vrot.slane %v3406_v40, 4  ;;  %v10164_v35 = vld [vmem:[#allocation45_spill] sm:$0xff] }
 0x332   : > { %10157 = vst [vmem:[#allocation15_spill] sm:$0xff] %v7808_v57  ;;  %3972 = vrot.lane.b32.xlu0 %v7827_v28, %s5365_s15  ;;  %v5098_v53 = vpack.i.bf16 %v3406_v40, %v3362_v26  ;;  %v1492_v39 = vsel %vm585_vm5, 0.0, %v1491_v7  ;;  %v10165_v17 = vrot.slane %v10164_v35, 4  ;;  %v4792_v19 = vunpack.i.h.bf16 %v10181_v61 }
 0x333   : > { %10158 = vst [vmem:[#allocation33_spill] sm:$0xff] %v7812_v56  ;;  %v1495_v45 = vrot.slane %v7812_v56, 4  ;;  %v2282_v55 = vsel %vm585_vm5, %v10161_v4, %v2281_v0  ;;  %v2674_v54 = vsel %vm585_vm5, %v10162_v50, %v2673_v32  ;;  %v4956_v56 = vunpack.i.l.bf16 %v4955_v21  ;;  %v10163_v4 = vld [vmem:[#allocation80_spill] sm:$0xff] }
 0x334   : > { %10159 = vst [vmem:[#allocation113_spill] sm:$0xff] %v7827_v28  ;;  %v3369_v0 = vrot.slane %v3362_v26, 4  ;;  %v1133_v25 = vrot.slane %v10163_v4, 4  ;;  %v1146_v48 = vsel %vm585_vm5, %v7816_v13, %v10165_v17  ;;  %v10166_v32 = vrot.slane %v10128_v15, 4  ;;  %5099 = vrot.lane.b32.xlu1 %v5098_v53, %s5365_s15  ;;  %v7857_v7 = vpop.permute.xlu2 %4974 }
 0x335   : > { %v1496_v1 = vsel %vm585_vm5, 0.0, %v1495_v45  ;;  %v7852_v50 = vperm.slane %v2282_v55, %v5513_v8  ;;  %10168 = vst [vmem:[#allocation21_spill] sm:$0xff] %v7857_v7  ;;  %v10169_v45 = vrot.slane %v7568_v41, 4  ;;  %v4957_v15 = vunpack.i.h.bf16 %v4955_v21  ;;  %v7870_v17 = vpop.permute.xlu1 %4929 }
 0x336   : > { %v5083_v20 = vpack.i.bf16 %v1496_v1, %v1492_v39  ;;  %v3776_v40 = vsel %vm585_vm5, %v10166_v32, %v7189_v52  ;;  %v10167_v1 = vld [vmem:[#allocation74_spill] sm:$0xff]  ;;  %v3422_v52 = vsel %vm585_vm5, 0.0, %v3421_v59  ;;  %v1134_v55 = vsel %vm585_vm5, %v7821_v10, %v1133_v25  ;;  %10171 = vst [vmem:[#allocation45_spill] sm:$0xff] %v7870_v17  ;;  %v10172_v59 = vld [vmem:[#allocation23_spill] sm:$0xff] }
 0x337   : > { %v3744_v26 = vsel %vm585_vm5, %v3743_v12, %v10167_v1  ;;  %v2294_v39 = vsel %vm585_vm5, %v7824_v29, %v10169_v45  ;;  %v7873_v12 = vperm.slane %v2672_v49, %v5513_v8  ;;  %v7876_v32 = vperm.slane %v2674_v54, %v5513_v8 }
 0x338   : > { %5084 = vrot.lane.b32.xlu2 %v5083_v20, %s5367_s17  ;;  %v7868_v53 = vperm.slane %v3744_v26, %v10008_v37  ;;  %v4926_v1 = vunpack.i.l.bf16 %v4925_v44  ;;  %v7879_v20 = vperm.slane %v1146_v48, %v10008_v37  ;;  %v4927_v21 = vunpack.i.h.bf16 %v4925_v44 }
 0x339   : > { %v2085_v45 = vsel %vm905_vm6, %v10172_v59, %v4956_v56  ;;  %v3370_v25 = vsel %vm585_vm5, 0.0, %v3369_v0  ;;  %v7885_v26 = vperm.slane %v2294_v39, %v10008_v37  ;;  %v7888_v49 = vperm.slane %v1134_v55, %v10008_v37  ;;  %v10174_v59 = vld [vmem:[#allocation54_spill] sm:$0xff] }
 0x33a   : > { %10170 = vst [vmem:[#allocation80_spill] sm:$0xff] %v7868_v53  ;;  %v5123_v17 = vpack.i.bf16 %v3422_v52, %v3370_v25  ;;  %v3759_v54 = vrot.slane %v7868_v53, 4  ;;  %v10173_v7 = vrot.slane %v7576_v18, 4  ;;  %v3395_v56 = vrot.slane %v7721_v33, 4  ;;  %v10175_v52 = vld [vmem:[#allocation60_spill] sm:$0xff]  ;;  %v10176_v53 = vld [vmem:[#allocation87_spill] sm:$0xff] }
 0x33b   : > { %v2088_v0 = vsel %vm905_vm6, %v10174_v59, %v4957_v15  ;;  %v4787_v55 = vunpack.i.h.bf16 %v10175_v52  ;;  %v5103_v25 = vpack.i.bf16 %v7879_v20, %v7888_v49  ;;  %v2685_v22 = vrot.slane %v10176_v53, 4 }
 0x33c   : > { %v2306_v48 = vsel %vm585_vm5, %v7852_v50, %v10173_v7  ;;  %5124 = vrot.lane.b32.xlu0 %v5123_v17, %s5366_s16  ;;  %v2086_v7 = vsel %vm351_vm1, %v2085_v45, %v4926_v1  ;;  %v7909_v44 = vperm.slane %v3776_v40, %v5513_v8  ;;  %v2317_v33 = vrot.slane %v7885_v26, 4  ;;  %v7922_v40 = vpop.permute.xlu2 %4984 }
 0x33d   : > { %v7900_v39 = vperm.slane %v2306_v48, %v10008_v37  ;;  %v10177_v48 = vld [vmem:[#allocation88_spill] sm:$0xff]  ;;  %5104 = vrot.lane.b32.xlu1 %v5103_v25, %s5365_s15  ;;  %v3760_v17 = vsel %vm585_vm5, 0.0, %v3759_v54  ;;  %v2686_v28 = vsel %vm585_vm5, %v7873_v12, %v2685_v22  ;;  %v2089_v1 = vsel %vm351_vm1, %v2088_v0, %v4927_v21  ;;  %10179 = vst [vmem:[#allocation74_spill] sm:$0xff] %v7922_v40  ;;  %v4940_v25 = vpop.permute.xlu1 %4939 }
 0x33e   : > { %v10178_v59 = vrot.slane %v10177_v48, 4  ;;  %v10180_v45 = vrot.slane %v7644_v42, 4  ;;  %v3396_v22 = vsel %vm585_vm5, %v3395_v56, %v10145_v46  ;;  %v1143_v21 = vrot.slane %v7816_v13, 4 }
 0x33f   : > { %v2321_v15 = vrot.slane %v7900_v39, 4  ;;  %v4942_v42 = vunpack.i.h.bf16 %v4940_v25  ;;  %v4941_v40 = vunpack.i.l.bf16 %v4940_v25  ;;  %v7956_v56 = vperm.slane %v3396_v22, %v10008_v37  ;;  %v10192_v22 = vld [vmem:[#allocation61_spill] sm:$0xff] }
 0x340   : > { %v2698_v16 = vsel %vm585_vm5, %v7876_v32, %v10178_v59  ;;  %v3352_v57 = vsel %vm585_vm5, %v10180_v45, %v7612_v58  ;;  %v1131_v59 = vrot.slane %v7821_v10, 4  ;;  %3944 = vrot.lane.b32.xlu2 %v3760_v17, %s5367_s17  ;;  %v2318_v58 = vsel %vm585_vm5, 0.0, %v2317_v33  ;;  %v10182_v10 = vld [vmem:[#allocation19_spill] sm:$0xff] }
 0x341   : > { %v2322_v54 = vsel %vm585_vm5, 0.0, %v2321_v15  ;;  %v7936_v0 = vperm.slane %v2698_v16, %v10008_v37  ;;  %v7940_v45 = vperm.slane %v2686_v28, %v10008_v37  ;;  %v10183_v17 = vrot.slane %v10182_v10, 4  ;;  %10187 = vst [vmem:[#allocation87_spill] sm:$0xff] %v7956_v56  ;;  %v10188_v28 = vld [vmem:[#allocation28_spill] sm:$0xff] }
 0x342   : > { %v7947_v6 = vperm.slane %v3352_v57, %v10008_v37  ;;  %v5138_v46 = vpack.i.bf16 %v2322_v54, %v2318_v58  ;;  %v7950_v13 = vsel %vm908_vm7, %v2089_v1, %v4942_v42  ;;  %v7953_v16 = vsel %vm908_vm7, %v2086_v7, %v4941_v40  ;;  %v7964_v58 = vpop.permute.xlu0 %4934 }
 0x343   : > { %v3790_v15 = vsel %vm585_vm5, %v7909_v44, %v10183_v17  ;;  %10185 = vst [vmem:[#allocation54_spill] sm:$0xff] %v7950_v13  ;;  %v10190_v17 = vunpack.i.l.bf16 %v7184_v2  ;;  %v5118_v7 = vpack.i.bf16 %v7936_v0, %v7940_v45  ;;  %v3419_v1 = vrot.slane %v7956_v56, 4 }
 0x344   : > { %10184 = vst [vmem:[#allocation23_spill] sm:$0xff] %v7947_v6  ;;  %5139 = vrot.lane.b32.xlu0 %v5138_v46, %s5366_s16  ;;  %v1144_v40 = vsel %vm585_vm5, %v1143_v21, %v10164_v35  ;;  %v3367_v54 = vrot.slane %v7947_v6, 4  ;;  %v7978_v33 = vsel %vm905_vm6, %v10193_v60, %v4787_v55  ;;  %v10194_v46 = vld [vmem:[#allocation10_spill] sm:$0xff]  ;;  %v7986_v35 = vpop.permute.xlu2 %4999  ;;  %v1132_v21 = vsel %vm585_vm5, %v1131_v59, %v10163_v4 }
 0x345   : > { %10186 = vst [vmem:[#allocation60_spill] sm:$0xff] %v7953_v16  ;;  %v3385_v57 = vrot.slane %v10190_v17, 4  ;;  %v3798_v17 = vperm.slane %v3790_v15, %v10008_v37  ;;  %v7982_v13 = vsel %vm905_vm6, %v10194_v46, %v4792_v19  ;;  %5119 = vrot.lane.b32.xlu1 %v5118_v7, %s5365_s15  ;;  %v10196_v15 = vunpack.i.h.bf16 %v7184_v2  ;;  %v7998_v55 = vpop.permute.xlu1 %4949  ;;  %v10199_v46 = vld [vmem:[#allocation72_spill] sm:$0xff]  ;;  %v10200_v2 = vld [vmem:[#allocation69_spill] sm:$0xff] }
 0x346   : > { %10191 = vst [vmem:[#allocation88_spill] sm:$0xff] %v7964_v58  ;;  %v3420_v19 = vsel %vm585_vm5, 0.0, %v3419_v1  ;;  %v8001_v7 = vperm.slane %v1144_v40, %v10008_v37  ;;  %v8005_v16 = vperm.slane %v10199_v46, %v5513_v8  ;;  %v8009_v4 = vperm.slane %v10200_v2, %v5513_v8 }
 0x347   : > { %10195 = vst [vmem:[#allocation29_spill] sm:$0xff] %v7986_v35  ;;  %v7993_v42 = vsel %vm585_vm5, %v10196_v15, %v3385_v57  ;;  %v2695_v59 = vrot.slane %v7876_v32, 4  ;;  %v9726_v57 = vunpack.i.h.bf16 %v7540_v38  ;;  %v3368_v1 = vsel %vm585_vm5, 0.0, %v3367_v54  ;;  %v10298_v35 = vld [vmem:[#allocation35_spill] sm:$0xff] }
 0x348   : > { %3960 = vrot.lane.b32.xlu2 %v3798_v17, %s5365_s15  ;;  %10197 = vst [vmem:[#allocation19_spill] sm:$0xff] %v7998_v55  ;;  %v3813_v25 = vrot.slane %v3798_v17, 4  ;;  %v8016_v40 = vperm.slane %v1132_v21, %v10008_v37  ;;  %v2303_v60 = vrot.slane %v7852_v50, 4  ;;  %v2683_v46 = vrot.slane %v7873_v12, 4 }
 0x349   : > { %10198 = vst [vmem:[#allocation28_spill] sm:$0xff] %v8001_v7  ;;  %v9728_v58 = vunpack.i.h.bf16 %v7604_v5  ;;  %v5148_v2 = vpack.i.bf16 %v3420_v19, %v3368_v1  ;;  %v2291_v6 = vrot.slane %v7824_v29, 4  ;;  %v8024_v32 = vperm.slane %v7527_v31, %v5513_v8 }
 0x34a   : > { %10201 = vst [vmem:[#allocation38_spill] sm:$0xff] %v8016_v40  ;;  %v9727_v15 = vunpack.i.l.bf16 %v7540_v38  ;;  %v1159_v54 = vrot.slane %v8001_v7, 4  ;;  %v3439_v17 = vrot.slane %v9726_v57, 4  ;;  %v3833_v50 = vrot.slane %v7606_v30, 4  ;;  %v10250_v7 = vld [vmem:[#allocation111_spill] sm:$0xff] }
 0x34b   : > { %v1553_v12 = vrot.slane %v7729_v27, 4  ;;  %v2696_v29 = vsel %vm585_vm5, %v2695_v59, %v10177_v48  ;;  %v1161_v21 = vrot.slane %v7879_v20, 4  ;;  %v3814_v31 = vsel %vm585_vm5, 0.0, %v3813_v25  ;;  %v8043_v27 = vpop.permute.xlu0 %4959 }
 0x34c   : > { %5149 = vrot.lane.b32.xlu0 %v5148_v2, %s5367_s17  ;;  %v5113_v19 = vpack.i.bf16 %v7900_v39, %v7885_v26  ;;  %v1155_v1 = vrot.slane %v8016_v40, 4  ;;  %v3495_v57 = vrot.slane %v9728_v58, 4  ;;  %v1549_v30 = vrot.slane %v7747_v11, 4  ;;  %10202 = vst [vmem:[#allocation61_spill] sm:$0xff] %v8043_v27 }
 0x34d   : > { %3964 = vrot.lane.b32.xlu1 %v3814_v31, %s5366_s16  ;;  %v2684_v48 = vsel %vm585_vm5, %v2683_v46, %v10176_v53  ;;  %v2304_v20 = vsel %vm585_vm5, %v2303_v60, %v7576_v18  ;;  %v8052_v26 = vperm.slane %v7548_v51, %v5513_v8  ;;  %v1157_v39 = vrot.slane %v7888_v49, 4  ;;  %v8057_v25 = vpop.permute.xlu1 %4964  ;;  %v8067_v60 = vpop.permute.xlu2 %5009 }
 0x34e   : > { %v1160_v11 = vsel %vm585_vm5, 0.0, %v1159_v54  ;;  %10203 = vst [vmem:[#allocation39_spill] sm:$0xff] %v8057_v25  ;;  %v8060_v59 = vperm.slane %v2696_v29, %v10008_v37  ;;  %v3440_v53 = vsel %vm585_vm5, %v3439_v17, %v9727_v15  ;;  %v4886_v18 = vunpack.i.l.bf16 %v7604_v5 }
 0x34f   : > { %v1554_v51 = vsel %vm585_vm5, 0.0, %v1553_v12  ;;  %10205 = vst [vmem:[#allocation72_spill] sm:$0xff] %v8067_v60  ;;  %v2292_v49 = vsel %vm585_vm5, %v2291_v6, %v7568_v41  ;;  %v1156_v46 = vsel %vm585_vm5, 0.0, %v1155_v1  ;;  %v1162_v2 = vsel %vm585_vm5, 0.0, %v1161_v21  ;;  %v10209_v1 = vld [vmem:[#allocation76_spill] sm:$0xff] }
 0x350   : > { %5114 = vrot.lane.b32.xlu2 %v5113_v19, %s5365_s15  ;;  %10204 = vst [vmem:[#allocation10_spill] sm:$0xff] %v8060_v59  ;;  %v8074_v54 = vperm.slane %v2684_v48, %v10008_v37  ;;  %v8077_v29 = vperm.slane %v2304_v20, %v10008_v37  ;;  %v3496_v17 = vsel %vm585_vm5, %v3495_v57, %v4886_v18  ;;  %v1550_v19 = vsel %vm585_vm5, 0.0, %v1549_v30  ;;  %v10299_v60 = vld [vmem:[#allocation96_spill] sm:$0xff] }
 0x351   : > { %v3834_v12 = vsel %vm585_vm5, %v10094_v24, %v3833_v50  ;;  %v5153_v31 = vpack.i.bf16 %v1160_v11, %v1156_v46  ;;  %v1158_v41 = vsel %vm585_vm5, 0.0, %v1157_v39  ;;  %v2711_v6 = vrot.slane %v8060_v59, 4  ;;  %v10211_v11 = vld [vmem:[#allocation26_spill] sm:$0xff] }
 0x352   : > { %10206 = vst [vmem:[#allocation69_spill] sm:$0xff] %v8074_v54  ;;  %v8086_v21 = vperm.slane %v2292_v49, %v10008_v37  ;;  %v10210_v48 = vrot.slane %v10209_v1, 4  ;;  %v2713_v57 = vrot.slane %v7936_v0, 4  ;;  %v5133_v24 = vpack.i.bf16 %v1554_v51, %v1550_v19 }
 0x353   : > { %10207 = vst [vmem:[#allocation114_spill] sm:$0xff] %v8077_v29  ;;  %v5128_v50 = vpack.i.bf16 %v1162_v2, %v1158_v41  ;;  %v10212_v30 = vrot.slane %v10211_v11, 4  ;;  %v2707_v46 = vrot.slane %v8074_v54, 4  ;;  %v2319_v49 = vrot.slane %v8077_v29, 4  ;;  %v8116_v41 = vpop.permute.xlu0 %4969 }
 0x354   : > { %10208 = vst [vmem:[#allocation115_spill] sm:$0xff] %v8086_v21  ;;  %v1190_v20 = vsel %vm585_vm5, %v8005_v16, %v10210_v48  ;;  %5154 = vrot.lane.b32.xlu0 %v5153_v31, %s5367_s17  ;;  %v3787_v0 = vrot.slane %v7909_v44, 4  ;;  %v10213_v51 = vunpack.i.h.bf16 %v7470_v36  ;;  %v8110_v31 = vperm.slane %v3440_v53, %v5513_v8  ;;  %v10216_v53 = vld [vmem:[#allocation9_spill] sm:$0xff] }
 0x355   : > { %v1202_v39 = vsel %vm585_vm5, %v8009_v4, %v10212_v30  ;;  %v8101_v15 = vperm.slane %v1190_v20, %v10008_v37  ;;  %v8113_v19 = vperm.slane %v3834_v12, %v5513_v8  ;;  %5134 = vrot.lane.b32.xlu1 %v5133_v24, %s5366_s16  ;;  %10214 = vst [vmem:[#allocation26_spill] sm:$0xff] %v8116_v41  ;;  %v2712_v20 = vsel %vm585_vm5, 0.0, %v2711_v6  ;;  %v8121_v44 = vpop.permute.xlu1 %4979  ;;  %v8133_v29 = vpop.permute.xlu2 %5024 }
 0x356   : > { %v8104_v48 = vperm.slane %v1202_v39, %v10008_v37  ;;  %v2337_v2 = vrot.slane %v10213_v51, 4  ;;  %v2315_v30 = vrot.slane %v8086_v21, 4  ;;  %10215 = vst [vmem:[#allocation116_spill] sm:$0xff] %v8121_v44  ;;  %v10217_v51 = vrot.slane %v10216_v53, 4 }
 0x357   : > { %v3497_v58 = vrot.slane %v4886_v18, 4  ;;  %v8130_v24 = vperm.slane %v3496_v17, %v5513_v8  ;;  %10218 = vst [vmem:[#allocation117_spill] sm:$0xff] %v8133_v29  ;;  %v10219_v6 = vrot.slane %v7724_v63, 4  ;;  %v2708_v39 = vsel %vm585_vm5, 0.0, %v2707_v46 }
 0x358   : > { %5129 = vrot.lane.b32.xlu2 %v5128_v50, %s5366_s16  ;;  %v2742_v12 = vsel %vm585_vm5, %v8024_v32, %v10217_v51  ;;  %v2709_v50 = vrot.slane %v7940_v45, 4  ;;  %v2320_v54 = vsel %vm585_vm5, 0.0, %v2319_v49  ;;  %v2714_v59 = vsel %vm585_vm5, 0.0, %v2713_v57  ;;  %v10220_v51 = vld [vmem:[#allocation85_spill] sm:$0xff] }
 0x359   : > { %v3800_v21 = vsel %vm585_vm5, %v10219_v6, %v10144_v14  ;;  %v10221_v18 = vrot.slane %v10220_v51, 4  ;;  %v5168_v40 = vpack.i.bf16 %v2712_v20, %v2708_v39  ;;  %v8147_v45 = vperm.slane %v2742_v12, %v10008_v37 }
 0x35a   : > { %v10222_v63 = vrot.slane %v7499_v43, 4  ;;  %v8160_v57 = vperm.slane %v7993_v42, %v5513_v8  ;;  %v2316_v46 = vsel %vm585_vm5, 0.0, %v2315_v30  ;;  %v8164_v49 = vperm.slane %v3800_v21, %v10008_v37  ;;  %v10226_v30 = vld [vmem:[#allocation83_spill] sm:$0xff] }
 0x35b   : > { %v2754_v17 = vsel %vm585_vm5, %v8052_v26, %v10221_v18  ;;  %v3788_v20 = vsel %vm585_vm5, %v3787_v0, %v10182_v10  ;;  %v5163_v39 = vpack.i.bf16 %v2320_v54, %v2316_v46  ;;  %v2710_v12 = vsel %vm585_vm5, 0.0, %v2709_v50 }
 0x35c   : > { %v8150_v29 = vperm.slane %v2754_v17, %v10008_v37  ;;  %v8156_v14 = vsel %vm585_vm5, %v8113_v19, %v10222_v63  ;;  %10223 = vst [vmem:[#allocation118_spill] sm:$0xff] %v8164_v49  ;;  %5169 = vrot.lane.b32.xlu0 %v5168_v40, %s5367_s17  ;;  %v10224_v18 = vrot.slane %v7485_v9, 4  ;;  %v10225_v21 = vunpack.i.h.bf16 %v7470_v36 }
 0x35d   : > { %v10227_v10 = vunpack.i.h.bf16 %v7604_v5  ;;  %v5143_v54 = vpack.i.bf16 %v2714_v59, %v2710_v12  ;;  %v10228_v0 = vrot.slane %v7475_v23, 4  ;;  %v10229_v63 = vunpack.i.h.bf16 %v10160_v62  ;;  %5164 = vrot.lane.b32.xlu1 %v5163_v39, %s5367_s17 }
 0x35e   : > { %v8176_v42 = vsel %vm585_vm5, %v8130_v24, %v10224_v18  ;;  %v2336_v17 = vsel %vm585_vm5, %v10226_v30, %v10225_v21  ;;  %v10230_v36 = vrot.slane %v10104_v3, 4  ;;  %v8198_v5 = vperm.slane %v3788_v20, %v10008_v37  ;;  %v10235_v21 = vld [vmem:[#allocation40_spill] sm:$0xff] }
 0x35f   : > { %v3498_v40 = vsel %vm585_vm5, %v10227_v10, %v3497_v58  ;;  %v3454_v50 = vsel %vm585_vm5, %v8110_v31, %v10228_v0  ;;  %v2338_v46 = vsel %vm585_vm5, %v10229_v63, %v2337_v2  ;;  %v8200_v58 = vpop.permute.xlu0 %4994  ;;  %v10233_v59 = vunpack.i.h.bf16 %v10188_v28  ;;  %v10236_v20 = vld [vmem:[#allocation12_spill] sm:$0xff]  ;;  %v8217_v63 = vpop.permute.xlu1 %4989 }
 0x360   : > { %v3888_v18 = vsel %vm585_vm5, %v10230_v36, %v7678_v47  ;;  %10231 = vst [vmem:[#allocation83_spill] sm:$0xff] %v8198_v5  ;;  %v4776_v62 = vunpack.i.l.bf16 %v10192_v22  ;;  %v10234_v2 = vunpack.i.l.bf16 %v10175_v52  ;;  %5144 = vrot.lane.b32.xlu2 %v5143_v54, %s5366_s16  ;;  %v3815_v39 = vrot.slane %v8164_v49, 4  ;;  %v10240_v36 = vld [vmem:[#allocation13_spill] sm:$0xff] }
 0x361   : > { %10232 = vst [vmem:[#allocation119_spill] sm:$0xff] %v8200_v58  ;;  %v911_v12 = vsel %vm351_vm1, %v7978_v33, %v10233_v59  ;;  %v10237_v10 = vrot.slane %v10236_v20, 4  ;;  %v10239_v33 = vunpack.i.l.bf16 %v10181_v61  ;;  %v8224_v52 = vperm.slane %v2336_v17, %v5513_v8  ;;  %v8239_v61 = vpop.permute.xlu2 %5039  ;;  %v10288_v58 = vld [vmem:[#allocation89_spill] sm:$0xff] }
 0x362   : > { %v906_v30 = vsel %vm905_vm6, %v10235_v21, %v10234_v2  ;;  %10238 = vst [vmem:[#allocation40_spill] sm:$0xff] %v8217_v63  ;;  %v8227_v2 = vperm.slane %v3498_v40, %v5513_v8  ;;  %v8230_v54 = vperm.slane %v3454_v50, %v10008_v37  ;;  %v8233_v21 = vperm.slane %v2338_v46, %v5513_v8 }
 0x363   : > { %v3410_v0 = vsel %vm585_vm5, %v8160_v57, %v10237_v10  ;;  %v2067_v59 = vsel %vm905_vm6, %v10240_v36, %v10239_v33  ;;  %v3889_v10 = vrot.slane %v7678_v47, 4  ;;  %v8237_v6 = vperm.slane %v3888_v18, %v5513_v8  ;;  %10242 = vst [vmem:[#allocation13_spill] sm:$0xff] %v8239_v61  ;;  %v10243_v33 = vld [vmem:[#allocation14_spill] sm:$0xff]  ;;  %v10274_v61 = vld [vmem:[#allocation48_spill] sm:$0xff] }
 0x364   : > { %10241 = vst [vmem:[#allocation12_spill] sm:$0xff] %v8230_v54  ;;  %v10244_v36 = vunpack.i.h.bf16 %v10243_v33  ;;  %v8246_v40 = vperm.slane %v3410_v0, %v10008_v37  ;;  %v3811_v50 = vrot.slane %v8198_v5, 4  ;;  %v10246_v46 = vunpack.i.h.bf16 %v10189_v34 }
 0x365   : > { %v10248_v47 = vunpack.i.h.bf16 %v10192_v22  ;;  %v1535_v56 = vrot.slane %v10250_v7, 4  ;;  %v3816_v55 = vsel %vm585_vm5, 0.0, %v3815_v39  ;;  %v10255_v39 = vunpack.i.l.bf16 %v10189_v34 }
 0x366   : > { %v2071_v17 = vsel %vm351_vm1, %v7982_v13, %v10244_v36  ;;  %10245 = vst [vmem:[#allocation14_spill] sm:$0xff] %v8246_v40  ;;  %v10251_v13 = vunpack.i.l.bf16 %v10243_v33  ;;  %v10252_v36 = vunpack.i.l.bf16 %v10188_v28  ;;  %3968 = vrot.lane.b32.xlu0 %v3816_v55, %s5367_s17  ;;  %v5173_v22 = vpack.i.bf16 %v8230_v54, %v8246_v40  ;;  %v10258_v28 = vld [vmem:[#allocation110_spill] sm:$0xff]  ;;  %v10259_v55 = vld [vmem:[#allocation59_spill] sm:$0xff]  ;;  %v10300_v40 = vld [vmem:[#allocation97_spill] sm:$0xff] }
 0x367   : > { %v8252_v49 = vsel %vm908_vm7, %v2071_v17, %v10246_v46  ;;  %v8257_v18 = vsel %vm908_vm7, %v911_v12, %v10248_v47  ;;  %v10253_v17 = vld [vmem:[#allocation101_spill] sm:$0xff]  ;;  %v8285_v46 = vperm.slane %v10259_v55, %v5513_v8  ;;  %v3890_v47 = vsel %vm585_vm5, %v10104_v3, %v3889_v10  ;;  %v10265_v3 = vld [vmem:[#allocation104_spill] sm:$0xff]  ;;  %v10267_v55 = vld [vmem:[#allocation34_spill] sm:$0xff] }
 0x368   : > { %10247 = vst [vmem:[#allocation120_spill] sm:$0xff] %v8252_v49  ;;  %v2068_v0 = vsel %vm351_vm1, %v2067_v59, %v10251_v13  ;;  %v907_v5 = vsel %vm351_vm1, %v906_v30, %v10252_v36  ;;  %v10254_v12 = vrot.slane %v10253_v17, 4  ;;  %v1523_v30 = vrot.slane %v10258_v28, 4  ;;  %v10260_v36 = vld [vmem:[#allocation36_spill] sm:$0xff]  ;;  %5174 = vrot.lane.b32.xlu1 %v5173_v22, %s5365_s15  ;;  %v10271_v22 = vld [vmem:[#allocation81_spill] sm:$0xff]  ;;  %v10273_v49 = vld [vmem:[#allocation15_spill] sm:$0xff] }
 0x369   : > { %10249 = vst [vmem:[#allocation121_spill] sm:$0xff] %v8257_v18  ;;  %v8277_v33 = vsel %vm908_vm7, %v2068_v0, %v10255_v39  ;;  %v8280_v59 = vsel %vm908_vm7, %v907_v5, %v4776_v62  ;;  %v10261_v34 = vrot.slane %v10260_v36, 4  ;;  %v3812_v5 = vsel %vm585_vm5, 0.0, %v3811_v50  ;;  %v8298_v62 = vpop.permute.xlu0 %5004  ;;  %v8313_v50 = vpop.permute.xlu1 %5014  ;;  %v10272_v18 = vld [vmem:[#allocation31_spill] sm:$0xff]  ;;  %v10306_v54 = vld [vmem:[#allocation16_spill] sm:$0xff] }
 0x36a   : > { %v3522_v7 = vsel %vm585_vm5, %v8227_v2, %v10254_v12  ;;  %10256 = vst [vmem:[#allocation111_spill] sm:$0xff] %v8277_v33  ;;  %v10263_v12 = vld [vmem:[#allocation103_spill] sm:$0xff]  ;;  %v10266_v10 = vrot.slane %v10265_v3, 4  ;;  %3956 = vrot.lane.b32.xlu2 %v3812_v5, %s5367_s17  ;;  %v1536_v27 = vsel %vm585_vm5, %v1535_v56, %v10271_v22  ;;  %v1213_v53 = vrot.slane %v8101_v15, 4 }
 0x36b   : > { %10257 = vst [vmem:[#allocation122_spill] sm:$0xff] %v8280_v59  ;;  %v8290_v13 = vperm.slane %v3522_v7, %v10008_v37  ;;  %v3902_v0 = vsel %vm585_vm5, %v8237_v6, %v10261_v34  ;;  %v10264_v39 = vrot.slane %v10263_v12, 4  ;;  %v10268_v59 = vld [vmem:[#allocation62_spill] sm:$0xff]  ;;  %v4801_v44 = vunpack.i.l.bf16 %v10288_v58 }
 0x36c   : > { %10262 = vst [vmem:[#allocation110_spill] sm:$0xff] %v8298_v62  ;;  %v2362_v7 = vsel %vm585_vm5, %v8233_v21, %v10266_v10  ;;  %v10269_v33 = vunpack.i.h.bf16 %v10268_v59  ;;  %v3913_v10 = vrot.slane %v10273_v49, 4  ;;  %v8325_v59 = vperm.slane %v10274_v61, %v5513_v8  ;;  %v10280_v62 = vld [vmem:[#allocation58_spill] sm:$0xff] }
 0x36d   : > { %v2350_v28 = vsel %vm585_vm5, %v8224_v52, %v10264_v39  ;;  %10270 = vst [vmem:[#allocation59_spill] sm:$0xff] %v8313_v50  ;;  %v8331_v5 = vperm.slane %v2362_v7, %v10008_v37  ;;  %v8334_v56 = vperm.slane %v3902_v0, %v10008_v37  ;;  %v10276_v39 = vld [vmem:[#allocation86_spill] sm:$0xff]  ;;  %v4832_v43 = vunpack.i.h.bf16 %v10298_v35 }
 0x36e   : > { %v3430_v34 = vsel %vm585_vm5, %v10269_v33, %v10267_v55  ;;  %v8320_v36 = vperm.slane %v2350_v28, %v10008_v37  ;;  %v8328_v33 = vperm.slane %v3890_v47, %v5513_v8  ;;  %v10275_v55 = vld [vmem:[#allocation113_spill] sm:$0xff]  ;;  %v1524_v28 = vsel %vm585_vm5, %v1523_v30, %v10276_v39  ;;  %v10277_v50 = vld [vmem:[#allocation82_spill] sm:$0xff] }
 0x36f   : > { %v3817_v22 = vrot.slane %v10275_v55, 4  ;;  %v10278_v17 = vrot.slane %v10277_v50, 4  ;;  %v8345_v47 = vperm.slane %v1536_v27, %v10008_v37  ;;  %v2377_v0 = vrot.slane %v8331_v5, 4  ;;  %v8356_v50 = vpop.permute.xlu2 %5049  ;;  %4008 = vrot.lane.b32.xlu0 %v8334_v56, %s5365_s15  ;;  %v10294_v58 = vld [vmem:[#allocation90_spill] sm:$0xff] }
 0x370   : > { %v2373_v49 = vrot.slane %v8320_v36, 4  ;;  %v1581_v55 = vrot.slane %v10280_v62, 4  ;;  %v8352_v63 = vperm.slane %v3430_v34, %v5513_v8  ;;  %v10282_v30 = vunpack.i.l.bf16 %v7540_v38  ;;  %10283 = vst [vmem:[#allocation81_spill] sm:$0xff] %v8356_v50 }
 0x371   : > { %v1594_v61 = vsel %vm585_vm5, %v8285_v46, %v10278_v17  ;;  %10279 = vst [vmem:[#allocation34_spill] sm:$0xff] %v8345_v47  ;;  %v8361_v27 = vperm.slane %v1524_v28, %v10008_v37  ;;  %v8367_v7 = vsel %vm585_vm5, 0.0, %v2377_v0  ;;  %v8371_v34 = vsel %vm585_vm5, %v8328_v33, %v3913_v10  ;;  %v8386_v10 = vpop.permute.xlu0 %5019 }
 0x372   : > { %10281 = vst [vmem:[#allocation62_spill] sm:$0xff] %v8352_v63  ;;  %v3441_v39 = vrot.slane %v10282_v30, 4  ;;  %v8364_v17 = vsel %vm585_vm5, 0.0, %v2373_v49  ;;  %v1582_v30 = vsel %vm585_vm5, %v8325_v59, %v1581_v55  ;;  %v8376_v50 = vperm.slane %v1594_v61, %v10008_v37 }
 0x373   : > { %10284 = vst [vmem:[#allocation31_spill] sm:$0xff] %v8361_v27  ;;  %v10286_v49 = vpack.i.bf16 %v8104_v48, %v8101_v15  ;;  %v3818_v0 = vsel %vm585_vm5, 0.0, %v3817_v22  ;;  %v1551_v62 = vrot.slane %v8345_v47, 4  ;;  %v1217_v55 = vrot.slane %v8104_v48, 4  ;;  %v8400_v47 = vpop.permute.xlu1 %5029 }
 0x374   : > { %10285 = vst [vmem:[#allocation48_spill] sm:$0xff] %v8376_v50  ;;  %v3465_v61 = vrot.slane %v8352_v63, 4  ;;  %v10289_v28 = vunpack.i.h.bf16 %v7540_v38  ;;  %3976 = vrot.lane.b32.xlu2 %v3818_v0, %s5366_s16  ;;  %v8397_v22 = vperm.slane %v1582_v30, %v10008_v37  ;;  %v8403_v15 = vsel %vm585_vm5, 0.0, %v1213_v53  ;;  %v10296_v0 = vld [vmem:[#allocation68_spill] sm:$0xff] }
 0x375   : > { %5179 = vrot.lane.b32.xlu1 %v10286_v49, %s5365_s15  ;;  %10287 = vst [vmem:[#allocation113_spill] sm:$0xff] %v8386_v10  ;;  %v1547_v49 = vrot.slane %v8361_v27, 4  ;;  %v8406_v48 = vsel %vm585_vm5, 0.0, %v1217_v55  ;;  %v4807_v63 = vunpack.i.h.bf16 %v10294_v58  ;;  %v4806_v38 = vunpack.i.l.bf16 %v10294_v58  ;;  %v10297_v27 = vld [vmem:[#allocation65_spill] sm:$0xff] }
 0x376   : > { %v3442_v41 = vsel %vm585_vm5, %v10289_v28, %v3441_v39  ;;  %10290 = vst [vmem:[#allocation86_spill] sm:$0xff] %v8397_v22  ;;  %v10295_v39 = vld [vmem:[#allocation91_spill] sm:$0xff]  ;;  %v4836_v10 = vunpack.i.l.bf16 %v10296_v0  ;;  %v4842_v51 = vunpack.i.h.bf16 %v10297_v27  ;;  %v5183_v53 = vpack.i.bf16 %v8376_v50, %v8397_v22 }
 0x377   : > { %10291 = vst [vmem:[#allocation89_spill] sm:$0xff] %v8400_v47  ;;  %v4797_v28 = vunpack.i.h.bf16 %v10295_v39  ;;  %v1552_v25 = vsel %vm585_vm5, 0.0, %v1551_v62  ;;  %v4841_v55 = vunpack.i.l.bf16 %v10297_v27  ;;  %v4831_v58 = vunpack.i.l.bf16 %v10298_v35  ;;  %v10301_v27 = vld [vmem:[#allocation73_spill] sm:$0xff]  ;;  %v8432_v12 = vpop.permute.xlu2 %5054 }
 0x378   : > { %10292 = vst [vmem:[#allocation123_spill] sm:$0xff] %v8403_v15  ;;  %v8422_v3 = vperm.slane %v3442_v41, %v5513_v8  ;;  %v4796_v30 = vunpack.i.l.bf16 %v10295_v39  ;;  %v4827_v0 = vunpack.i.h.bf16 %v10299_v60  ;;  %v4817_v15 = vunpack.i.h.bf16 %v10300_v40  ;;  %5184 = vrot.lane.b32.xlu0 %v5183_v53, %s5365_s15  ;;  %v10303_v41 = vld [vmem:[#allocation47_spill] sm:$0xff]  ;;  %v10304_v47 = vld [vmem:[#allocation17_spill] sm:$0xff] }
 0x379   : > { %10293 = vst [vmem:[#allocation124_spill] sm:$0xff] %v8406_v48  ;;  %v1548_v22 = vsel %vm585_vm5, 0.0, %v1547_v49  ;;  %v4816_v62 = vunpack.i.l.bf16 %v10300_v40  ;;  %v4822_v50 = vunpack.i.h.bf16 %v10301_v27  ;;  %v4821_v48 = vunpack.i.l.bf16 %v10301_v27 }
 0x37a   : > { %v5158_v35 = vpack.i.bf16 %v1552_v25, %v1548_v22  ;;  %10302 = vst [vmem:[#allocation90_spill] sm:$0xff] %v8432_v12  ;;  %v2073_v39 = vsel %vm905_vm6, %v10303_v41, %v4836_v10  ;;  %v3230_v1 = vsel %vm905_vm6, %v10304_v47, %v4842_v51  ;;  %v10305_v53 = vpack.i.bf16 %v8150_v29, %v8147_v45  ;;  %v10307_v22 = vld [vmem:[#allocation44_spill] sm:$0xff]  ;;  %v10309_v47 = vld [vmem:[#allocation77_spill] sm:$0xff] }
 0x37b   : > { %v2765_v40 = vrot.slane %v8147_v45, 4  ;;  %v2769_v49 = vrot.slane %v8150_v29, 4  ;;  %v3227_v25 = vsel %vm905_vm6, %v10306_v54, %v4841_v55  ;;  %v916_v27 = vsel %vm905_vm6, %v10307_v22, %v4832_v43  ;;  %v10308_v12 = vld [vmem:[#allocation20_spill] sm:$0xff]  ;;  %v8458_v29 = vpop.permute.xlu0 %5034 }
 0x37c   : > { %v913_v10 = vsel %vm905_vm6, %v10308_v12, %v4831_v58  ;;  %5159 = vrot.lane.b32.xlu2 %v5158_v35, %s5367_s17  ;;  %v3466_v51 = vsel %vm585_vm5, %v8422_v3, %v3465_v61  ;;  %v3843_v41 = vrot.slane %v10309_v47, 4  ;;  %v8456_v45 = vperm.slane %v8176_v42, %v10008_v37  ;;  %10310 = vst [vmem:[#allocation91_spill] sm:$0xff] %v8458_v29  ;;  %v8477_v35 = vpop.permute.xlu1 %5044 }
 0x37d   : > { %5194 = vrot.lane.b32.xlu1 %v10305_v53, %s5365_s15  ;;  %v8461_v54 = vsel %vm585_vm5, 0.0, %v2765_v40  ;;  %v8464_v43 = vsel %vm585_vm5, 0.0, %v2769_v49  ;;  %v8468_v12 = vperm.slane %v8156_v14, %v10008_v37  ;;  %v3231_v55 = vsel %vm351_vm1, %v3230_v1, %v4807_v63  ;;  %v10312_v1 = vld [vmem:[#allocation75_spill] sm:$0xff] }
 0x37e   : > { %v2074_v42 = vsel %vm351_vm1, %v2073_v39, %v4801_v44  ;;  %v8475_v58 = vperm.slane %v3466_v51, %v10008_v37  ;;  %v8480_v53 = vsel %vm908_vm7, %v3231_v55, %v4827_v0  ;;  %v914_v14 = vsel %vm351_vm1, %v913_v10, %v4796_v30  ;;  %v10314_v39 = vld [vmem:[#allocation43_spill] sm:$0xff]  ;;  %v10316_v0 = vld [vmem:[#allocation50_spill] sm:$0xff] }
 0x37f   : > { %10311 = vst [vmem:[#allocation68_spill] sm:$0xff] %v8480_v53  ;;  %v8483_v40 = vsel %vm908_vm7, %v2074_v42, %v4821_v48  ;;  %v4826_v49 = vunpack.i.l.bf16 %v10299_v60  ;;  %v8488_v22 = vsel %vm908_vm7, %v914_v14, %v4816_v62  ;;  %v8492_v44 = vsel %vm908_vm7, %v10312_v1, %v4822_v50  ;;  %v10317_v50 = vld [vmem:[#allocation107_spill] sm:$0xff]  ;;  %v10320_v55 = vld [vmem:[#allocation46_spill] sm:$0xff] }
 0x380   : > { %10313 = vst [vmem:[#allocation65_spill] sm:$0xff] %v8492_v44  ;;  %v917_v63 = vsel %vm351_vm1, %v916_v27, %v4797_v28  ;;  %v3707_v51 = vrot.slane %v10314_v39, 4  ;;  %3996 = vrot.lane.b32.xlu0 %v8468_v12, %s5365_s15  ;;  %v5198_v48 = vpack.i.bf16 %v8456_v45, %v8475_v58  ;;  %v3228_v60 = vsel %vm351_vm1, %v3227_v25, %v4806_v38  ;;  %v10319_v27 = vld [vmem:[#allocation70_spill] sm:$0xff]  ;;  %v8520_v38 = vpop.permute.xlu2 %5069 }
 0x381   : > { %v8501_v30 = vsel %vm908_vm7, %v917_v63, %v4817_v15  ;;  %v3099_v62 = vrot.slane %v10316_v0, 4  ;;  %v8507_v10 = vperm.slane %v10317_v50, %v10008_v37  ;;  %v8510_v28 = vsel %vm908_vm7, %v3228_v60, %v4826_v49  ;;  %10321 = vst [vmem:[#allocation97_spill] sm:$0xff] %v8520_v38  ;;  %v10322_v42 = vld [vmem:[#allocation42_spill] sm:$0xff]  ;;  %v10323_v63 = vld [vmem:[#allocation79_spill] sm:$0xff] }
 0x382   : > { %10315 = vst [vmem:[#allocation35_spill] sm:$0xff] %v8501_v30  ;;  %v8515_v47 = vsel %vm585_vm5, %v3843_v41, %v10319_v27  ;;  %v3719_v15 = vrot.slane %v10320_v55, 4  ;;  %v3925_v25 = vrot.slane %v8334_v56, 4  ;;  %v3708_v14 = vsel %vm585_vm5, %v3707_v51, %v10322_v42  ;;  %v10324_v39 = vld [vmem:[#allocation22_spill] sm:$0xff] }
 0x383   : > { %10318 = vst [vmem:[#allocation96_spill] sm:$0xff] %v8510_v28  ;;  %v3451_v49 = vrot.slane %v8110_v31, 4  ;;  %v3125_v1 = vrot.slane %v10272_v18, 4  ;;  %v3407_v60 = vrot.slane %v8160_v57, 4  ;;  %v8532_v0 = vpop.permute.xlu0 %5064  ;;  %v8535_v50 = vperm.slane %v3708_v14, %v5513_v8 }
 0x384   : > { %3984 = vrot.lane.b32.xlu2 %v8507_v10, %s5365_s15  ;;  %v3720_v41 = vsel %vm585_vm5, %v3719_v15, %v10323_v63  ;;  %10325 = vst [vmem:[#allocation73_spill] sm:$0xff] %v8532_v0  ;;  %v3926_v56 = vsel %vm585_vm5, 0.0, %v3925_v25  ;;  %v8542_v31 = vpop.permute.xlu1 %3948  ;;  %v1187_v42 = vrot.slane %v8005_v16, 4  ;;  %v1199_v63 = vrot.slane %v8009_v4, 4  ;;  %v10338_v25 = vld [vmem:[#allocation78_spill] sm:$0xff] }
 0x385   : > { %5199 = vrot.lane.b32.xlu1 %v5198_v48, %s5365_s15  ;;  %v3100_v48 = vsel %vm585_vm5, %v3099_v62, %v10324_v39  ;;  %10326 = vst [vmem:[#allocation47_spill] sm:$0xff] %v8535_v50  ;;  %v8539_v51 = vperm.slane %v3720_v41, %v5513_v8  ;;  %v3452_v27 = vsel %vm585_vm5, %v3451_v49, %v7475_v23  ;;  %v8547_v62 = vsel %vm585_vm5, 0.0, %v3125_v1 }
 0x386   : > { %v8550_v57 = vperm.slane %v3100_v48, %v10008_v37  ;;  %v3507_v23 = vrot.slane %v8130_v24, 4  ;;  %v10330_v49 = vpack.i.bf16 %v10272_v18, %v8290_v13  ;;  %v3408_v1 = vsel %vm585_vm5, %v3407_v60, %v10236_v20  ;;  %v10331_v48 = vld [vmem:[#allocation105_spill] sm:$0xff]  ;;  %v10334_v60 = vld [vmem:[#allocation64_spill] sm:$0xff] }
 0x387   : > { %10327 = vst [vmem:[#allocation17_spill] sm:$0xff] %v8539_v51  ;;  %v2347_v41 = vrot.slane %v8224_v52, 4  ;;  %v2359_v39 = vrot.slane %v8233_v21, 4  ;;  %v10332_v4 = vpack.i.bf16 %v8331_v5, %v8320_v36  ;;  %v2751_v20 = vrot.slane %v8052_v26, 4  ;;  %v10337_v52 = vld [vmem:[#allocation37_spill] sm:$0xff]  ;;  %v10352_v51 = vld [vmem:[#allocation18_spill] sm:$0xff] }
 0x388   : > { %4012 = vrot.lane.b32.xlu0 %v3926_v56, %s5366_s16  ;;  %10328 = vst [vmem:[#allocation16_spill] sm:$0xff] %v8550_v57  ;;  %v8572_v24 = vpop.permute.xlu2 %3952  ;;  %v8575_v56 = vperm.slane %v3452_v27, %v10008_v37  ;;  %v3855_v36 = vrot.slane %v8113_v19, 4  ;;  %v8585_v5 = vperm.slane %v3408_v1, %v10008_v37  ;;  %v8592_v26 = vsel %vm585_vm5, %v3507_v23, %v7485_v9  ;;  %v10342_v18 = vld [vmem:[#allocation89_spill] sm:$0xff]  ;;  %v10375_v57 = vld [vmem:[#allocation40_spill] sm:$0xff] }
 0x389   : > { %v4917_v21 = vunpack.i.h.bf16 %v10337_v52  ;;  %v1200_v19 = vsel %vm585_vm5, %v1199_v63, %v10211_v11  ;;  %v4916_v8 = vunpack.i.l.bf16 %v10337_v52  ;;  %v10339_v9 = vpack.i.bf16 %v8367_v7, %v8364_v17  ;;  %v10340_v63 = vld [vmem:[#allocation12_spill] sm:$0xff] }
 0x38a   : > { %10333 = vst [vmem:[#allocation44_spill] sm:$0xff] %v8575_v56  ;;  %v3475_v15 = vrot.slane %v8575_v56, 4  ;;  %v8608_v23 = vperm.slane %v8371_v34, %v10008_v37  ;;  %v3423_v11 = vrot.slane %v8585_v5, 4  ;;  %v3477_v1 = vrot.slane %v10340_v63, 4  ;;  %v10341_v52 = vld [vmem:[#allocation76_spill] sm:$0xff]  ;;  %v10346_v63 = vld [vmem:[#allocation49_spill] sm:$0xff] }
 0x38b   : > { %10335 = vst [vmem:[#allocation20_spill] sm:$0xff] %v8585_v5  ;;  %v8610_v16 = vpop.permute.xlu0 %5079  ;;  %v1188_v27 = vsel %vm585_vm5, %v1187_v42, %v10341_v52  ;;  %v4906_v61 = vunpack.i.l.bf16 %v10338_v25  ;;  %v5032_v7 = vunpack.i.h.bf16 %v10342_v18  ;;  %v8624_v34 = vperm.slane %v1200_v19, %v10008_v37  ;;  %v10348_v42 = vld [vmem:[#allocation123_spill] sm:$0xff]  ;;  %v10350_v56 = vld [vmem:[#allocation106_spill] sm:$0xff] }
 0x38c   : > { %5189 = vrot.lane.b32.xlu2 %v10332_v4, %s5365_s15  ;;  %v5082_v14 = vunpack.i.h.bf16 %v8610_v16  ;;  %v8621_v17 = vpop.permute.xlu1 %5059  ;;  %v8632_v5 = vsel %vm905_vm6, %v10346_v63, %v4917_v21  ;;  %v3476_v44 = vsel %vm585_vm5, 0.0, %v3475_v15  ;;  %v10351_v19 = vld [vmem:[#allocation14_spill] sm:$0xff]  ;;  %v3424_v15 = vsel %vm585_vm5, 0.0, %v3423_v11  ;;  %v10372_v4 = vld [vmem:[#allocation119_spill] sm:$0xff] }
 0x38d   : > { %5204 = vrot.lane.b32.xlu1 %v10330_v49, %s5365_s15  ;;  %v4907_v49 = vunpack.i.h.bf16 %v10338_v25  ;;  %10343 = vst [vmem:[#allocation77_spill] sm:$0xff] %v8621_v17  ;;  %v10347_v25 = vld [vmem:[#allocation124_spill] sm:$0xff]  ;;  %v3425_v53 = vrot.slane %v10351_v19, 4  ;;  %v10364_v11 = vld [vmem:[#allocation74_spill] sm:$0xff]  ;;  %v10385_v55 = vrot.slane %v8227_v2, 4 }
 0x38e   : > { %10344 = vst [vmem:[#allocation75_spill] sm:$0xff] %v8624_v34  ;;  %v10349_v52 = vpack.i.bf16 %v10347_v25, %v10348_v42  ;;  %v1324_v30 = vsel %vm905_vm6, %v10350_v56, %v5082_v14  ;;  %v8654_v25 = vperm.slane %v1188_v27, %v10008_v37  ;;  %v10357_v42 = vld [vmem:[#allocation72_spill] sm:$0xff]  ;;  %v1215_v27 = vrot.slane %v8624_v34, 4 }
 0x38f   : > { %v8651_v63 = vsel %vm351_vm1, %v1324_v30, %v5032_v7  ;;  %v5012_v14 = vunpack.i.h.bf16 %v10357_v42  ;;  %v5233_v30 = vpack.i.bf16 %v3476_v44, %v3424_v15  ;;  %v10362_v7 = vld [vmem:[#allocation102_spill] sm:$0xff]  ;;  %v10367_v15 = vld [vmem:[#allocation85_spill] sm:$0xff]  ;;  %v10370_v34 = vld [vmem:[#allocation116_spill] sm:$0xff] }
 0x390   : > { %5224 = vrot.lane.b32.xlu0 %v10339_v9, %s5366_s16  ;;  %v10345_v9 = vld [vmem:[#allocation103_spill] sm:$0xff]  ;;  %10355 = vst [vmem:[#allocation50_spill] sm:$0xff] %v8651_v63  ;;  %v10363_v63 = vld [vmem:[#allocation21_spill] sm:$0xff]  ;;  %v1211_v44 = vrot.slane %v8654_v25, 4  ;;  %v10369_v42 = vld [vmem:[#allocation26_spill] sm:$0xff] }
 0x391   : > { %v8628_v28 = vsel %vm585_vm5, %v2347_v41, %v10345_v9  ;;  %v8644_v41 = vsel %vm905_vm6, %v10352_v51, %v4916_v8  ;;  %v10353_v9 = vld [vmem:[#allocation52_spill] sm:$0xff]  ;;  %10356 = vst [vmem:[#allocation107_spill] sm:$0xff] %v8654_v25  ;;  %v10376_v25 = vld [vmem:[#allocation110_spill] sm:$0xff] }
 0x392   : > { %v8648_v21 = vsel %vm905_vm6, %v10353_v9, %v4907_v49  ;;  %v8657_v56 = vpop.permute.xlu2 %5084  ;;  %v10359_v51 = vld [vmem:[#allocation104_spill] sm:$0xff]  ;;  %v10360_v49 = vld [vmem:[#allocation53_spill] sm:$0xff]  ;;  %v8672_v9 = vsel %vm585_vm5, %v3855_v36, %v10362_v7  ;;  %v10368_v36 = vld [vmem:[#allocation98_spill] sm:$0xff] }
 0x393   : > { %10354 = vst [vmem:[#allocation43_spill] sm:$0xff] %v8648_v21  ;;  %v8663_v8 = vsel %vm585_vm5, %v2359_v39, %v10359_v51  ;;  %v8667_v19 = vsel %vm905_vm6, %v10360_v49, %v4906_v61  ;;  %v3426_v39 = vsel %vm585_vm5, 0.0, %v3425_v53  ;;  %v10366_v51 = vld [vmem:[#allocation39_spill] sm:$0xff]  ;;  %v2752_v49 = vsel %vm585_vm5, %v2751_v20, %v10367_v15  ;;  %v10389_v2 = vld [vmem:[#allocation48_spill] sm:$0xff] }
 0x394   : > { %5214 = vrot.lane.b32.xlu2 %v10349_v52, %s5366_s16  ;;  %10358 = vst [vmem:[#allocation70_spill] sm:$0xff] %v8657_v56  ;;  %v3478_v52 = vsel %vm585_vm5, 0.0, %v3477_v1  ;;  %v10365_v1 = vld [vmem:[#allocation29_spill] sm:$0xff]  ;;  %v8685_v7 = vsel %vm905_vm6, %v10368_v36, %v5012_v14  ;;  %v8691_v53 = vperm.slane %v8515_v47, %v10008_v37  ;;  %v1216_v20 = vsel %vm585_vm5, 0.0, %v1215_v27  ;;  %v10380_v21 = vld [vmem:[#allocation63_spill] sm:$0xff] }
 0x395   : > { %4020 = vrot.lane.b32.xlu1 %v8608_v23, %s5365_s15  ;;  %10361 = vst [vmem:[#allocation46_spill] sm:$0xff] %v8667_v19  ;;  %v5208_v61 = vpack.i.bf16 %v3478_v52, %v3426_v39  ;;  %v8695_v52 = vpop.permute.xlu0 %5094  ;;  %v10373_v39 = vld [vmem:[#allocation9_spill] sm:$0xff]  ;;  %v10374_v14 = vrot.slane %v8024_v32, 4  ;;  %v3537_v36 = vrot.slane %v8290_v13, 4  ;;  %v5007_v47 = vunpack.i.h.bf16 %v10376_v25 }
 0x396   : > { %10371 = vst [vmem:[#allocation42_spill] sm:$0xff] %v8691_v53  ;;  %v8711_v27 = vperm.slane %v2752_v49, %v10008_v37  ;;  %v5047_v32 = vunpack.i.h.bf16 %v8477_v35  ;;  %v8714_v50 = vpop.permute.xlu1 %5074  ;;  %v1212_v13 = vsel %vm585_vm5, 0.0, %v1211_v44  ;;  %v3867_v25 = vrot.slane %v8691_v53, 4  ;;  %v10388_v53 = vld [vmem:[#allocation113_spill] sm:$0xff] }
 0x397   : > { %v2740_v15 = vsel %vm585_vm5, %v10374_v14, %v10373_v39  ;;  %10379 = vst [vmem:[#allocation22_spill] sm:$0xff] %v8714_v50  ;;  %v3869_v39 = vrot.slane %v8507_v10, 4  ;;  %v8719_v14 = vsel %vm585_vm5, 0.0, %v3537_v36  ;;  %v10383_v50 = vld [vmem:[#allocation80_spill] sm:$0xff]  ;;  %v10384_v36 = vld [vmem:[#allocation101_spill] sm:$0xff] }
 0x398   : > { %5234 = vrot.lane.b32.xlu0 %v5233_v30, %s5367_s17  ;;  %v10377_v30 = vpack.i.bf16 %v8464_v43, %v8461_v54  ;;  %10378 = vst [vmem:[#allocation79_spill] sm:$0xff] %v8711_v27  ;;  %v8725_v49 = vperm.slane %v2740_v15, %v10008_v37 }
 0x39a   : > { %v3945_v43 = vpop.permute.xlu2 %3944  ;;  %10381 = vst [vmem:[#allocation105_spill] sm:$0xff] %v8725_v49  ;;  %v2763_v10 = vrot.slane %v8725_v49, 4  ;;  %v10401_v49 = vld [vmem:[#allocation90_spill] sm:$0xff] }
 0x39b   : > { %v4030_v44 = vsel %vm905_vm6, %v10383_v50, %v3945_v43  ;;  %v5022_v50 = vunpack.i.h.bf16 %v10388_v53  ;;  %v10393_v53 = vld [vmem:[#allocation92_spill] sm:$0xff] }
 0x39c   : > { %5229 = vrot.lane.b32.xlu2 %v10377_v30, %s5366_s16  ;;  %v5248_v30 = vpack.i.bf16 %v1216_v20, %v1212_v13  ;;  %v10386_v20 = vld [vmem:[#allocation13_spill] sm:$0xff]  ;;  %v10387_v13 = vld [vmem:[#allocation59_spill] sm:$0xff] }
 0x39d   : > { %5209 = vrot.lane.b32.xlu1 %v5208_v61, %s5366_s16  ;;  %v5097_v61 = vunpack.i.h.bf16 %v8695_v52  ;;  %v5017_v15 = vunpack.i.h.bf16 %v10387_v13  ;;  %v4085_v13 = vrot.slane %v8483_v40, 4 }
 0x39f   : > { %v2876_v54 = vsel %vm905_vm6, %v10380_v21, %v5097_v61  ;;  %v8738_v21 = vsel %vm585_vm5, %v10385_v55, %v10384_v36  ;;  %v1609_v55 = vrot.slane %v10389_v2, 4  ;;  %v3870_v36 = vsel %vm585_vm5, 0.0, %v3869_v39  ;;  %v10390_v61 = vld [vmem:[#allocation62_spill] sm:$0xff] }
 0x3a0   : > { %v8728_v19 = vsel %vm351_vm1, %v2876_v54, %v5047_v32  ;;  %v4031_v32 = vsel %vm351_vm1, %v4030_v44, %v8542_v31  ;;  %v2767_v54 = vrot.slane %v8711_v27, 4  ;;  %5249 = vrot.lane.b32.xlu0 %v5248_v30, %s5367_s17  ;;  %v10391_v31 = vrot.slane %v8422_v3, 4  ;;  %v10392_v27 = vld [vmem:[#allocation120_spill] sm:$0xff]  ;;  %v10395_v39 = vld [vmem:[#allocation86_spill] sm:$0xff] }
 0x3a1   : > { %10382 = vst [vmem:[#allocation64_spill] sm:$0xff] %v8728_v19  ;;  %v4032_v43 = vsel %vm908_vm7, %v4031_v32, %v8572_v24  ;;  %v8760_v24 = vsel %vm905_vm6, %v10393_v53, %v5007_v47  ;;  %v3868_v30 = vsel %vm585_vm5, 0.0, %v3867_v25  ;;  %v8764_v32 = vpop.permute.xlu0 %5109  ;;  %v8769_v2 = vperm.slane %v8592_v26, %v10008_v37  ;;  %v10397_v3 = vld [vmem:[#allocation94_spill] sm:$0xff]  ;;  %v10398_v47 = vld [vmem:[#allocation36_spill] sm:$0xff] }
 0x3a2   : > { %4523 = vmatpush.msk.msrb.mxu3 %vm4147_vm8, %v4032_v43  ;;  %v3464_v44 = vsel %vm585_vm5, %v10391_v31, %v10390_v61  ;;  %10394 = vst [vmem:[#allocation37_spill] sm:$0xff] %v8764_v32  ;;  %v1605_v43 = vrot.slane %v10395_v39, 4  ;;  %v2478_v61 = vsel %vm905_vm6, %v10397_v3, %v5017_v15  ;;  %v2768_v53 = vsel %vm585_vm5, 0.0, %v2767_v54  ;;  %v10400_v19 = vld [vmem:[#allocation100_spill] sm:$0xff]  ;;  %v8783_v32 = vpop.permute.xlu1 %5089  ;;  %v8790_v54 = vpop.permute.xlu2 %3960 }
 0x3a3   : > { %10396 = vst [vmem:[#allocation78_spill] sm:$0xff] %v8769_v2  ;;  %v10399_v25 = vrot.slane %v8237_v6, 4  ;;  %v2870_v39 = vsel %vm905_vm6, %v10400_v19, %v5022_v50  ;;  %v1610_v15 = vsel %vm585_vm5, 0.0, %v1609_v55  ;;  %v8787_v3 = vperm.slane %v3464_v44, %v10008_v37 }
 0x3a4   : > { %3980 = vrot.lane.b32.xlu2 %v3868_v30, %s5367_s17  ;;  %v5036_v30 = vunpack.i.l.bf16 %v8458_v29  ;;  %v2764_v6 = vsel %vm585_vm5, 0.0, %v2763_v10  ;;  %v1606_v50 = vsel %vm585_vm5, 0.0, %v1605_v43  ;;  %v3531_v26 = vrot.slane %v8769_v2, 4 }
 0x3a5   : > { %3988 = vrot.lane.b32.xlu1 %v3870_v36, %s5366_s16  ;;  %v3900_v36 = vsel %vm585_vm5, %v10399_v25, %v10398_v47  ;;  %10402 = vst [vmem:[#allocation12_spill] sm:$0xff] %v8787_v3  ;;  %v3873_v47 = vrot.slane %v8468_v12, 4  ;;  %v3533_v25 = vrot.slane %v8456_v45, 4  ;;  %v5263_v19 = vpack.i.bf16 %v2768_v53, %v2764_v6 }
 0x3a6   : > { %v8798_v55 = vperm.slane %v3900_v36, %v10008_v37  ;;  %v5046_v44 = vunpack.i.l.bf16 %v8477_v35  ;;  %v5218_v31 = vpack.i.bf16 %v1610_v15, %v1606_v50  ;;  %v3481_v29 = vrot.slane %v8475_v58, 4  ;;  %v10404_v15 = vld [vmem:[#allocation15_spill] sm:$0xff] }
 0x3a7   : > { %v5081_v10 = vunpack.i.l.bf16 %v8610_v16  ;;  %v5096_v12 = vunpack.i.l.bf16 %v8695_v52  ;;  %v5091_v45 = vunpack.i.l.bf16 %v8783_v32  ;;  %v3479_v43 = vrot.slane %v8787_v3, 4  ;;  %v10409_v3 = vld [vmem:[#allocation41_spill] sm:$0xff] }
 0x3a8   : > { %10403 = vst [vmem:[#allocation76_spill] sm:$0xff] %v8798_v55  ;;  %5264 = vrot.lane.b32.xlu0 %v5263_v19, %s5367_s17  ;;  %v5066_v53 = vunpack.i.l.bf16 %v8532_v0  ;;  %v3874_v36 = vsel %vm585_vm5, 0.0, %v3873_v47  ;;  %v3534_v35 = vsel %vm585_vm5, 0.0, %v3533_v25  ;;  %v10405_v58 = vrot.slane %v8328_v33, 4 }
 0x3a9   : > { %v5086_v16 = vunpack.i.l.bf16 %v8657_v56  ;;  %v8819_v52 = vpop.permute.xlu0 %3972  ;;  %v3532_v6 = vsel %vm585_vm5, 0.0, %v3531_v26  ;;  %v3923_v19 = vrot.slane %v8798_v55, 4  ;;  %v8825_v47 = vperm.slane %v8672_v9, %v10008_v37  ;;  %v10408_v26 = vld [vmem:[#allocation27_spill] sm:$0xff] }
 0x3aa   : > { %v8815_v40 = vsel %vm585_vm5, %v10405_v58, %v10404_v15  ;;  %v5071_v25 = vunpack.i.l.bf16 %v8520_v38  ;;  %v5061_v33 = vunpack.i.l.bf16 %v8621_v17  ;;  %v3482_v50 = vsel %vm585_vm5, 0.0, %v3481_v29  ;;  %v10406_v15 = vld [vmem:[#allocation58_spill] sm:$0xff]  ;;  %v10410_v55 = vld [vmem:[#allocation67_spill] sm:$0xff]  ;;  %v8841_v0 = vpop.permute.xlu1 %5099  ;;  %v8844_v17 = vpop.permute.xlu2 %5114 }
 0x3ab   : > { %v1321_v2 = vsel %vm905_vm6, %v10408_v26, %v5081_v10  ;;  %v2873_v9 = vsel %vm905_vm6, %v10409_v3, %v5096_v12  ;;  %v2481_v38 = vsel %vm905_vm6, %v10410_v55, %v5091_v45  ;;  %v5238_v56 = vpack.i.bf16 %v3534_v35, %v3482_v50  ;;  %v10413_v12 = vld [vmem:[#allocation84_spill] sm:$0xff] }
 0x3ac   : > { %4000 = vrot.lane.b32.xlu2 %v3874_v36, %s5366_s16  ;;  %v3480_v36 = vsel %vm585_vm5, 0.0, %v3479_v43  ;;  %v10412_v10 = vunpack.i.h.bf16 %v10334_v60  ;;  %v1713_v55 = vsel %vm905_vm6, %v10413_v12, %v5086_v16  ;;  %v3924_v45 = vsel %vm585_vm5, 0.0, %v3923_v19 }
 0x3ad   : > { %5219 = vrot.lane.b32.xlu1 %v5218_v31, %s5366_s16  ;;  %v10407_v31 = vrot.slane %v8325_v59, 4  ;;  %v5268_v29 = vpack.i.bf16 %v3532_v6, %v3480_v36  ;;  %v10411_v59 = vunpack.i.l.bf16 %v10334_v60  ;;  %v3871_v43 = vrot.slane %v8825_v47, 4 }
 0x3ae   : > { %v3237_v3 = vsel %vm351_vm1, %v8632_v5, %v10412_v10  ;;  %v10414_v6 = vunpack.i.l.bf16 %v10331_v48  ;;  %v10415_v50 = vunpack.i.h.bf16 %v10363_v63  ;;  %v10416_v60 = vunpack.i.h.bf16 %v10370_v34 }
 0x3af   : > { %v1580_v58 = vsel %vm585_vm5, %v10407_v31, %v10406_v15  ;;  %v3234_v15 = vsel %vm351_vm1, %v8644_v41, %v10411_v59  ;;  %v10417_v31 = vunpack.i.l.bf16 %v10386_v20  ;;  %v2874_v19 = vsel %vm351_vm1, %v2873_v9, %v5046_v44 }
 0x3b0   : > { %v8861_v35 = vsel %vm908_vm7, %v3234_v15, %v10414_v6  ;;  %v2479_v41 = vsel %vm351_vm1, %v2478_v61, %v10415_v50  ;;  %v2871_v5 = vsel %vm351_vm1, %v2870_v39, %v10416_v60  ;;  %5269 = vrot.lane.b32.xlu0 %v5268_v29, %s5367_s17  ;;  %v10418_v26 = vunpack.i.h.bf16 %v10372_v4 }
 0x3b1   : > { %v2482_v16 = vsel %vm351_vm1, %v2481_v38, %v10417_v31  ;;  %v10419_v59 = vunpack.i.h.bf16 %v10365_v1  ;;  %v2875_v39 = vsel %vm908_vm7, %v2874_v19, %v5071_v25  ;;  %v10420_v38 = vunpack.i.h.bf16 %v10369_v42  ;;  %v8888_v29 = vpop.permute.xlu0 %5124 }
 0x3b2   : > { %v2480_v36 = vsel %vm908_vm7, %v2479_v41, %v10418_v26  ;;  %v2483_v15 = vsel %vm908_vm7, %v2482_v16, %v5066_v53  ;;  %v4109_v12 = vrot.slane %v2875_v39, 4  ;;  %v1714_v9 = vsel %vm351_vm1, %v1713_v55, %v5036_v30  ;;  %v10425_v30 = vld [vmem:[#allocation82_spill] sm:$0xff]  ;;  %v8932_v26 = vpop.permute.xlu2 %5129 }
 0x3b3   : > { %v2872_v61 = vsel %vm908_vm7, %v2871_v5, %v10419_v59  ;;  %v1711_v44 = vsel %vm351_vm1, %v8685_v7, %v10420_v38  ;;  %v10421_v6 = vunpack.i.h.bf16 %v10375_v57  ;;  %v1715_v53 = vsel %vm908_vm7, %v1714_v9, %v5061_v33  ;;  %v10436_v9 = vld [vmem:[#allocation46_spill] sm:$0xff] }
 0x3b4   : > { %v4108_v10 = vrot.slane %v2872_v61, 4  ;;  %v10422_v25 = vunpack.i.h.bf16 %v10366_v51  ;;  %v10423_v60 = vunpack.i.l.bf16 %v10342_v18  ;;  %4004 = vrot.lane.b32.xlu2 %v3924_v45, %s5367_s17  ;;  %v10426_v55 = vrot.slane %v8285_v46, 4  ;;  %v8916_v18 = vpop.permute.xlu1 %5104 }
 0x3b5   : > { %5239 = vrot.lane.b32.xlu1 %v5238_v56, %s5366_s16  ;;  %v1712_v50 = vsel %vm908_vm7, %v1711_v44, %v10421_v6  ;;  %v8904_v56 = vperm.slane %v8738_v21, %v10008_v37  ;;  %v8924_v21 = vsel %vm4147_vm8, %v1715_v53, %v4085_v13  ;;  %v10428_v46 = vunpack.i.h.bf16 %v10364_v11  ;;  %v10438_v53 = vld [vmem:[#allocation112_spill] sm:$0xff] }
 0x3b6   : > { %v1319_v41 = vsel %vm351_vm1, %v8760_v24, %v10422_v25  ;;  %v1322_v7 = vsel %vm351_vm1, %v1321_v2, %v10423_v60  ;;  %v1592_v33 = vsel %vm585_vm5, %v10426_v55, %v10425_v30  ;;  %v8911_v5 = vsel %vm4147_vm8, %v2480_v36, %v4108_v10  ;;  %v10441_v60 = vld [vmem:[#allocation43_spill] sm:$0xff]  ;;  %v10442_v55 = vld [vmem:[#allocation16_spill] sm:$0xff] }
 0x3b7   : > { %10424 = vst [vmem:[#allocation89_spill] sm:$0xff] %v8904_v56  ;;  %v8914_v24 = vsel %vm4147_vm8, %v2483_v15, %v4109_v12  ;;  %v10427_v2 = vrot.slane %v10392_v27, 4  ;;  %v1320_v31 = vsel %vm908_vm7, %v1319_v41, %v10428_v46  ;;  %v10429_v16 = vunpack.i.l.bf16 %v10401_v49 }
 0x3b8   : > { %v3929_v36 = vrot.slane %v8608_v23, 4  ;;  %v8937_v27 = vperm.slane %v8663_v8, %v10008_v37  ;;  %v4060_v59 = vrot.slane %v1320_v31, 4  ;;  %v3872_v13 = vsel %vm585_vm5, 0.0, %v3871_v43  ;;  %v10433_v8 = vld [vmem:[#allocation121_spill] sm:$0xff] }
 0x3b9   : > { %v8921_v45 = vsel %vm4147_vm8, %v1712_v50, %v10427_v2  ;;  %v1323_v19 = vsel %vm908_vm7, %v1322_v7, %v10429_v16  ;;  %v8942_v15 = vperm.slane %v8628_v28, %v10008_v37  ;;  %v8945_v39 = vperm.slane %v1592_v33, %v10008_v37  ;;  %v10434_v28 = vld [vmem:[#allocation66_spill] sm:$0xff]  ;;  %v10437_v50 = vld [vmem:[#allocation47_spill] sm:$0xff]  ;;  %3992 = vrot.lane.b32.xlu0 %v3872_v13, %s5367_s17  ;;  %v8988_v31 = vpop.permute.xlu0 %5139 }
 0x3ba   : > { %10430 = vst [vmem:[#allocation103_spill] sm:$0xff] %v8937_v27  ;;  %v4061_v61 = vrot.slane %v1323_v19, 4  ;;  %v10432_v10 = vunpack.i.h.bf16 %v10331_v48  ;;  %v3535_v23 = vrot.slane %v8904_v56, 4  ;;  %v8955_v38 = vsel %vm4147_vm8, %v10433_v8, %v4060_v59  ;;  %v10444_v19 = vld [vmem:[#allocation17_spill] sm:$0xff] }
 0x3bb   : > { %10431 = vst [vmem:[#allocation49_spill] sm:$0xff] %v8942_v15  ;;  %v10435_v44 = vunpack.i.l.bf16 %v10434_v28  ;;  %v3733_v48 = vrot.slane %v10437_v50, 4  ;;  %v10439_v25 = vunpack.i.l.bf16 %v10438_v53  ;;  %v3930_v30 = vsel %vm585_vm5, 0.0, %v3929_v36 }
 0x3bc   : > { %v8950_v12 = vsel %vm908_vm7, %v3237_v3, %v10432_v10  ;;  %v8959_v43 = vsel %vm4147_vm8, %v8488_v22, %v4061_v61  ;;  %v8968_v3 = vperm.slane %v1580_v58, %v10008_v37  ;;  %v10440_v22 = vunpack.i.h.bf16 %v10434_v28  ;;  %v9000_v8 = vpop.permute.xlu1 %5119 }
 0x3bd   : > { %v920_v6 = vsel %vm351_vm1, %v10436_v9, %v10435_v44  ;;  %v3123_v33 = vrot.slane %v10442_v55, 4  ;;  %v2375_v2 = vrot.slane %v8937_v27, 4  ;;  %v10443_v46 = vunpack.i.h.bf16 %v10438_v53  ;;  %4024 = vrot.lane.b32.xlu1 %v3930_v30, %s5366_s16  ;;  %v10447_v9 = vld [vmem:[#allocation61_spill] sm:$0xff] }
 0x3be   : > { %v8973_v41 = vsel %vm908_vm7, %v920_v6, %v10439_v25  ;;  %v923_v7 = vsel %vm351_vm1, %v10441_v60, %v10440_v22  ;;  %v1607_v16 = vrot.slane %v8945_v39, 4  ;;  %v3734_v59 = vsel %vm585_vm5, %v10444_v19, %v3733_v48  ;;  %v9008_v48 = vpop.permute.xlu2 %5144  ;;  %v10448_v60 = vld [vmem:[#allocation11_spill] sm:$0xff] }
 0x3bf   : > { %v8985_v58 = vsel %vm908_vm7, %v923_v7, %v10443_v46  ;;  %v10445_v36 = vpack.i.bf16 %v8547_v62, %v8719_v14  ;;  %v3536_v61 = vsel %vm585_vm5, 0.0, %v3535_v23  ;;  %v2371_v13 = vrot.slane %v8942_v15, 4  ;;  %v10455_v15 = vld [vmem:[#allocation23_spill] sm:$0xff] }
 0x3c0   : > { %v3731_v10 = vrot.slane %v10444_v19, 4  ;;  %v1603_v28 = vrot.slane %v8968_v3, 4  ;;  %v9005_v44 = vperm.slane %v8815_v40, %v10008_v37  ;;  %v4962_v6 = vunpack.i.h.bf16 %v10447_v9 }
 0x3c1   : > { %5244 = vrot.lane.b32.xlu2 %v10445_v36, %s5366_s16  ;;  %v3124_v62 = vsel %vm585_vm5, 0.0, %v3123_v33  ;;  %v2376_v14 = vsel %vm585_vm5, 0.0, %v2375_v2  ;;  %v4961_v23 = vunpack.i.l.bf16 %v10447_v9  ;;  %v1608_v25 = vsel %vm585_vm5, 0.0, %v1607_v16  ;;  %v10449_v36 = vld [vmem:[#allocation45_spill] sm:$0xff] }
 0x3c2   : > { %10446 = vst [vmem:[#allocation124_spill] sm:$0xff] %v9005_v44  ;;  %v5273_v53 = vpack.i.bf16 %v3124_v62, %v3536_v61  ;;  %v3742_v22 = vperm.slane %v3734_v59, %v10008_v37  ;;  %v4947_v7 = vunpack.i.h.bf16 %v10448_v60  ;;  %v4946_v40 = vunpack.i.l.bf16 %v10448_v60  ;;  %v10450_v61 = vld [vmem:[#allocation24_spill] sm:$0xff]  ;;  %v10451_v60 = vld [vmem:[#allocation55_spill] sm:$0xff] }
 0x3c3   : > { %v2372_v30 = vsel %vm585_vm5, 0.0, %v2371_v13  ;;  %v1604_v33 = vsel %vm585_vm5, 0.0, %v1603_v28  ;;  %v3927_v2 = vrot.slane %v9005_v44, 4  ;;  %v3732_v19 = vsel %vm585_vm5, %v3731_v10, %v10437_v50 }
 0x3c4   : > { %5274 = vrot.lane.b32.xlu0 %v5273_v53, %s5367_s17  ;;  %v5258_v46 = vpack.i.bf16 %v2376_v14, %v2372_v30  ;;  %v4932_v16 = vunpack.i.h.bf16 %v10449_v36  ;;  %v4931_v59 = vunpack.i.l.bf16 %v10449_v36  ;;  %v3242_v9 = vsel %vm905_vm6, %v10450_v61, %v4962_v6  ;;  %v10452_v53 = vld [vmem:[#allocation19_spill] sm:$0xff]  ;;  %v5150_v30 = vpop.permute.xlu0 %5149  ;;  %v3965_v61 = vpop.permute.xlu1 %3964 }
 0x3c5   : > { %v5253_v62 = vpack.i.bf16 %v1608_v25, %v1604_v33  ;;  %v3239_v13 = vsel %vm905_vm6, %v10451_v60, %v4961_v23  ;;  %v4952_v14 = vunpack.i.h.bf16 %v10452_v53  ;;  %v4951_v28 = vunpack.i.l.bf16 %v10452_v53  ;;  %v10454_v60 = vld [vmem:[#allocation87_spill] sm:$0xff] }
 0x3c6   : > { %5259 = vrot.lane.b32.xlu1 %v5258_v46, %s5367_s17  ;;  %v3757_v44 = vrot.slane %v3742_v22, 4  ;;  %v5102_v50 = vunpack.i.h.bf16 %v8841_v0  ;;  %v5152_v10 = vunpack.i.h.bf16 %v5150_v30  ;;  %v5151_v36 = vunpack.i.l.bf16 %v5150_v30  ;;  %v3957_v27 = vpop.permute.xlu2 %3956 }
 0x3c7   : > { %v9035_v6 = vperm.slane %v3732_v19, %v10008_v37  ;;  %v5101_v25 = vunpack.i.l.bf16 %v8841_v0  ;;  %v5127_v23 = vunpack.i.h.bf16 %v8888_v29  ;;  %v5126_v33 = vunpack.i.l.bf16 %v8888_v29  ;;  %v10456_v19 = vld [vmem:[#allocation83_spill] sm:$0xff] }
 0x3c8   : > { %v3928_v46 = vsel %vm585_vm5, 0.0, %v3927_v2  ;;  %v3641_v53 = vsel %vm905_vm6, %v10454_v60, %v5152_v10  ;;  %v3240_v30 = vsel %vm351_vm1, %v3239_v13, %v4931_v59  ;;  %v3243_v37 = vsel %vm351_vm1, %v3242_v9, %v4932_v16 }
 0x3c9   : > { %5254 = vrot.lane.b32.xlu2 %v5253_v62, %s5367_s17  ;;  %10453 = vst [vmem:[#allocation123_spill] sm:$0xff] %v9035_v6  ;;  %v3638_v62 = vsel %vm905_vm6, %v10455_v15, %v5151_v36  ;;  %v4033_v0 = vsel %vm905_vm6, %v10456_v19, %v3957_v27  ;;  %v3642_v29 = vsel %vm351_vm1, %v3641_v53, %v5102_v50  ;;  %v10458_v50 = vld [vmem:[#allocation68_spill] sm:$0xff]  ;;  %v5107_v53 = vunpack.i.h.bf16 %v8916_v18 }
 0x3ca   : > { %v3639_v56 = vsel %vm351_vm1, %v3638_v62, %v5101_v25  ;;  %v9052_v2 = vsel %vm908_vm7, %v3240_v30, %v4946_v40  ;;  %v4034_v10 = vsel %vm351_vm1, %v4033_v0, %v8790_v54  ;;  %v3643_v36 = vsel %vm908_vm7, %v3642_v29, %v5127_v23  ;;  %v10457_v40 = vld [vmem:[#allocation56_spill] sm:$0xff]  ;;  %v10459_v23 = vld [vmem:[#allocation57_spill] sm:$0xff]  ;;  %v10463_v29 = vld [vmem:[#allocation38_spill] sm:$0xff] }
 0x3cb   : > { %v3640_v15 = vsel %vm908_vm7, %v3639_v56, %v5126_v33  ;;  %v9059_v59 = vsel %vm908_vm7, %v3243_v37, %v4947_v7  ;;  %v4035_v16 = vsel %vm908_vm7, %v4034_v10, %v3965_v61  ;;  %v4133_v9 = vrot.slane %v3643_v36, 4  ;;  %v10462_v19 = vld [vmem:[#allocation28_spill] sm:$0xff] }
 0x3cc   : > { %4016 = vrot.lane.b32.xlu0 %v3928_v46, %s5367_s17  ;;  %v4132_v27 = vrot.slane %v3640_v15, 4  ;;  %4525 = vmatpush.msk.msrb.mxu2 %vm4147_vm8, %v4035_v16  ;;  %v928_v13 = vsel %vm905_vm6, %v10457_v40, %v4952_v14  ;;  %v3758_v54 = vsel %vm585_vm5, 0.0, %v3757_v44  ;;  %v5155_v56 = vpop.permute.xlu0 %5154  ;;  %v925_v33 = vsel %vm905_vm6, %v10459_v23, %v4951_v28  ;;  %v9080_v30 = vpop.permute.xlu1 %5134 }
 0x3cd   : > { %v4174_v25 = vsel %vm4147_vm8, %v8861_v35, %v4133_v9  ;;  %v5157_v61 = vunpack.i.h.bf16 %v5155_v56  ;;  %v5156_v46 = vunpack.i.l.bf16 %v5155_v56  ;;  %v3755_v14 = vrot.slane %v9035_v6, 4  ;;  %v10461_v35 = vld [vmem:[#allocation88_spill] sm:$0xff]  ;;  %v10464_v56 = vld [vmem:[#allocation10_spill] sm:$0xff]  ;;  %v10500_v6 = vld [vmem:[#allocation81_spill] sm:$0xff] }
 0x3ce   : > { %3936 = vrot.lane.b32.xlu1 %v3742_v22, %s5365_s15  ;;  %v4173_v7 = vsel %vm4147_vm8, %v10458_v50, %v4132_v27  ;;  %v10460_v22 = vld [vmem:[#allocation108_spill] sm:$0xff]  ;;  %v5106_v62 = vunpack.i.l.bf16 %v8916_v18  ;;  %4267 = vmatpush.msrb.mxu2 %v4174_v25  ;;  %v4937_v28 = vunpack.i.h.bf16 %v10461_v35  ;;  %v4936_v37 = vunpack.i.l.bf16 %v10461_v35  ;;  %v3977_v15 = vpop.permute.xlu2 %3976 }
 0x3cf   : > { %4247 = vmatpush.msrb.mxu3 %v4173_v7  ;;  %v4922_v60 = vunpack.i.h.bf16 %v10460_v22  ;;  %v4921_v44 = vunpack.i.l.bf16 %v10460_v22  ;;  %v1330_v0 = vsel %vm905_vm6, %v10462_v19, %v5157_v61  ;;  %v1327_v10 = vsel %vm905_vm6, %v10463_v29, %v5156_v46  ;;  %v10465_v25 = vld [vmem:[#allocation72_spill] sm:$0xff]  ;;  %v10467_v46 = vld [vmem:[#allocation118_spill] sm:$0xff] }
 0x3d0   : > { %v9090_v36 = vsel %vm351_vm1, %v1330_v0, %v5107_v53  ;;  %v9093_v18 = vsel %vm351_vm1, %v1327_v10, %v5106_v62  ;;  %4268 = vmatpush.msrb.mxu2 %v8914_v24  ;;  %v3756_v9 = vsel %vm585_vm5, 0.0, %v3755_v14  ;;  %v5011_v23 = vunpack.i.l.bf16 %v10465_v25  ;;  %v10469_v29 = vld [vmem:[#allocation110_spill] sm:$0xff] }
 0x3d1   : > { %3940 = vrot.lane.b32.xlu2 %v3758_v54, %s5366_s16  ;;  %4248 = vmatpush.msrb.mxu3 %v8911_v5  ;;  %v926_v16 = vsel %vm351_vm1, %v925_v33, %v4921_v44  ;;  %v929_v27 = vsel %vm351_vm1, %v928_v13, %v4922_v60  ;;  %v10466_v33 = vld [vmem:[#allocation95_spill] sm:$0xff]  ;;  %v4976_v25 = vunpack.i.l.bf16 %v10363_v63  ;;  %v5092_v63 = vunpack.i.h.bf16 %v8783_v32 }
 0x3d2   : > { %v9101_v40 = vsel %vm908_vm7, %v926_v16, %v4936_v37  ;;  %v9104_v5 = vsel %vm908_vm7, %v929_v27, %v4937_v28  ;;  %4269 = vmatpush.msrb.mxu2 %v8924_v21  ;;  %v10468_v28 = vld [vmem:[#allocation111_spill] sm:$0xff] }
 0x3d3   : > { %4249 = vmatpush.msrb.mxu3 %v8921_v45  ;;  %v5122_v45 = vunpack.i.h.bf16 %v9000_v8  ;;  %v4083_v37 = vrot.slane %v10468_v28, 4  ;;  %v10476_v28 = vld [vmem:[#allocation122_spill] sm:$0xff] }
 0x3d4   : > { %3932 = vrot.lane.b32.xlu0 %v3756_v9, %s5367_s17  ;;  %4270 = vmatpush.msrb.mxu2 %v8959_v43  ;;  %v5170_v24 = vpop.permute.xlu0 %5169  ;;  %v9111_v54 = vpop.permute.xlu1 %5164  ;;  %v1707_v43 = vsel %vm905_vm6, %v10466_v33, %v5011_v23  ;;  %v10472_v9 = vld [vmem:[#allocation71_spill] sm:$0xff]  ;;  %v4986_v23 = vunpack.i.l.bf16 %v10364_v11 }
 0x3d5   : > { %4250 = vmatpush.msrb.mxu3 %v8955_v38  ;;  %v5172_v13 = vunpack.i.h.bf16 %v5170_v24  ;;  %v4971_v38 = vunpack.i.l.bf16 %v10369_v42  ;;  %v4991_v42 = vunpack.i.l.bf16 %v10375_v57  ;;  %v5171_v11 = vunpack.i.l.bf16 %v5170_v24 }
 0x3d6   : > { %v9115_v7 = vpop.permute.xlu2 %5159  ;;  %v5166_v24 = vunpack.i.l.bf16 %v9111_v54 }
 0x3d7   : > { %v2882_v50 = vsel %vm905_vm6, %v10464_v56, %v5172_v13  ;;  %v1708_v22 = vsel %vm351_vm1, %v1707_v43, %v4971_v38  ;;  %v4966_v13 = vunpack.i.l.bf16 %v10366_v51  ;;  %v4996_v38 = vunpack.i.l.bf16 %v10372_v4 }
 0x3d8   : > { %v9119_v21 = vsel %vm351_vm1, %v2882_v50, %v5122_v45  ;;  %v1709_v0 = vsel %vm908_vm7, %v1708_v22, %v4991_v42  ;;  %v10473_v45 = vld [vmem:[#allocation93_spill] sm:$0xff]  ;;  %v10475_v42 = vld [vmem:[#allocation70_spill] sm:$0xff] }
 0x3d9   : > { %v9146_v16 = vsel %vm4147_vm8, %v1709_v0, %v4083_v37  ;;  %v5087_v4 = vunpack.i.h.bf16 %v10475_v42  ;;  %v5001_v0 = vunpack.i.l.bf16 %v10365_v1  ;;  %v10486_v42 = vld [vmem:[#allocation77_spill] sm:$0xff] }
 0x3da   : > { %10470 = vst [vmem:[#allocation106_spill] sm:$0xff] %v9146_v16 }
 0x3dc   : > { %v3969_v61 = vpop.permute.xlu0 %3968  ;;  %v9129_v44 = vpop.permute.xlu1 %5174 }
 0x3dd   : > { %v4036_v14 = vsel %vm905_vm6, %v10467_v46, %v3969_v61  ;;  %v10474_v61 = vld [vmem:[#allocation113_spill] sm:$0xff] }
 0x3de   : > { %v4037_v60 = vsel %vm351_vm1, %v4036_v14, %v8819_v52  ;;  %v9131_v53 = vpop.permute.xlu2 %3984  ;;  %v5006_v52 = vunpack.i.l.bf16 %v10469_v29  ;;  %v5021_v46 = vunpack.i.l.bf16 %v10474_v61  ;;  %v4981_v29 = vunpack.i.l.bf16 %v10370_v34  ;;  %v10484_v61 = vld [vmem:[#allocation97_spill] sm:$0xff] }
 0x3df   : > { %v4038_v62 = vsel %vm908_vm7, %v4037_v60, %v3977_v15  ;;  %v10471_v15 = vld [vmem:[#allocation59_spill] sm:$0xff] }
 0x3e0   : > { %4527 = vmatpush.msk.msra.mxu3 %vm4147_vm8, %v4038_v62  ;;  %v5016_v27 = vunpack.i.l.bf16 %v10471_v15  ;;  %v1315_v57 = vsel %vm905_vm6, %v10472_v9, %v5006_v52  ;;  %v10478_v52 = vld [vmem:[#allocation99_spill] sm:$0xff]  ;;  %v5057_v9 = vunpack.i.h.bf16 %v10401_v49 }
 0x3e1   : > { %v1316_v43 = vsel %vm351_vm1, %v1315_v57, %v4966_v13  ;;  %v2867_v15 = vsel %vm905_vm6, %v10478_v52, %v5021_v46  ;;  %v10479_v57 = vld [vmem:[#allocation91_spill] sm:$0xff]  ;;  %v10485_v46 = vld [vmem:[#allocation33_spill] sm:$0xff]  ;;  %v5141_v52 = vunpack.i.l.bf16 %v8988_v31 }
 0x3e2   : > { %v2475_v56 = vsel %vm905_vm6, %v10473_v45, %v5016_v27  ;;  %v1317_v22 = vsel %vm908_vm7, %v1316_v43, %v4986_v23  ;;  %v5042_v27 = vunpack.i.h.bf16 %v10386_v20  ;;  %v5037_v32 = vunpack.i.h.bf16 %v10479_v57  ;;  %v10480_v45 = vld [vmem:[#allocation73_spill] sm:$0xff] }
 0x3e3   : > { %v2476_v51 = vsel %vm351_vm1, %v2475_v56, %v4976_v25  ;;  %v4059_v62 = vrot.slane %v1317_v22, 4  ;;  %v5067_v56 = vunpack.i.h.bf16 %v10480_v45  ;;  %v10481_v25 = vld [vmem:[#allocation32_spill] sm:$0xff]  ;;  %v10482_v23 = vld [vmem:[#allocation69_spill] sm:$0xff]  ;;  %v5072_v20 = vunpack.i.h.bf16 %v10484_v61 }
 0x3e4   : > { %v9136_v35 = vpop.permute.xlu0 %4008  ;;  %v2477_v60 = vsel %vm908_vm7, %v2476_v51, %v4996_v38  ;;  %v2484_v1 = vsel %vm905_vm6, %v10481_v25, %v5092_v63  ;;  %v2879_v34 = vsel %vm905_vm6, %v10482_v23, %v5171_v11  ;;  %v10483_v38 = vld [vmem:[#allocation65_spill] sm:$0xff]  ;;  %v1716_v49 = vsel %vm905_vm6, %v10485_v46, %v5087_v4  ;;  %v10487_v25 = vld [vmem:[#allocation115_spill] sm:$0xff]  ;;  %v10488_v23 = vld [vmem:[#allocation64_spill] sm:$0xff] }
 0x3e5   : > { %v9172_v37 = vsel %vm4147_vm8, %v10476_v28, %v4059_v62  ;;  %v4086_v43 = vrot.slane %v10483_v38, 4  ;;  %v5121_v51 = vunpack.i.l.bf16 %v9000_v8  ;;  %v2868_v62 = vsel %vm351_vm1, %v2867_v15, %v4981_v29 }
 0x3e6   : > { %v9143_v10 = vpop.permute.xlu2 %5189  ;;  %10477 = vst [vmem:[#allocation14_spill] sm:$0xff] %v9172_v37  ;;  %v5062_v28 = vunpack.i.h.bf16 %v10486_v42  ;;  %v5116_v63 = vunpack.i.l.bf16 %v8844_v17  ;;  %v2869_v57 = vsel %vm908_vm7, %v2868_v62, %v5001_v0  ;;  %v2487_v4 = vsel %vm905_vm6, %v10487_v25, %v5166_v24 }
 0x3e7   : > { %v9139_v19 = vpop.permute.xlu1 %5179  ;;  %v2880_v45 = vsel %vm351_vm1, %v2879_v34, %v5121_v51  ;;  %v2485_v8 = vsel %vm351_vm1, %v2484_v1, %v5042_v27  ;;  %v2878_v29 = vsel %vm908_vm7, %v10488_v23, %v5072_v20  ;;  %v1717_v61 = vsel %vm351_vm1, %v1716_v49, %v5037_v32  ;;  %v10489_v51 = vld [vmem:[#allocation50_spill] sm:$0xff] }
 0x3e8   : > { %v2486_v15 = vsel %vm908_vm7, %v2485_v8, %v5067_v56  ;;  %v4110_v38 = vrot.slane %v2878_v29, 4  ;;  %v4107_v46 = vrot.slane %v2869_v57, 4  ;;  %v5146_v42 = vunpack.i.l.bf16 %v9008_v48  ;;  %v10491_v57 = vld [vmem:[#allocation35_spill] sm:$0xff] }
 0x3e9   : > { %v5161_v0 = vunpack.i.l.bf16 %v9115_v7  ;;  %v1718_v34 = vsel %vm908_vm7, %v1717_v61, %v5062_v28  ;;  %v1326_v24 = vsel %vm908_vm7, %v10489_v51, %v5057_v9  ;;  %v2488_v20 = vsel %vm351_vm1, %v2487_v4, %v5116_v63 }
 0x3ea   : > { %v9217_v27 = vsel %vm4147_vm8, %v2486_v15, %v4110_v38  ;;  %v9220_v1 = vsel %vm4147_vm8, %v1718_v34, %v4086_v43  ;;  %v4062_v56 = vrot.slane %v1326_v24, 4  ;;  %v2489_v49 = vsel %vm908_vm7, %v2488_v20, %v5141_v52  ;;  %v10492_v43 = vld [vmem:[#allocation31_spill] sm:$0xff]  ;;  %v10493_v52 = vld [vmem:[#allocation37_spill] sm:$0xff] }
 0x3eb   : > { %v2881_v62 = vsel %vm908_vm7, %v2880_v45, %v5146_v42  ;;  %v9228_v28 = vsel %vm4147_vm8, %v2477_v60, %v4107_v46  ;;  %v1719_v23 = vsel %vm905_vm6, %v10492_v43, %v5161_v0  ;;  %v5111_v29 = vunpack.i.l.bf16 %v10493_v52  ;;  %v10494_v38 = vld [vmem:[#allocation51_spill] sm:$0xff] }
 0x3ec   : > { %v9154_v50 = vpop.permute.xlu0 %5184  ;;  %10490 = vst [vmem:[#allocation18_spill] sm:$0xff] %v9228_v28  ;;  %v9232_v9 = vsel %vm4147_vm8, %v10491_v57, %v4062_v56  ;;  %v4111_v25 = vrot.slane %v2881_v62, 4  ;;  %v5131_v45 = vunpack.i.l.bf16 %v8932_v26  ;;  %v5136_v60 = vunpack.i.l.bf16 %v9080_v30  ;;  %v9251_v42 = vld [vmem:[%s9523_s2] sm:$0xff] }
 0x3ed   : > { %v1720_v15 = vsel %vm351_vm1, %v1719_v23, %v5111_v29  ;;  %v4087_v61 = vrot.slane %v10494_v38, 4  ;;  %4526 = vmatmul.msk.f32.vlgmr.msrb.gmra.mxu2 %vm4187_vm9, %v9251_v42  ;;  %4524 = vmatmul.msk.f32.vlgmr.msrb.gmra.mxu3 %vm4187_vm9, %v9251_v42  ;;  %v5176_v43 = vunpack.i.l.bf16 %v9129_v44  ;;  %v10496_v29 = vld [vmem:[#allocation44_spill] sm:$0xff] }
 0x3ee   : > { %v9163_v14 = vpop.permute.xlu2 %5214  ;;  %v9239_v4 = vsel %vm4147_vm8, %v2489_v49, %v4111_v25  ;;  %v1329_v46 = vsel %vm908_vm7, %v9093_v18, %v5131_v45  ;;  %v1721_v0 = vsel %vm908_vm7, %v1720_v15, %v5136_v60  ;;  %v5177_v25 = vunpack.i.h.bf16 %v9129_v44  ;;  %v10497_v60 = vld [vmem:[#allocation20_spill] sm:$0xff] }
 0x3ef   : > { %v9159_v33 = vpop.permute.xlu1 %5194  ;;  %v4063_v34 = vrot.slane %v1329_v46, 4  ;;  %v9261_v24 = vsel %vm4147_vm8, %v1721_v0, %v4087_v61  ;;  %v10498_v46 = vld [vmem:[#allocation22_spill] sm:$0xff] }
 0x3f0   : > { %v5076_v0 = vunpack.i.l.bf16 %v10498_v46  ;;  %v5077_v37 = vunpack.i.h.bf16 %v10498_v46  ;;  %v10503_v46 = vld [vmem:[#allocation109_spill] sm:$0xff] }
 0x3f1   : > { %v9265_v18 = vsel %vm4147_vm8, %v8973_v41, %v4063_v34 }
 0x3f4   : > { %v9182_v13 = vpop.permute.xlu0 %3996 }
 0x3f6   : > { %v9200_v11 = vpop.permute.xlu2 %5229 }
 0x3f7   : > { %v9194_v22 = vpop.permute.xlu1 %5199 }
 0x3fc   : > { %v9223_v32 = vpop.permute.xlu0 %4012 }
 0x3fe   : > { %v3981_v63 = vpop.permute.xlu2 %3980 }
 0x3ff   : > { %v9234_v8 = vpop.permute.xlu1 %5204 }
 0x404   : > { %v9258_v51 = vpop.permute.xlu0 %5224 }
 0x406   : > { %v9269_v20 = vpop.permute.xlu2 %4000 }
 0x407   : > { %v9267_v56 = vpop.permute.xlu1 %4020 }
 0x408   : > { %10495 = vst [vmem:[#allocation52_spill] sm:$0xff] %v9267_v56  ;;  %v5052_v56 = vunpack.i.h.bf16 %v10500_v6 }
 0x40c   : > { %v5235_v49 = vpop.permute.xlu0 %5234 }
 0x40d   : > { %v5237_v62 = vunpack.i.h.bf16 %v5235_v49  ;;  %v5236_v57 = vunpack.i.l.bf16 %v5235_v49 }
 0x40e   : > { %v4005_v61 = vpop.permute.xlu2 %4004 }
 0x40f   : > { %v5210_v23 = vpop.permute.xlu1 %5209  ;;  %v3647_v45 = vsel %vm905_vm6, %v10496_v29, %v5237_v62  ;;  %v3644_v15 = vsel %vm905_vm6, %v10497_v60, %v5236_v57  ;;  %v5167_v62 = vunpack.i.h.bf16 %v9111_v54  ;;  %v5162_v29 = vunpack.i.h.bf16 %v9115_v7  ;;  %v10499_v60 = vld [vmem:[#allocation117_spill] sm:$0xff] }
 0x410   : > { %v5212_v41 = vunpack.i.h.bf16 %v5210_v23  ;;  %v5211_v38 = vunpack.i.l.bf16 %v5210_v23  ;;  %v3645_v34 = vsel %vm351_vm1, %v3644_v15, %v5176_v43  ;;  %v3648_v49 = vsel %vm351_vm1, %v3647_v45, %v5177_v25  ;;  %v10501_v43 = vld [vmem:[#allocation42_spill] sm:$0xff] }
 0x411   : > { %v5027_v23 = vunpack.i.h.bf16 %v10499_v60  ;;  %v5026_v28 = vunpack.i.l.bf16 %v10499_v60  ;;  %v4039_v25 = vsel %vm905_vm6, %v10501_v43, %v3981_v63  ;;  %v5051_v45 = vunpack.i.l.bf16 %v10500_v6  ;;  %v10502_v15 = vld [vmem:[#allocation30_spill] sm:$0xff] }
 0x412   : > { %v3646_v44 = vsel %vm908_vm7, %v3645_v34, %v5211_v38  ;;  %v3649_v16 = vsel %vm908_vm7, %v3648_v49, %v5212_v41  ;;  %v3248_v38 = vsel %vm905_vm6, %v10502_v15, %v5076_v0  ;;  %v3635_v34 = vsel %vm905_vm6, %v10503_v46, %v5077_v37  ;;  %v10504_v6 = vld [vmem:[#allocation114_spill] sm:$0xff]  ;;  %v10507_v46 = vld [vmem:[#allocation76_spill] sm:$0xff] }
 0x413   : > { %v4134_v57 = vrot.slane %v3646_v44, 4  ;;  %v4135_v7 = vrot.slane %v3649_v16, 4  ;;  %v5112_v49 = vunpack.i.h.bf16 %v10493_v52  ;;  %v5117_v44 = vunpack.i.h.bf16 %v8844_v17  ;;  %v10505_v0 = vld [vmem:[#allocation34_spill] sm:$0xff]  ;;  %v10506_v16 = vld [vmem:[#allocation25_spill] sm:$0xff] }
 0x414   : > { %v9293_v41 = vpop.permute.xlu0 %5249  ;;  %v5132_v63 = vunpack.i.h.bf16 %v8932_v26  ;;  %v2490_v60 = vsel %vm905_vm6, %v10504_v6, %v5167_v62  ;;  %v1722_v43 = vsel %vm905_vm6, %v10505_v0, %v5162_v29  ;;  %v5147_v37 = vunpack.i.h.bf16 %v9008_v48 }
 0x415   : > { %v4175_v54 = vsel %vm4147_vm8, %v8950_v12, %v4134_v57  ;;  %v4040_v12 = vsel %vm351_vm1, %v4039_v25, %v9131_v53  ;;  %v4088_v57 = vrot.slane %v10506_v16, 4  ;;  %v5251_v52 = vunpack.i.l.bf16 %v9293_v41  ;;  %v10509_v16 = vld [vmem:[#allocation96_spill] sm:$0xff] }
 0x416   : > { %4287 = vmatpush.msra.mxu3 %v4175_v54  ;;  %v3249_v62 = vsel %vm351_vm1, %v3248_v38, %v5026_v28  ;;  %v5142_v29 = vunpack.i.h.bf16 %v8988_v31  ;;  %v5137_v54 = vunpack.i.h.bf16 %v9080_v30  ;;  %v4045_v53 = vsel %vm905_vm6, %v10507_v46, %v4005_v61 }
 0x417   : > { %v3989_v15 = vpop.permute.xlu1 %3988  ;;  %v4176_v48 = vsel %vm4147_vm8, %v9052_v2, %v4135_v7  ;;  %v2491_v25 = vsel %vm351_vm1, %v2490_v60, %v5117_v44  ;;  %v1723_v28 = vsel %vm351_vm1, %v1722_v43, %v5112_v49  ;;  %v1332_v31 = vsel %vm908_vm7, %v9090_v36, %v5132_v63  ;;  %v10508_v2 = vld [vmem:[#allocation107_spill] sm:$0xff] }
 0x418   : > { %v4041_v17 = vsel %vm908_vm7, %v4040_v12, %v3989_v15  ;;  %4288 = vmatpush.msra.mxu3 %v9217_v27  ;;  %v2884_v27 = vsel %vm908_vm7, %v9119_v21, %v5147_v37  ;;  %v2492_v30 = vsel %vm908_vm7, %v2491_v25, %v5142_v29  ;;  %v1724_v38 = vsel %vm908_vm7, %v1723_v28, %v5137_v54  ;;  %v10511_v54 = vld [vmem:[#allocation60_spill] sm:$0xff] }
 0x419   : > { %4529 = vmatpush.msk.msra.mxu2 %vm4147_vm8, %v4041_v17  ;;  %v4112_v61 = vrot.slane %v2884_v27, 4  ;;  %v4064_v6 = vrot.slane %v1332_v31, 4  ;;  %v9336_v7 = vsel %vm4147_vm8, %v1724_v38, %v4088_v57  ;;  %v9339_v21 = vsel %vm908_vm7, %v3249_v62, %v5051_v45  ;;  %v10512_v38 = vld [vmem:[#allocation12_spill] sm:$0xff] }
 0x41a   : > { %4289 = vmatpush.msra.mxu3 %v9220_v1  ;;  %v1333_v1 = vsel %vm905_vm6, %v10508_v2, %v5251_v52  ;;  %v3636_v36 = vsel %vm351_vm1, %v3635_v34, %v5027_v23  ;;  %v5181_v49 = vunpack.i.l.bf16 %v9139_v19  ;;  %v4046_v23 = vsel %vm351_vm1, %v4045_v53, %v9136_v35 }
 0x41b   : > { %v9312_v26 = vpop.permute.xlu2 %5244  ;;  %4307 = vmatpush.msra.mxu2 %v4176_v48  ;;  %v9347_v63 = vsel %vm4147_vm8, %v2492_v30, %v4112_v61  ;;  %v3637_v45 = vsel %vm908_vm7, %v3636_v36, %v5052_v56  ;;  %v5216_v43 = vunpack.i.l.bf16 %v9163_v14  ;;  %v4047_v56 = vsel %vm908_vm7, %v4046_v23, %v9223_v32 }
 0x41c   : > { %4290 = vmatpush.msra.mxu3 %v9232_v9  ;;  %v9344_v44 = vpop.permute.xlu0 %5264  ;;  %v9351_v9 = vsel %vm4147_vm8, %v8985_v58, %v4064_v6  ;;  %v4131_v34 = vrot.slane %v3637_v45, 4  ;;  %v1334_v60 = vsel %vm351_vm1, %v1333_v1, %v5181_v49  ;;  %v5186_v35 = vunpack.i.l.bf16 %v9154_v50 }
 0x41d   : > { %4308 = vmatpush.msra.mxu2 %v9239_v4  ;;  %4528 = vmatmul.msk.f32.vlgmr.msra.gmra.mxu3 %vm4187_vm9, %v9251_v42  ;;  %v5252_v4 = vunpack.i.h.bf16 %v9293_v41  ;;  %v1335_v41 = vsel %vm908_vm7, %v1334_v60, %v5216_v43  ;;  %v5182_v32 = vunpack.i.h.bf16 %v9139_v19  ;;  %v4089_v46 = vrot.slane %v10511_v54, 4 }
 0x41e   : > { %v9370_v57 = vsel %vm4147_vm8, %v10509_v16, %v4131_v34  ;;  %v4065_v17 = vrot.slane %v1335_v41, 4  ;;  %v5187_v53 = vunpack.i.h.bf16 %v9154_v50  ;;  %v5201_v31 = vunpack.i.l.bf16 %v9194_v22  ;;  %v10514_v41 = vld [vmem:[#allocation105_spill] sm:$0xff] }
 0x41f   : > { %v5220_v0 = vpop.permute.xlu1 %5219  ;;  %4309 = vmatpush.msra.mxu2 %v9261_v24  ;;  %v10510_v24 = vld [vmem:[#allocation75_spill] sm:$0xff]  ;;  %v5267_v43 = vunpack.i.h.bf16 %v9344_v44  ;;  %v5192_v54 = vunpack.i.h.bf16 %v9143_v10 }
 0x420   : > { %v1336_v37 = vsel %vm905_vm6, %v10510_v24, %v5252_v4  ;;  %v5221_v52 = vunpack.i.l.bf16 %v5220_v0  ;;  %v5222_v30 = vunpack.i.h.bf16 %v5220_v0  ;;  %v5266_v4 = vunpack.i.l.bf16 %v9344_v44  ;;  %v10515_v24 = vld [vmem:[#allocation78_spill] sm:$0xff] }
 0x421   : > { %4310 = vmatpush.msra.mxu2 %v9265_v18  ;;  %v1337_v27 = vsel %vm351_vm1, %v1336_v37, %v5182_v32  ;;  %v5196_v44 = vunpack.i.l.bf16 %v9159_v33 }
 0x422   : > { %4530 = vmatmul.msk.f32.vlgmr.msra.gmra.mxu2 %vm4187_vm9, %v9251_v42  ;;  %v2885_v16 = vsel %vm905_vm6, %v10514_v41, %v5266_v4 }
 0x423   : > { %v5255_v58 = vpop.permute.xlu2 %5254  ;;  %4533 = vmatpush.msk.msrb.mxu2 %vm4147_vm8, %v4047_v56 }
 0x424   : > { %v5257_v15 = vunpack.i.h.bf16 %v5255_v58  ;;  %v5256_v12 = vunpack.i.l.bf16 %v5255_v58  ;;  %v5270_v48 = vpop.permute.xlu0 %5269 }
 0x425   : > { %v5271_v28 = vunpack.i.l.bf16 %v5270_v48  ;;  %v5272_v60 = vunpack.i.h.bf16 %v5270_v48  ;;  %v5232_v48 = vunpack.i.h.bf16 %v9200_v11 }
 0x426   : > { %v1725_v18 = vsel %vm905_vm6, %v8968_v3, %v5256_v12  ;;  %v1728_v62 = vsel %vm905_vm6, %v8945_v39, %v5257_v15  ;;  %v9387_v3 = vsel %vm4147_vm8, %v9101_v40, %v4065_v17  ;;  %v5217_v39 = vunpack.i.h.bf16 %v9163_v14  ;;  %v10513_v40 = vld [vmem:[#allocation54_spill] sm:$0xff] }
 0x427   : > { %v1726_v29 = vsel %vm351_vm1, %v1725_v18, %v5186_v35  ;;  %v5240_v61 = vpop.permute.xlu1 %5239  ;;  %v1729_v50 = vsel %vm351_vm1, %v1728_v62, %v5187_v53  ;;  %v3650_v6 = vsel %vm905_vm6, %v10512_v38, %v5271_v28  ;;  %v4090_v1 = vrot.slane %v10513_v40, 4 }
 0x428   : > { %v1727_v25 = vsel %vm908_vm7, %v1726_v29, %v5221_v52  ;;  %v5241_v2 = vunpack.i.l.bf16 %v5240_v61  ;;  %v3651_v36 = vsel %vm351_vm1, %v3650_v6, %v5201_v31  ;;  %v1730_v49 = vsel %vm908_vm7, %v1729_v50, %v5222_v30  ;;  %v10517_v6 = vld [vmem:[#allocation89_spill] sm:$0xff] }
 0x429   : > { %v9391_v19 = vsel %vm4147_vm8, %v1727_v25, %v4089_v46  ;;  %v1338_v45 = vsel %vm908_vm7, %v1337_v27, %v5217_v39  ;;  %v9403_v14 = vsel %vm4147_vm8, %v1730_v49, %v4090_v1  ;;  %v3653_v37 = vsel %vm905_vm6, %v10515_v24, %v5272_v60  ;;  %v10520_v24 = vld [vmem:[#allocation124_spill] sm:$0xff] }
 0x42a   : > { %v4066_v23 = vrot.slane %v1338_v45, 4  ;;  %v3652_v34 = vsel %vm908_vm7, %v3651_v36, %v5241_v2  ;;  %v5202_v52 = vunpack.i.h.bf16 %v9194_v22  ;;  %v5197_v17 = vunpack.i.h.bf16 %v9159_v33  ;;  %v10518_v45 = vld [vmem:[#allocation103_spill] sm:$0xff] }
 0x42b   : > { %v4136_v12 = vrot.slane %v3652_v34, 4  ;;  %v5242_v32 = vunpack.i.h.bf16 %v5240_v61  ;;  %v2886_v29 = vsel %vm351_vm1, %v2885_v16, %v5196_v44  ;;  %v5191_v46 = vunpack.i.l.bf16 %v9143_v10  ;;  %v10521_v44 = vld [vmem:[#allocation52_spill] sm:$0xff] }
 0x42c   : > { %v9409_v0 = vsel %vm4147_vm8, %v9104_v5, %v4066_v23  ;;  %v3993_v58 = vpop.permute.xlu0 %3992  ;;  %v3654_v22 = vsel %vm351_vm1, %v3653_v37, %v5202_v52  ;;  %v5231_v53 = vunpack.i.l.bf16 %v9200_v11  ;;  %v5206_v25 = vunpack.i.l.bf16 %v9234_v8  ;;  %v10519_v23 = vld [vmem:[#allocation49_spill] sm:$0xff] }
 0x42d   : > { %v4042_v15 = vsel %vm905_vm6, %v8825_v47, %v3993_v58  ;;  %v10516_v47 = vld [vmem:[#allocation79_spill] sm:$0xff]  ;;  %v4177_v62 = vsel %vm4147_vm8, %v9059_v59, %v4136_v12  ;;  %v5207_v59 = vunpack.i.h.bf16 %v9234_v8  ;;  %v5227_v27 = vunpack.i.h.bf16 %v9258_v51 }
 0x42e   : > { %v4043_v56 = vsel %vm351_vm1, %v4042_v15, %v9182_v13  ;;  %v2888_v18 = vsel %vm905_vm6, %v10516_v47, %v5267_v43  ;;  %v4181_v13 = vld [vmem:[%s9524_s3] sm:$0xff]  ;;  %v3655_v39 = vsel %vm908_vm7, %v3654_v22, %v5242_v32  ;;  %v2887_v10 = vsel %vm908_vm7, %v2886_v29, %v5231_v53  ;;  %v10525_v29 = vld [vmem:[#allocation14_spill] sm:$0xff] }
 0x42f   : > { %v9416_v35 = vpop.permute.xlu1 %4024  ;;  %v4044_v5 = vsel %vm908_vm7, %v4043_v56, %v9269_v20  ;;  %v5368_v20 = vmov 0   ;;  %v2889_v33 = vsel %vm351_vm1, %v2888_v18, %v5197_v17  ;;  %v5226_v61 = vunpack.i.l.bf16 %v9258_v51  ;;  %v10522_v32 = vld [vmem:[#allocation123_spill] sm:$0xff] }
 0x430   : > { %4531 = vmatpush.msk.msrb.mxu3 %vm4147_vm8, %v4044_v5  ;;  %5278 = vset.pattern.permute.xlu0 %v5368_v20  ;;  %v5247_v50 = vunpack.i.h.bf16 %v9312_v26  ;;  %v5246_v11 = vunpack.i.l.bf16 %v9312_v26  ;;  %v2890_v8 = vsel %vm908_vm7, %v2889_v33, %v5232_v48  ;;  %v4137_v26 = vrot.slane %v3655_v39, 4  ;;  %v10524_v20 = vld [vmem:[#allocation106_spill] sm:$0xff] }
 0x431   : > { %4184 = vperm.xlu0 %5278, %v4181_v13   ;;  %v4113_v49 = vrot.slane %v2887_v10, 4  ;;  %v4114_v4 = vrot.slane %v2890_v8, 4 }
 0x432   : > { %4327 = vmatpush.msrb.mxu3 %v4177_v62  ;;  %v3941_v62 = vpop.permute.xlu2 %3940 }
 0x434   : > { %4328 = vmatpush.msrb.mxu3 %v9347_v63 }
 0x436   : > { %v5275_v28 = vpop.permute.xlu0 %5274  ;;  %4329 = vmatpush.msrb.mxu3 %v9336_v7 }
 0x437   : > { %v5277_v31 = vunpack.i.h.bf16 %v5275_v28  ;;  %v5276_v30 = vunpack.i.l.bf16 %v5275_v28 }
 0x438   : > { %v5260_v38 = vpop.permute.xlu1 %5259  ;;  %4330 = vmatpush.msrb.mxu3 %v9351_v9 }
 0x439   : > { %v3245_v63 = vsel %vm905_vm6, %v10442_v55, %v5277_v31  ;;  %v3656_v2 = vsel %vm905_vm6, %v10517_v6, %v5276_v30  ;;  %v5262_v40 = vunpack.i.h.bf16 %v5260_v38  ;;  %v5261_v1 = vunpack.i.l.bf16 %v5260_v38  ;;  %4532 = vmatmul.msk.f32.vlgmr.msrb.gmra.mxu3 %vm4187_vm9, %v9251_v42 }
 0x43a   : > { %v3657_v36 = vsel %vm351_vm1, %v3656_v2, %v5206_v25  ;;  %v3246_v51 = vsel %vm351_vm1, %v3245_v63, %v5207_v59 }
 0x43b   : > { %v2496_v7 = vsel %vm905_vm6, %v10518_v45, %v5262_v40  ;;  %v2493_v34 = vsel %vm905_vm6, %v10519_v23, %v5261_v1  ;;  %v3247_v55 = vsel %vm908_vm7, %v3246_v51, %v5247_v50  ;;  %v3658_v43 = vsel %vm908_vm7, %v3657_v36, %v5246_v11 }
 0x43c   : > { %v4178_v60 = vsel %vm4147_vm8, %v3247_v55, %v4137_v26  ;;  %v2494_v9 = vsel %vm351_vm1, %v2493_v34, %v5191_v46  ;;  %v2497_v58 = vsel %vm351_vm1, %v2496_v7, %v5192_v54  ;;  %v4138_v5 = vrot.slane %v3658_v43, 4 }
 0x43d   : > { %4347 = vmatpush.msrb.mxu2 %v4178_v60  ;;  %v2495_v15 = vsel %vm908_vm7, %v2494_v9, %v5226_v61  ;;  %v2498_v12 = vsel %vm908_vm7, %v2497_v58, %v5227_v27 }
 0x43e   : > { %v4017_v56 = vpop.permute.xlu0 %4016  ;;  %v4170_v41 = vsel %vm4147_vm8, %v2495_v15, %v4113_v49  ;;  %v4171_v16 = vsel %vm4147_vm8, %v2498_v12, %v4114_v4  ;;  %v4179_v18 = vsel %vm4147_vm8, %v9339_v21, %v4138_v5  ;;  %v10523_v21 = vld [vmem:[#allocation18_spill] sm:$0xff] }
 0x43f   : > { %v4048_v37 = vsel %vm905_vm6, %v10520_v24, %v4017_v56  ;;  %4348 = vmatpush.msrb.mxu2 %v4170_v41 }
 0x440   : > { %v4049_v52 = vsel %vm351_vm1, %v4048_v37, %v10521_v44  ;;  %v3937_v17 = vpop.permute.xlu1 %3936 }
 0x441   : > { %4349 = vmatpush.msrb.mxu2 %v9391_v19  ;;  %v4050_v47 = vsel %vm908_vm7, %v4049_v52, %v9416_v35 }
 0x442   : > { %4535 = vmatpush.msk.msra.mxu3 %vm4147_vm8, %v4050_v47 }
 0x443   : > { %4350 = vmatpush.msrb.mxu2 %v9387_v3 }
 0x444   : > { %4367 = vmatpush.msra.mxu3 %v4179_v18  ;;  %4534 = vmatmul.msk.f32.vlgmr.msrb.gmra.mxu2 %vm4187_vm9, %v9251_v42 }
 0x446   : > { %v3933_v13 = vpop.permute.xlu0 %3932  ;;  %4368 = vmatpush.msra.mxu3 %v4171_v16 }
 0x447   : > { %v4027_v19 = vsel %vm905_vm6, %v10522_v32, %v3933_v13 }
 0x448   : > { %4369 = vmatpush.msra.mxu3 %v9403_v14  ;;  %v4028_v35 = vsel %vm351_vm1, %v4027_v19, %v3937_v17 }
 0x449   : > { %v4029_v3 = vsel %vm908_vm7, %v4028_v35, %v3941_v62 }
 0x44a   : > { %4521 = vmatpush.msk.msrb.mxu0 %vm4147_vm8, %v4029_v3  ;;  %4370 = vmatpush.msra.mxu3 %v9409_v0 }
 0x44b   : > { %4536 = vmatmul.msk.f32.vlgmr.msra.gmra.mxu3 %vm4187_vm9, %v9251_v42 }
 0x44c   : > { %4227 = vmatpush.msrb.mxu0 %v9370_v57 }
 0x44e   : > { %4228 = vmatpush.msrb.mxu0 %v10523_v21 }
 0x450   : > { %4229 = vmatpush.msrb.mxu0 %v10524_v20 }
 0x452   : > { %4230 = vmatpush.msrb.mxu0 %v10525_v29 }
 0x453   : > { %4522 = vmatmul.msk.f32.vlgmr.msrb.gmra.mxu0 %vm4187_vm9, %v9251_v42 }
 0x470   : > { %v4252_v14 = vpop.f32.mrf.mxu3  ;;  %v4272_v22 = vpop.f32.mrf.mxu2 }
 0x4a0   : > { %v4292_v54 = vpop.f32.mrf.mxu3 }
 0x4a3   : > { %v4185_v46 = vpop.permute.xlu0 %4184 }
 0x4a4   : > { %v4253_v0 = vadd.f32 %v4252_v14, %v4185_v46  ;;  %v4273_v53 = vadd.f32 %v4272_v22, %v4185_v46  ;;  %v4293_v33 = vadd.f32 %v4292_v54, %v4185_v46 }
 0x4a5   : > { %v4312_v48 = vpop.f32.mrf.mxu2 }
 0x4a6   : > { %v4313_v59 = vadd.f32 %v4312_v48, %v4185_v46  ;;  %vm4376_vm10 = vcmp.ge.f32.partialorder %v4253_v0, 0.0  ;;  %v4384_v42 = vmul.f32 0.01, %v4253_v0  ;;  %vm4377_vm11 = vcmp.ge.f32.partialorder %v4273_v53, 0.0 }
 0x4a7   : > { %v4385_v57 = vmul.f32 0.01, %v4273_v53  ;;  %vm4378_vm12 = vcmp.ge.f32.partialorder %v4293_v33, 0.0  ;;  %v4386_v25 = vmul.f32 0.01, %v4293_v33 }
 0x4a8   : > { %vm4379_vm13 = vcmp.ge.f32.partialorder %v4313_v59, 0.0  ;;  %v4387_v27 = vmul.f32 0.01, %v4313_v59  ;;  %v4392_v28 = vsel %vm4376_vm10, %v4253_v0, %v4384_v42 }
 0x4a9   : > { %v4393_v39 = vsel %vm4377_vm11, %v4273_v53, %v4385_v57  ;;  %4400 = vst [vmem:[%s9508_s26 + $0x8] sm:$0xff] %v4392_v28  ;;  %v4394_v31 = vsel %vm4378_vm12, %v4293_v33, %v4386_v25 }
 0x4aa   : > { %v4395_v30 = vsel %vm4379_vm13, %v4313_v59, %v4387_v27  ;;  %4401 = vst [vmem:[%s9508_s26 + $0x10] sm:$0xff] %v4393_v39 }
 0x4ab   : > { %4402 = vst [vmem:[%s9508_s26 + $0x18] sm:$0xff] %v4394_v31 }
 0x4ac   : > { %4403 = vst [vmem:[%s9508_s26 + $0x20] sm:$0xff] %v4395_v30 }
 0x4bc   : > { %v4332_v10 = vpop.f32.mrf.mxu3 }
 0x4bd   : > { %v4333_v61 = vadd.f32 %v4332_v10, %v4185_v46 }
 0x4bf   : > { %vm4380_vm14 = vcmp.ge.f32.partialorder %v4333_v61, 0.0  ;;  %v4388_v50 = vmul.f32 0.01, %v4333_v61 }
 0x4c1   : > { %v4396_v11 = vsel %vm4380_vm14, %v4333_v61, %v4388_v50 }
 0x4c2   : > { %4404 = vst [vmem:[%s9508_s26 + $0x28] sm:$0xff] %v4396_v11 }
 0x4c7   : > { %v4352_v38 = vpop.f32.mrf.mxu2 }
 0x4c8   : > { %v4353_v8 = vadd.f32 %v4352_v38, %v4185_v46 }
 0x4ca   : > { %vm4381_vm15 = vcmp.ge.f32.partialorder %v4353_v8, 0.0  ;;  %v4389_v63 = vmul.f32 0.01, %v4353_v8 }
 0x4cc   : > { %v4397_v6 = vsel %vm4381_vm15, %v4353_v8, %v4389_v63 }
 0x4cd   : > { %4405 = vst [vmem:[%s9508_s26 + $0x30] sm:$0xff] %v4397_v6 }
 0x4ce   : > { %v4372_v2 = vpop.f32.mrf.mxu3 }
 0x4cf   : > { %v4373_v40 = vadd.f32 %v4372_v2, %v4185_v46 }
 0x4d0   : > { %v4232_v1 = vpop.f32.mrf.mxu0 }
 0x4d1   : > { %v4233_v36 = vadd.f32 %v4232_v1, %v4185_v46  ;;  %vm4382_vm0 = vcmp.ge.f32.partialorder %v4373_v40, 0.0  ;;  %v4390_v51 = vmul.f32 0.01, %v4373_v40 }
 0x4d3   : > { %vm4375_vm1 = vcmp.ge.f32.partialorder %v4233_v36, 0.0  ;;  %v4383_v26 = vmul.f32 0.01, %v4233_v36  ;;  %v4398_v49 = vsel %vm4382_vm0, %v4373_v40, %v4390_v51 }
 0x4d4   : > { %4406 = vst [vmem:[%s9508_s26 + $0x38] sm:$0xff] %v4398_v49 }
 0x4d5   : > { %v4391_v45 = vsel %vm4375_vm1, %v4233_v36, %v4383_v26 }
 0x4d6   : > { %4399 = vst [vmem:[%s9508_s26] sm:$0xff] %v4391_v45 }
 0x4d7 PF: > { %s17_s18 = sadd.s32 1, %s5353_s18  }
 0x4d8   : > { %p14_p7 = scmp.ge.s32.totalorder %s17_s18, 4  }
 0x4da   :  { %16 = sbr.rel (!%p14_p7) target bundleno = 2 (0x2), region = 79 }
 0x4df   :  { %4428 = vsyncpa [#allocation4], 1 }
 0x4e0   :  { %4430 = vsyncpa [#allocation4 + $0x1], 1 }
 0x4e1   :  { %4431 = vsyncpa [#allocation6], 1 }

</bundles_post_ra>
